<compile_context>
chip_gen: v6e
topology: v6e:2x2x1
jax: 0.10.0
libtpu: 0.0.40
codegen_flags: <defaults>
</compile_context>

<pallas_src>
import functools

import jax
import jax.numpy as jnp
import numpy as np
from jax.experimental import pallas as pl
from jax.experimental.pallas import tpu as pltpu


# ----------------------------------------------------------------------------- kernel
def _aspp_kernel(xp_ref, w_ref, scale_ref, bias_ref, o_ref, acc_ref,
                 *, th, wout_p, ksize_h, ksize_w, dil):
    """One grid step = (image b, row tile r, channel slice k).

    xp_ref   : (1, Hp_p, Wp_p, tk)       zero-padded input channel slice (bf16)
    w_ref    : (KH, KW, tk, Cout_p)      conv weight slice (bf16), Cout padded to 128x
    scale_ref: (1, Cout_p)               folded BN scale = gamma / sqrt(var + eps) (f32)
    bias_ref : (1, Cout_p)               folded BN bias  = beta - mean * scale     (f32)
    o_ref    : (1, TH*Wout_p, Cout_p)    lane-dense output tile
    acc_ref  : (TH*Wout_p, Cout_p) f32   VMEM scratch accumulator (lives across k)
    """
    k = pl.program_id(2)
    tk = w_ref.shape[2]
    m = th * wout_p
    h0 = pl.multiple_of(pl.program_id(1) * th, th)

    @pl.when(k == 0)
    def _():
        acc_ref[...] = jnp.zeros_like(acc_ref)

    # Dilated conv as KH*KW shifted (M, tk) x (tk, Cout_p) MXU matmuls, f32 accumulation
    # directly into the VMEM scratch.  Wout_p % 8 == 0 keeps the flatten tile-aligned.
    for kh in range(ksize_h):
        for kw in range(ksize_w):
            patch = xp_ref[0, pl.ds(h0 + kh * dil, th),
                           kw * dil: kw * dil + wout_p, :]
            acc_ref[...] += jnp.dot(patch.reshape(m, tk), w_ref[kh, kw],
                                    preferred_element_type=jnp.float32)

    # Folded BatchNorm + ReLU epilogue in f32 (VPU; v5e has no bf16 VPU), then a single
    # full-lane store — only on the last Cin slice.
    @pl.when(k == pl.num_programs(2) - 1)
    def _():
        y = jnp.maximum(acc_ref[...] * scale_ref[...] + bias_ref[...], 0.0)
        o_ref[0, :, :] = y.astype(o_ref.dtype)


# ----------------------------------------------------------------------------- helpers
def _round_up(x, m):
    return ((x + m - 1) // m) * m


def _pick_cin_tile(cin, in_spatial_elems, w_taps, cout_p, vmem_budget):
    """Largest channel tile (multiple of 128 dividing cin, or cin itself) whose
    double-buffered input + weight blocks fit the VMEM budget."""
    def resident(tk):
        in_b = in_spatial_elems * tk * 2            # bf16 input block
        w_b = w_taps * tk * cout_p * 2              # bf16 weight block
        return 2 * (in_b + w_b)                     # double-buffered by the pipeline

    if resident(cin) <= vmem_budget or cin % 128 != 0:
        return cin
    divisors = [tk for tk in range(128, cin, 128) if cin % tk == 0]
    fitting = [tk for tk in divisors if resident(tk) <= vmem_budget]
    if fitting:
        return max(fitting)
    return min(divisors) if divisors else cin


# ----------------------------------------------------------------------------- wrapper
def aspp_forward(x_nchw, weight_oihw, gamma, beta, run_mean, run_var,
                 *, padding, dilation, eps=1e-5, target_m=512):
    n, cin, h, w = x_nchw.shape
    cout, cin_w, ksize_h, ksize_w = weight_oihw.shape
    assert cin_w == cin, "weight/input channel mismatch"

    hout = h + 2 * padding - dilation * (ksize_h - 1)
    wout = w + 2 * padding - dilation * (ksize_w - 1)
    assert hout > 0 and wout > 0, "conv output would be empty"

    cout_p = _round_up(cout, 128)                           # lane-dense Cout

    # --- spatial tiling: pad Wout to 8 (tile-aligned flatten + M%8==0), pad Hout to TH.
    is_1x1 = (ksize_h == 1 and ksize_w == 1)
    m_target = 1024 if is_1x1 else target_m                 # 1x1 branch: bigger M is free
    wout_p = _round_up(wout, 8)
    acc_budget = 2 * 1024 * 1024                            # f32 accumulator cap
    th = max(1, min(hout, m_target // wout_p,
                    acc_budget // (wout_p * cout_p * 4)))
    hout_p = _round_up(hout, th)
    m = th * wout_p

    hp_p = hout_p + dilation * (ksize_h - 1)
    wp_p = wout_p + dilation * (ksize_w - 1)

    # --- VMEM-aware Cin split (keeps v7x under 64 MiB; v5e/v6e usually keep tk = Cin).
    try:
        vmem_phys = int(pltpu.get_tpu_info().vmem_capacity_bytes)
    except Exception:
        vmem_phys = 64 * 1024 * 1024                        # conservative (v7x) fallback
    vmem_limit = min(vmem_phys * 3 // 4, 100 * 1024 * 1024)
    tk = _pick_cin_tile(cin, hp_p * wp_p, ksize_h * ksize_w, cout_p,
                        vmem_budget=vmem_limit - 8 * 1024 * 1024)
    n_k = cin // tk
    n_r = hout_p // th

    # --- wrapper glue (one pass each): bf16 cast FIRST, then layout + zero-pad, BN fold.
    x_nhwc = jnp.transpose(x_nchw.astype(jnp.bfloat16), (0, 2, 3, 1))      # N,H,W,Cin
    xp = jnp.pad(x_nhwc, ((0, 0),
                          (padding, padding + (hout_p - hout)),
                          (padding, padding + (wout_p - wout)),
                          (0, 0)))

    w_hwio = jnp.transpose(weight_oihw, (2, 3, 1, 0)).astype(jnp.bfloat16)  # KH,KW,Cin,Cout
    w_hwio = jnp.pad(w_hwio, ((0, 0), (0, 0), (0, 0), (0, cout_p - cout)))

    scale = (gamma / jnp.sqrt(run_var + eps)).astype(jnp.float32)
    bias = (beta - run_mean * scale).astype(jnp.float32)
    scale = jnp.pad(scale, (0, cout_p - cout)).reshape(1, cout_p)
    bias = jnp.pad(bias, (0, cout_p - cout)).reshape(1, cout_p)

    kernel = functools.partial(_aspp_kernel, th=th, wout_p=wout_p,
                               ksize_h=ksize_h, ksize_w=ksize_w, dil=dilation)

    out_dtype = x_nchw.dtype                               # keep f32 module semantics
    flops = 2 * n * hout_p * wout_p * ksize_h * ksize_w * cin * cout_p
    bytes_accessed = int(xp.size * 2 + w_hwio.size * 2
                         + n * hout_p * wout_p * cout_p * jnp.dtype(out_dtype).itemsize)

    out_flat = pl.pallas_call(
        kernel,
        out_shape=jax.ShapeDtypeStruct((n, hout_p * wout_p, cout_p), out_dtype),
        grid_spec=pltpu.PrefetchScalarGridSpec(
            num_scalar_prefetch=0,
            grid=(n, n_r, n_k),                             # Cin reduction axis last
            in_specs=[
                # Padded image, one Cin slice; resident across row tiles when n_k == 1.
                pl.BlockSpec((1, hp_p, wp_p, tk), lambda b, r, k: (b, 0, 0, k)),
                pl.BlockSpec((ksize_h, ksize_w, tk, cout_p), lambda b, r, k: (0, 0, k, 0)),
                pl.BlockSpec((1, cout_p), lambda b, r, k: (0, 0)),
                pl.BlockSpec((1, cout_p), lambda b, r, k: (0, 0)),
            ],
            out_specs=pl.BlockSpec((1, m, cout_p), lambda b, r, k: (b, r, 0)),
            scratch_shapes=[pltpu.VMEM((m, cout_p), jnp.float32)],
        ),
        compiler_params=pltpu.CompilerParams(
            dimension_semantics=("parallel", "parallel", "arbitrary"),
            vmem_limit_bytes=vmem_limit,
        ),
        cost_estimate=pl.CostEstimate(flops=flops, transcendentals=0,
                                      bytes_accessed=bytes_accessed),
    )(xp, w_hwio, scale, bias)

    # Drop Cout / spatial padding (no-op slices when already aligned), back to NCHW.
    out = out_flat.reshape(n, hout_p, wout_p, cout_p)[:, :hout, :wout, :cout]
    return jnp.transpose(out, (0, 3, 1, 2))


# ----------------------------------------------------------------------------- reference
def _reference(x_nchw, weight_oihw, gamma, beta, run_mean, run_var,
               *, padding, dilation, eps=1e-5):
    # Match the kernel's numerics: bf16 matmul operands, f32 accumulation.
    xb = x_nchw.astype(jnp.bfloat16).astype(jnp.float32)
    wb = weight_oihw.astype(jnp.bfloat16).astype(jnp.float32)
    conv = jax.lax.conv_general_dilated(
        xb, wb,
        window_strides=(1, 1),
        padding=((padding, padding), (padding, padding)),
        rhs_dilation=(dilation, dilation),
        dimension_numbers=("NCHW", "OIHW", "NCHW"),
        preferred_element_type=jnp.float32,
    )
    c = lambda v: v[None, :, None, None]
    y = (conv - c(run_mean)) / jnp.sqrt(c(run_var) + eps) * c(gamma) + c(beta)
    return jnp.maximum(y, 0.0)


if __name__ == "__main__":
    key = jax.random.PRNGKey(0)

    def run_case(n, cin, h, w, cout, k, padding, dilation, case_key):
        kx, kw_, kg, kb, km, kv = jax.random.split(case_key, 6)
        x = jax.random.normal(kx, (n, cin, h, w), jnp.float32)
        weight = jax.random.normal(kw_, (cout, cin, k, k), jnp.float32) * 0.1
        gamma = 1.0 + 0.1 * jax.random.normal(kg, (cout,), jnp.float32)
        beta = 0.1 * jax.random.normal(kb, (cout,), jnp.float32)
        run_mean = 0.1 * jax.random.normal(km, (cout,), jnp.float32)
        run_var = 1.0 + 0.1 * jax.random.uniform(kv, (cout,), jnp.float32)

        out = aspp_forward(x, weight, gamma, beta, run_mean, run_var,
                           padding=padding, dilation=dilation)
        out = jax.block_until_ready(out)

        ref = _reference(x, weight, gamma, beta, run_mean, run_var,
                         padding=padding, dilation=dilation)
        np.testing.assert_allclose(np.asarray(out), np.asarray(ref),
                                   rtol=1e-3, atol=1e-3)

    k1, k2 = jax.random.split(key)
    # 3x3 dilated ASPP branch: _ASPPModule(4, 8, kernel_size=3, padding=2, dilation=2)
    run_case(2, 4, 16, 16, 8, 3, 2, 2, k1)
    # 1x1 ASPP branch:         _ASPPModule(8, 16, kernel_size=1, padding=0, dilation=1)
    run_case(2, 8, 12, 12, 16, 1, 0, 1, k2)

    print("KERNEL_OK")
</pallas_src>

<mosaic_0001>
module attributes {stable_mosaic.version = 11 : i64} {
  func.func @_aspp_kernel(%arg0: i32, %arg1: i32, %arg2: i32, %arg3: memref<1x20x20x4xbf16, #tpu.memory_space<vmem>>, %arg4: memref<3x3x4x128xbf16, #tpu.memory_space<vmem>>, %arg5: memref<1x128xf32, #tpu.memory_space<vmem>>, %arg6: memref<1x128xf32, #tpu.memory_space<vmem>>, %arg7: memref<1x256x128xf32, #tpu.memory_space<vmem>>, %arg8: memref<256x128xf32, #tpu.memory_space<vmem>>) attributes {dimension_semantics = [#tpu.dimension_semantics<parallel>, #tpu.dimension_semantics<parallel>, #tpu.dimension_semantics<arbitrary>], iteration_bounds = array<i64: 2, 1, 1>, scalar_prefetch = 0 : i64, scratch_operands = 1 : i64, tpu.core_type = #tpu.core_type<tc>, window_params = [{transform_indices = @transform_0, window_bounds = array<i64: 1, 20, 20, 4>}, {transform_indices = @transform_1, window_bounds = array<i64: 3, 3, 4, 128>}, {pipeline_mode = #tpu.pipeline_mode<synchronous>, transform_indices = @transform_2, window_bounds = array<i64: 1, 128>}, {pipeline_mode = #tpu.pipeline_mode<synchronous>, transform_indices = @transform_3, window_bounds = array<i64: 1, 128>}, {transform_indices = @transform_4, window_bounds = array<i64: 1, 256, 128>}]} {
    %c16_i32 = arith.constant 16 : i32
    %0 = arith.muli %arg1, %c16_i32 : i32
    %1 = tpu.assume_multiple %0, 16 : i32
    %c0_i32 = arith.constant 0 : i32
    %2 = arith.cmpi eq, %arg2, %c0_i32 : i32
    %3 = arith.extui %2 : i1 to i32
    %c0_i32_0 = arith.constant 0 : i32
    %4 = arith.cmpi ne, %3, %c0_i32_0 : i32
    scf.if %4 {
      %cst_113 = arith.constant 0.000000e+00 : f32
      %107 = vector.broadcast %cst_113 : f32 to vector<256x128xf32>
      %c0_114 = arith.constant 0 : index
      %c0_115 = arith.constant 0 : index
      %108 = vector.load %arg8[%c0_114, %c0_115] : memref<256x128xf32, #tpu.memory_space<vmem>>, vector<256x128xf32>
      tpu.vector_store %arg8[%c0_114, %c0_115], %107 {strides = array<i32>} : memref<256x128xf32, #tpu.memory_space<vmem>>, vector<256x128xf32>,
    } else {
    }
    %c0_i32_1 = arith.constant 0 : i32
    %5 = arith.addi %1, %c0_i32_1 : i32
    %c0 = arith.constant 0 : index
    %6 = arith.index_cast %5 : i32 to index
    %c0_2 = arith.constant 0 : index
    %c0_3 = arith.constant 0 : index
    %7 = vector.load %arg3[%c0, %6, %c0_2, %c0_3] : memref<1x20x20x4xbf16, #tpu.memory_space<vmem>>, vector<1x16x16x4xbf16>
    %8 = vector.shape_cast %7 : vector<1x16x16x4xbf16> to vector<16x16x4xbf16>
    %c0_4 = arith.constant 0 : index
    %c0_5 = arith.constant 0 : index
    %9 = vector.load %arg8[%c0_4, %c0_5] : memref<256x128xf32, #tpu.memory_space<vmem>>, vector<256x128xf32>
    %10 = vector.shape_cast %8 : vector<16x16x4xbf16> to vector<256x4xbf16>
    %c0_6 = arith.constant 0 : index
    %c0_7 = arith.constant 0 : index
    %c0_8 = arith.constant 0 : index
    %c0_9 = arith.constant 0 : index
    %11 = vector.load %arg4[%c0_6, %c0_7, %c0_8, %c0_9] : memref<3x3x4x128xbf16, #tpu.memory_space<vmem>>, vector<1x1x4x128xbf16>
    %12 = vector.shape_cast %11 : vector<1x1x4x128xbf16> to vector<4x128xbf16>
    %cst = arith.constant dense<0.000000e+00> : vector<256x128xf32>
    %13 = tpu.matmul %10, %12, %cst {dimension_numbers = #tpu.dot_dimension_numbers<[1], [0], [0], [1], [0, 0, 1, 1], [], []>} : vector<256x4xbf16>, vector<4x128xbf16>, vector<256x128xf32> -> vector<256x128xf32>
    %14 = arith.addf %9, %13 : vector<256x128xf32>
    %c0_10 = arith.constant 0 : index
    %c0_11 = arith.constant 0 : index
    %15 = vector.load %arg8[%c0_10, %c0_11] : memref<256x128xf32, #tpu.memory_space<vmem>>, vector<256x128xf32>
    tpu.vector_store %arg8[%c0_10, %c0_11], %14 {strides = array<i32>} : memref<256x128xf32, #tpu.memory_space<vmem>>, vector<256x128xf32>,
    %c0_i32_12 = arith.constant 0 : i32
    %16 = arith.addi %1, %c0_i32_12 : i32
    %c0_13 = arith.constant 0 : index
    %17 = arith.index_cast %16 : i32 to index
    %c2 = arith.constant 2 : index
    %c0_14 = arith.constant 0 : index
    %18 = vector.load %arg3[%c0_13, %17, %c2, %c0_14] : memref<1x20x20x4xbf16, #tpu.memory_space<vmem>>, vector<1x16x16x4xbf16>
    %19 = vector.shape_cast %18 : vector<1x16x16x4xbf16> to vector<16x16x4xbf16>
    %c0_15 = arith.constant 0 : index
    %c0_16 = arith.constant 0 : index
    %20 = vector.load %arg8[%c0_15, %c0_16] : memref<256x128xf32, #tpu.memory_space<vmem>>, vector<256x128xf32>
    %21 = vector.shape_cast %19 : vector<16x16x4xbf16> to vector<256x4xbf16>
    %c0_17 = arith.constant 0 : index
    %c1 = arith.constant 1 : index
    %c0_18 = arith.constant 0 : index
    %c0_19 = arith.constant 0 : index
    %22 = vector.load %arg4[%c0_17, %c1, %c0_18, %c0_19] : memref<3x3x4x128xbf16, #tpu.memory_space<vmem>>, vector<1x1x4x128xbf16>
    %23 = vector.shape_cast %22 : vector<1x1x4x128xbf16> to vector<4x128xbf16>
    %cst_20 = arith.constant dense<0.000000e+00> : vector<256x128xf32>
    %24 = tpu.matmul %21, %23, %cst_20 {dimension_numbers = #tpu.dot_dimension_numbers<[1], [0], [0], [1], [0, 0, 1, 1], [], []>} : vector<256x4xbf16>, vector<4x128xbf16>, vector<256x128xf32> -> vector<256x128xf32>
    %25 = arith.addf %20, %24 : vector<256x128xf32>
    %c0_21 = arith.constant 0 : index
    %c0_22 = arith.constant 0 : index
    %26 = vector.load %arg8[%c0_21, %c0_22] : memref<256x128xf32, #tpu.memory_space<vmem>>, vector<256x128xf32>
    tpu.vector_store %arg8[%c0_21, %c0_22], %25 {strides = array<i32>} : memref<256x128xf32, #tpu.memory_space<vmem>>, vector<256x128xf32>,
    %c0_i32_23 = arith.constant 0 : i32
    %27 = arith.addi %1, %c0_i32_23 : i32
    %c0_24 = arith.constant 0 : index
    %28 = arith.index_cast %27 : i32 to index
    %c4 = arith.constant 4 : index
    %c0_25 = arith.constant 0 : index
    %29 = vector.load %arg3[%c0_24, %28, %c4, %c0_25] : memref<1x20x20x4xbf16, #tpu.memory_space<vmem>>, vector<1x16x16x4xbf16>
    %30 = vector.shape_cast %29 : vector<1x16x16x4xbf16> to vector<16x16x4xbf16>
    %c0_26 = arith.constant 0 : index
    %c0_27 = arith.constant 0 : index
    %31 = vector.load %arg8[%c0_26, %c0_27] : memref<256x128xf32, #tpu.memory_space<vmem>>, vector<256x128xf32>
    %32 = vector.shape_cast %30 : vector<16x16x4xbf16> to vector<256x4xbf16>
    %c0_28 = arith.constant 0 : index
    %c2_29 = arith.constant 2 : index
    %c0_30 = arith.constant 0 : index
    %c0_31 = arith.constant 0 : index
    %33 = vector.load %arg4[%c0_28, %c2_29, %c0_30, %c0_31] : memref<3x3x4x128xbf16, #tpu.memory_space<vmem>>, vector<1x1x4x128xbf16>
    %34 = vector.shape_cast %33 : vector<1x1x4x128xbf16> to vector<4x128xbf16>
    %cst_32 = arith.constant dense<0.000000e+00> : vector<256x128xf32>
    %35 = tpu.matmul %32, %34, %cst_32 {dimension_numbers = #tpu.dot_dimension_numbers<[1], [0], [0], [1], [0, 0, 1, 1], [], []>} : vector<256x4xbf16>, vector<4x128xbf16>, vector<256x128xf32> -> vector<256x128xf32>
    %36 = arith.addf %31, %35 : vector<256x128xf32>
    %c0_33 = arith.constant 0 : index
    %c0_34 = arith.constant 0 : index
    %37 = vector.load %arg8[%c0_33, %c0_34] : memref<256x128xf32, #tpu.memory_space<vmem>>, vector<256x128xf32>
    tpu.vector_store %arg8[%c0_33, %c0_34], %36 {strides = array<i32>} : memref<256x128xf32, #tpu.memory_space<vmem>>, vector<256x128xf32>,
    %c2_i32 = arith.constant 2 : i32
    %38 = arith.addi %1, %c2_i32 : i32
    %c0_35 = arith.constant 0 : index
    %39 = arith.index_cast %38 : i32 to index
    %c0_36 = arith.constant 0 : index
    %c0_37 = arith.constant 0 : index
    %40 = vector.load %arg3[%c0_35, %39, %c0_36, %c0_37] : memref<1x20x20x4xbf16, #tpu.memory_space<vmem>>, vector<1x16x16x4xbf16>
    %41 = vector.shape_cast %40 : vector<1x16x16x4xbf16> to vector<16x16x4xbf16>
    %c0_38 = arith.constant 0 : index
    %c0_39 = arith.constant 0 : index
    %42 = vector.load %arg8[%c0_38, %c0_39] : memref<256x128xf32, #tpu.memory_space<vmem>>, vector<256x128xf32>
    %43 = vector.shape_cast %41 : vector<16x16x4xbf16> to vector<256x4xbf16>
    %c1_40 = arith.constant 1 : index
    %c0_41 = arith.constant 0 : index
    %c0_42 = arith.constant 0 : index
    %c0_43 = arith.constant 0 : index
    %44 = vector.load %arg4[%c1_40, %c0_41, %c0_42, %c0_43] : memref<3x3x4x128xbf16, #tpu.memory_space<vmem>>, vector<1x1x4x128xbf16>
    %45 = vector.shape_cast %44 : vector<1x1x4x128xbf16> to vector<4x128xbf16>
    %cst_44 = arith.constant dense<0.000000e+00> : vector<256x128xf32>
    %46 = tpu.matmul %43, %45, %cst_44 {dimension_numbers = #tpu.dot_dimension_numbers<[1], [0], [0], [1], [0, 0, 1, 1], [], []>} : vector<256x4xbf16>, vector<4x128xbf16>, vector<256x128xf32> -> vector<256x128xf32>
    %47 = arith.addf %42, %46 : vector<256x128xf32>
    %c0_45 = arith.constant 0 : index
    %c0_46 = arith.constant 0 : index
    %48 = vector.load %arg8[%c0_45, %c0_46] : memref<256x128xf32, #tpu.memory_space<vmem>>, vector<256x128xf32>
    tpu.vector_store %arg8[%c0_45, %c0_46], %47 {strides = array<i32>} : memref<256x128xf32, #tpu.memory_space<vmem>>, vector<256x128xf32>,
    %c2_i32_47 = arith.constant 2 : i32
    %49 = arith.addi %1, %c2_i32_47 : i32
    %c0_48 = arith.constant 0 : index
    %50 = arith.index_cast %49 : i32 to index
    %c2_49 = arith.constant 2 : index
    %c0_50 = arith.constant 0 : index
    %51 = vector.load %arg3[%c0_48, %50, %c2_49, %c0_50] : memref<1x20x20x4xbf16, #tpu.memory_space<vmem>>, vector<1x16x16x4xbf16>
    %52 = vector.shape_cast %51 : vector<1x16x16x4xbf16> to vector<16x16x4xbf16>
    %c0_51 = arith.constant 0 : index
    %c0_52 = arith.constant 0 : index
    %53 = vector.load %arg8[%c0_51, %c0_52] : memref<256x128xf32, #tpu.memory_space<vmem>>, vector<256x128xf32>
    %54 = vector.shape_cast %52 : vector<16x16x4xbf16> to vector<256x4xbf16>
    %c1_53 = arith.constant 1 : index
    %c1_54 = arith.constant 1 : index
    %c0_55 = arith.constant 0 : index
    %c0_56 = arith.constant 0 : index
    %55 = vector.load %arg4[%c1_53, %c1_54, %c0_55, %c0_56] : memref<3x3x4x128xbf16, #tpu.memory_space<vmem>>, vector<1x1x4x128xbf16>
    %56 = vector.shape_cast %55 : vector<1x1x4x128xbf16> to vector<4x128xbf16>
    %cst_57 = arith.constant dense<0.000000e+00> : vector<256x128xf32>
    %57 = tpu.matmul %54, %56, %cst_57 {dimension_numbers = #tpu.dot_dimension_numbers<[1], [0], [0], [1], [0, 0, 1, 1], [], []>} : vector<256x4xbf16>, vector<4x128xbf16>, vector<256x128xf32> -> vector<256x128xf32>
    %58 = arith.addf %53, %57 : vector<256x128xf32>
    %c0_58 = arith.constant 0 : index
    %c0_59 = arith.constant 0 : index
    %59 = vector.load %arg8[%c0_58, %c0_59] : memref<256x128xf32, #tpu.memory_space<vmem>>, vector<256x128xf32>
    tpu.vector_store %arg8[%c0_58, %c0_59], %58 {strides = array<i32>} : memref<256x128xf32, #tpu.memory_space<vmem>>, vector<256x128xf32>,
    %c2_i32_60 = arith.constant 2 : i32
    %60 = arith.addi %1, %c2_i32_60 : i32
    %c0_61 = arith.constant 0 : index
    %61 = arith.index_cast %60 : i32 to index
    %c4_62 = arith.constant 4 : index
    %c0_63 = arith.constant 0 : index
    %62 = vector.load %arg3[%c0_61, %61, %c4_62, %c0_63] : memref<1x20x20x4xbf16, #tpu.memory_space<vmem>>, vector<1x16x16x4xbf16>
    %63 = vector.shape_cast %62 : vector<1x16x16x4xbf16> to vector<16x16x4xbf16>
    %c0_64 = arith.constant 0 : index
    %c0_65 = arith.constant 0 : index
    %64 = vector.load %arg8[%c0_64, %c0_65] : memref<256x128xf32, #tpu.memory_space<vmem>>, vector<256x128xf32>
    %65 = vector.shape_cast %63 : vector<16x16x4xbf16> to vector<256x4xbf16>
    %c1_66 = arith.constant 1 : index
    %c2_67 = arith.constant 2 : index
    %c0_68 = arith.constant 0 : index
    %c0_69 = arith.constant 0 : index
    %66 = vector.load %arg4[%c1_66, %c2_67, %c0_68, %c0_69] : memref<3x3x4x128xbf16, #tpu.memory_space<vmem>>, vector<1x1x4x128xbf16>
    %67 = vector.shape_cast %66 : vector<1x1x4x128xbf16> to vector<4x128xbf16>
    %cst_70 = arith.constant dense<0.000000e+00> : vector<256x128xf32>
    %68 = tpu.matmul %65, %67, %cst_70 {dimension_numbers = #tpu.dot_dimension_numbers<[1], [0], [0], [1], [0, 0, 1, 1], [], []>} : vector<256x4xbf16>, vector<4x128xbf16>, vector<256x128xf32> -> vector<256x128xf32>
    %69 = arith.addf %64, %68 : vector<256x128xf32>
    %c0_71 = arith.constant 0 : index
    %c0_72 = arith.constant 0 : index
    %70 = vector.load %arg8[%c0_71, %c0_72] : memref<256x128xf32, #tpu.memory_space<vmem>>, vector<256x128xf32>
    tpu.vector_store %arg8[%c0_71, %c0_72], %69 {strides = array<i32>} : memref<256x128xf32, #tpu.memory_space<vmem>>, vector<256x128xf32>,
    %c4_i32 = arith.constant 4 : i32
    %71 = arith.addi %1, %c4_i32 : i32
    %c0_73 = arith.constant 0 : index
    %72 = arith.index_cast %71 : i32 to index
    %c0_74 = arith.constant 0 : index
    %c0_75 = arith.constant 0 : index
    %73 = vector.load %arg3[%c0_73, %72, %c0_74, %c0_75] : memref<1x20x20x4xbf16, #tpu.memory_space<vmem>>, vector<1x16x16x4xbf16>
    %74 = vector.shape_cast %73 : vector<1x16x16x4xbf16> to vector<16x16x4xbf16>
    %c0_76 = arith.constant 0 : index
    %c0_77 = arith.constant 0 : index
    %75 = vector.load %arg8[%c0_76, %c0_77] : memref<256x128xf32, #tpu.memory_space<vmem>>, vector<256x128xf32>
    %76 = vector.shape_cast %74 : vector<16x16x4xbf16> to vector<256x4xbf16>
    %c2_78 = arith.constant 2 : index
    %c0_79 = arith.constant 0 : index
    %c0_80 = arith.constant 0 : index
    %c0_81 = arith.constant 0 : index
    %77 = vector.load %arg4[%c2_78, %c0_79, %c0_80, %c0_81] : memref<3x3x4x128xbf16, #tpu.memory_space<vmem>>, vector<1x1x4x128xbf16>
    %78 = vector.shape_cast %77 : vector<1x1x4x128xbf16> to vector<4x128xbf16>
    %cst_82 = arith.constant dense<0.000000e+00> : vector<256x128xf32>
    %79 = tpu.matmul %76, %78, %cst_82 {dimension_numbers = #tpu.dot_dimension_numbers<[1], [0], [0], [1], [0, 0, 1, 1], [], []>} : vector<256x4xbf16>, vector<4x128xbf16>, vector<256x128xf32> -> vector<256x128xf32>
    %80 = arith.addf %75, %79 : vector<256x128xf32>
    %c0_83 = arith.constant 0 : index
    %c0_84 = arith.constant 0 : index
    %81 = vector.load %arg8[%c0_83, %c0_84] : memref<256x128xf32, #tpu.memory_space<vmem>>, vector<256x128xf32>
    tpu.vector_store %arg8[%c0_83, %c0_84], %80 {strides = array<i32>} : memref<256x128xf32, #tpu.memory_space<vmem>>, vector<256x128xf32>,
    %c4_i32_85 = arith.constant 4 : i32
    %82 = arith.addi %1, %c4_i32_85 : i32
    %c0_86 = arith.constant 0 : index
    %83 = arith.index_cast %82 : i32 to index
    %c2_87 = arith.constant 2 : index
    %c0_88 = arith.constant 0 : index
    %84 = vector.load %arg3[%c0_86, %83, %c2_87, %c0_88] : memref<1x20x20x4xbf16, #tpu.memory_space<vmem>>, vector<1x16x16x4xbf16>
    %85 = vector.shape_cast %84 : vector<1x16x16x4xbf16> to vector<16x16x4xbf16>
    %c0_89 = arith.constant 0 : index
    %c0_90 = arith.constant 0 : index
    %86 = vector.load %arg8[%c0_89, %c0_90] : memref<256x128xf32, #tpu.memory_space<vmem>>, vector<256x128xf32>
    %87 = vector.shape_cast %85 : vector<16x16x4xbf16> to vector<256x4xbf16>
    %c2_91 = arith.constant 2 : index
    %c1_92 = arith.constant 1 : index
    %c0_93 = arith.constant 0 : index
    %c0_94 = arith.constant 0 : index
    %88 = vector.load %arg4[%c2_91, %c1_92, %c0_93, %c0_94] : memref<3x3x4x128xbf16, #tpu.memory_space<vmem>>, vector<1x1x4x128xbf16>
    %89 = vector.shape_cast %88 : vector<1x1x4x128xbf16> to vector<4x128xbf16>
    %cst_95 = arith.constant dense<0.000000e+00> : vector<256x128xf32>
    %90 = tpu.matmul %87, %89, %cst_95 {dimension_numbers = #tpu.dot_dimension_numbers<[1], [0], [0], [1], [0, 0, 1, 1], [], []>} : vector<256x4xbf16>, vector<4x128xbf16>, vector<256x128xf32> -> vector<256x128xf32>
    %91 = arith.addf %86, %90 : vector<256x128xf32>
    %c0_96 = arith.constant 0 : index
    %c0_97 = arith.constant 0 : index
    %92 = vector.load %arg8[%c0_96, %c0_97] : memref<256x128xf32, #tpu.memory_space<vmem>>, vector<256x128xf32>
    tpu.vector_store %arg8[%c0_96, %c0_97], %91 {strides = array<i32>} : memref<256x128xf32, #tpu.memory_space<vmem>>, vector<256x128xf32>,
    %c4_i32_98 = arith.constant 4 : i32
    %93 = arith.addi %1, %c4_i32_98 : i32
    %c0_99 = arith.constant 0 : index
    %94 = arith.index_cast %93 : i32 to index
    %c4_100 = arith.constant 4 : index
    %c0_101 = arith.constant 0 : index
    %95 = vector.load %arg3[%c0_99, %94, %c4_100, %c0_101] : memref<1x20x20x4xbf16, #tpu.memory_space<vmem>>, vector<1x16x16x4xbf16>
    %96 = vector.shape_cast %95 : vector<1x16x16x4xbf16> to vector<16x16x4xbf16>
    %c0_102 = arith.constant 0 : index
    %c0_103 = arith.constant 0 : index
    %97 = vector.load %arg8[%c0_102, %c0_103] : memref<256x128xf32, #tpu.memory_space<vmem>>, vector<256x128xf32>
    %98 = vector.shape_cast %96 : vector<16x16x4xbf16> to vector<256x4xbf16>
    %c2_104 = arith.constant 2 : index
    %c2_105 = arith.constant 2 : index
    %c0_106 = arith.constant 0 : index
    %c0_107 = arith.constant 0 : index
    %99 = vector.load %arg4[%c2_104, %c2_105, %c0_106, %c0_107] : memref<3x3x4x128xbf16, #tpu.memory_space<vmem>>, vector<1x1x4x128xbf16>
    %100 = vector.shape_cast %99 : vector<1x1x4x128xbf16> to vector<4x128xbf16>
    %cst_108 = arith.constant dense<0.000000e+00> : vector<256x128xf32>
    %101 = tpu.matmul %98, %100, %cst_108 {dimension_numbers = #tpu.dot_dimension_numbers<[1], [0], [0], [1], [0, 0, 1, 1], [], []>} : vector<256x4xbf16>, vector<4x128xbf16>, vector<256x128xf32> -> vector<256x128xf32>
    %102 = arith.addf %97, %101 : vector<256x128xf32>
    %c0_109 = arith.constant 0 : index
    %c0_110 = arith.constant 0 : index
    %103 = vector.load %arg8[%c0_109, %c0_110] : memref<256x128xf32, #tpu.memory_space<vmem>>, vector<256x128xf32>
    tpu.vector_store %arg8[%c0_109, %c0_110], %102 {strides = array<i32>} : memref<256x128xf32, #tpu.memory_space<vmem>>, vector<256x128xf32>,
    %c0_i32_111 = arith.constant 0 : i32
    %104 = arith.cmpi eq, %arg2, %c0_i32_111 : i32
    %105 = arith.extui %104 : i1 to i32
    %c0_i32_112 = arith.constant 0 : i32
    %106 = arith.cmpi ne, %105, %c0_i32_112 : i32
    scf.if %106 {
      %c0_113 = arith.constant 0 : index
      %c0_114 = arith.constant 0 : index
      %107 = vector.load %arg8[%c0_113, %c0_114] : memref<256x128xf32, #tpu.memory_space<vmem>>, vector<256x128xf32>
      %c0_115 = arith.constant 0 : index
      %c0_116 = arith.constant 0 : index
      %108 = vector.load %arg5[%c0_115, %c0_116] : memref<1x128xf32, #tpu.memory_space<vmem>>, vector<1x128xf32>
      %109 = vector.broadcast %108 : vector<1x128xf32> to vector<256x128xf32>
      %110 = arith.mulf %107, %109 : vector<256x128xf32>
      %c0_117 = arith.constant 0 : index
      %c0_118 = arith.constant 0 : index
      %111 = vector.load %arg6[%c0_117, %c0_118] : memref<1x128xf32, #tpu.memory_space<vmem>>, vector<1x128xf32>
      %112 = vector.broadcast %111 : vector<1x128xf32> to vector<256x128xf32>
      %113 = arith.addf %110, %112 : vector<256x128xf32>
      %cst_119 = arith.constant 0.000000e+00 : f32
      %114 = vector.broadcast %cst_119 : f32 to vector<256x128xf32>
      %115 = arith.maximumf %113, %114 : vector<256x128xf32>
      %c0_120 = arith.constant 0 : index
      %c0_121 = arith.constant 0 : index
      %c0_122 = arith.constant 0 : index
      %116 = vector.load %arg7[%c0_120, %c0_121, %c0_122] : memref<1x256x128xf32, #tpu.memory_space<vmem>>, vector<1x256x128xf32>
      %117 = vector.shape_cast %116 : vector<1x256x128xf32> to vector<256x128xf32>
      %118 = vector.shape_cast %115 : vector<256x128xf32> to vector<1x256x128xf32>
      tpu.vector_store %arg7[%c0_120, %c0_121, %c0_122], %118 {strides = array<i32>} : memref<1x256x128xf32, #tpu.memory_space<vmem>>, vector<1x256x128xf32>,
    } else {
    }
    return
  }
  func.func @transform_0(%arg0: i32, %arg1: i32, %arg2: i32) -> (i32, i32, i32, i32) {
    %c0_i32 = arith.constant 0 : i32
    %c0_i32_0 = arith.constant 0 : i32
    %c0_i32_1 = arith.constant 0 : i32
    return %arg0, %c0_i32, %c0_i32_0, %arg2 : i32, i32, i32, i32
  }
  func.func @transform_1(%arg0: i32, %arg1: i32, %arg2: i32) -> (i32, i32, i32, i32) {
    %c0_i32 = arith.constant 0 : i32
    %c0_i32_0 = arith.constant 0 : i32
    %c0_i32_1 = arith.constant 0 : i32
    %c0_i32_2 = arith.constant 0 : i32
    return %c0_i32, %c0_i32_0, %arg2, %c0_i32_1 : i32, i32, i32, i32
  }
  func.func @transform_2(%arg0: i32, %arg1: i32, %arg2: i32) -> (i32, i32) {
    %c0_i32 = arith.constant 0 : i32
    %c0_i32_0 = arith.constant 0 : i32
    %c0_i32_1 = arith.constant 0 : i32
    return %c0_i32, %c0_i32_0 : i32, i32
  }
  func.func @transform_3(%arg0: i32, %arg1: i32, %arg2: i32) -> (i32, i32) {
    %c0_i32 = arith.constant 0 : i32
    %c0_i32_0 = arith.constant 0 : i32
    %c0_i32_1 = arith.constant 0 : i32
    return %c0_i32, %c0_i32_0 : i32, i32
  }
  func.func @transform_4(%arg0: i32, %arg1: i32, %arg2: i32) -> (i32, i32, i32) {
    %c0_i32 = arith.constant 0 : i32
    %c0_i32_0 = arith.constant 0 : i32
    return %arg0, %arg1, %c0_i32 : i32, i32, i32
  }
}

</mosaic_0001>

<bundles_post_ra>
// kernel: tpu_custom_call.1
= control target key start
LH: loop header
LB: loop body
LE: loop exit
PB: predicated region body
PF: predicated region fallthrough
CT: control target
= control target key end

     0   :  { %9 = vsyncpa [#allocation4], 0  ;;  %s8562_s0 = inlined_call_operand.vmem [shape: bf16[2,20,20,4], index: 0, kind: input, shape index: {}]   ;;  %s8563_s1 = inlined_call_operand.vmem [shape: bf16[3,3,4,128], index: 1, kind: input, shape index: {}]   ;;  %s8564_s2 = inlined_call_operand.vmem [shape: f32[1,128], index: 2, kind: input, shape index: {}]   ;;  %s8565_s3 = inlined_call_operand.vmem [shape: f32[1,128], index: 3, kind: input, shape index: {}]   ;;  %s8566_s4 = inlined_call_operand.hbm [shape: f32[2,256,128], index: 4, kind: output, shape index: {}]  }
   0x1   :  { %11 = vsyncpa [#allocation4 + $0x1], 0  ;;  %s6611_s15 = smov 0   ;;  %s6613_s16 = smov 0  }
   0x2   :  { %s6615_s17 = smov 0   ;;  %s6617_s18 = smov 0  }
   0x3   :  { %s6619_s19 = smov 0   ;;  %s6621_s20 = smov 0  }
   0x4 LB: > { %s5264_s21 = sadd.s32 4294967295, %s6581_s20   ;;  %s5265_s22 = sadd.s32 4294967294, %s6581_s20   ;;  %s6581_s20 = sphi %s6621_s20, %s17_s20   ;;  %s6577_s19 = sphi %s6619_s19, %s8688_s19   ;;  %s6573_s18 = sphi %s6617_s18, %s8687_s18   ;;  %s6569_s17 = sphi %s6615_s17, %s8686_s17   ;;  %s6565_s16 = sphi %s6613_s16, %s8685_s16   ;;  %s6561_s15 = sphi %s6611_s15, %s8684_s15  }
   0x5   : > { %s36_s23 = sadd.s32 1, %s6577_s19  ;;  %s141_s24 = sadd.s32 1, %s6569_s17 }
   0x6   : > { %p38_p0 = scmp.ge.s32.totalorder %s36_s23, 2  ;;  %p151_p1 = scmp.ne.s32.totalorder %s6569_s17, %s6565_s16 }
   0x7   : > { %p152_p2 = scmp.eq.s32.totalorder %s5264_s21, 1  ;;  %p157_p3 = scmp.ne.s32.totalorder %s6565_s16, %s6561_s15 }
   0x8   : > { %s8690_s23 = smov (%p38_p0, %s36_s23), 0  ;;  %p158_p5 = scmp.eq.s32.totalorder %s5265_s22, 1 }
   0x9   : > { %p6651_p4 = por %p152_p2, %p151_p1  ;;  %s136_s26 = ssub.s32 %s6577_s19, %s8690_s23 }
   0xa   : > { %p5269_p6 = scmp.ge.s32.totalorder %s6581_s20, 1  ;;  %p139_p7 = scmp.eq.s32.totalorder %s136_s26, 0 }
   0xb   : > { %p6658_p8 = por %p158_p5, %p157_p3  ;;  %p200_p9 = scmp.lt.s32.totalorder %s6581_s20, 3 }
   0xc   : > { %s6664_s28 = scalar_select %p139_p7, %s6569_s17, %s141_s24  }
   0xd   : > { %p201_p10 = pnand %p5269_p6, %p200_p9 }
   0xf   : > { %204 = sbr.rel (%p201_p10) target bundleno = 534 (0x216), region = 36 }
  0x14   : > { %v351_v0 = vld [vmem:[%s8563_s1] sm:$0x3]  ;;  %vm481_vm0 = vcmask 1041408   ;;  %p233_p11 = scmp.lt.s32.totalorder %s6573_s18, 1  ;;  %v5320_v2 = vld [vmem:[%s8563_s1 + $0x2] sm:$0x3] }
  0x15   : > { %6390 = vmatprep.subr.msk.bf16.mxu1 %vm481_vm0, %v351_v0  ;;  %6389 = vmatprep.subr.msk.bf16.mxu0 %vm481_vm0, %v351_v0  ;;  %v483_v1 = vsel %vm481_vm0, %v351_v0, 0  ;;  %v5369_v3 = vld [vmem:[%s8563_s1 + $0x4] sm:$0x3]  ;;  %vm432_vm1 = vcmask 31744   ;;  %v5434_v8 = vld [vmem:[%s8563_s1 + $0x6] sm:$0x3] }
  0x16   : > { %6388 = vmatpush3.bf16.msra.mxu1 %v483_v1  ;;  %6082 = vmatpush3.bf16.msra.mxu0 %v483_v1  ;;  %s234_s9 = scalar_select %p233_p11, %s6573_s18, 1  ;;  %v1621_v7 = vsel %vm481_vm0, %v5369_v3, 0  ;;  %v1052_v10 = vsel %vm481_vm0, %v5320_v2, 0  ;;  %v6701_v11 = vld [vmem:[%s8563_s1 + $0x8] sm:$0x3]  ;;  %vm838_vm2 = vcmask 1042432  }
  0x17   : > { %6391 = vmatprep.subr.msk.bf16.mxu1 %vm481_vm0, %v5320_v2  ;;  %6392 = vmatprep.subr.msk.bf16.mxu0 %vm481_vm0, %v5369_v3  ;;  %vm839_vm3 = vcmask 1046532   ;;  %vm1408_vm5 = vcmask 1045508   ;;  %v6744_v40 = vsel %vm481_vm0, %v5434_v8, 0  ;;  %s5927_s24 = sshll.u32 %s6573_s18, 12  ;;  %s6583_s7 = smov [#allocation3]  }
  0x18   : > { %s6399_s10 = smul.u32 240, %s234_s9  ;;  %vm6720_vm4 = vmor %vm838_vm2, %vm839_vm3  ;;  %s8509_s5 = scalar_lea.hbm %s8566_s4, %s5927_s24 }
  0x19   : > { %vm6735_vm6 = vmor %vm481_vm0, %vm1408_vm5  ;;  %s6509_s8 = sshll.u32 %s6583_s7, 4  ;;  %s6510_s8 = int_to_ptr.vmem [resolvable:$false] %s6509_s8 }
  0x1a   : > { %s6685_s13 = scalar_lea.vmem %s8562_s0, %s6399_s10  ;;  %s230_s10 = sand.u32 1, %s6565_s16  }
  0x1b   : > { %v6457_v4 = vld [vmem:[%s6685_s13] sm:$0xff]   ;;  %v6459_v6 = vld [vmem:[%s6685_s13 + $0xc] sm:$0xff]   ;;  %v6461_v12 = vld [vmem:[%s6685_s13 + $0x18] sm:$0xff]   ;;  %s5270_s21 = sshll.u32 %s230_s10, 8  ;;  %s8517_s18 = scalar_lea.sflag [#allocation4], %s230_s10 }
  0x1c   : > { %v6458_v5 = vld [vmem:[%s6685_s13 + $0x60] sm:$0xff]   ;;  %6083 = vmatprep.mubr.msk.bf16.mxu0 %vm432_vm1, %v6457_v4  ;;  %v6460_v9 = vld [vmem:[%s6685_s13 + $0x6c] sm:$0xff]   ;;  %v6462_v13 = vld [vmem:[%s6685_s13 + $0x78] sm:$0xff]   ;;  %s8342_s22 = scalar_lea.vmem [#allocation3], %s5270_s21  ;;  %s6511_s9 = scalar_lea.vmem %s6510_s8, 8192 }
  0x1d   : > { %6099 = vmatprep.mubr.msk.bf16.mxu1 %vm432_vm1, %v6458_v5  ;;  %6084 = vmatmul.mubr.msk.bf16.vlgmr.msra.gmra.mxu0 %vm432_vm1, %v6459_v6  ;;  %v6463_v14 = vld [vmem:[%s6685_s13 + $0x24] sm:$0xff]   ;;  %v6465_v16 = vld [vmem:[%s6685_s13 + $0x30] sm:$0xff]   ;;  %v6467_v19 = vld [vmem:[%s6685_s13 + $0x3c] sm:$0xff]   ;;  %s5157_s26 = sshll.u32 %s8342_s22, 4  ;;  %s8511_s26 = int_to_ptr.vmem [resolvable:$true] %s5157_s26 }
  0x1e   : > { %6100 = vmatmul.mubr.msk.bf16.vlgmr.msra.gmra.mxu1 %vm432_vm1, %v6460_v9  ;;  %6150 = vmatpush3.bf16.msra.mxu0 %v1621_v7  ;;  %v6464_v15 = vld [vmem:[%s6685_s13 + $0x84] sm:$0xff]   ;;  %v6466_v17 = vld [vmem:[%s6685_s13 + $0x90] sm:$0xff]   ;;  %v710_v20 = vld [vmem:[%s6685_s13] sm:$0xe]  ;;  %s6505_s6 = scalar_lea.vmem %s8511_s26, 4096  ;;  %p6512_p1 = scmp.lt.s32.totalorder %s8511_s26, %s6510_s8 }
  0x1f   : > { %6116 = vmatpush3.bf16.msra.mxu1 %v1052_v10  ;;  %6087 = vmatprep.mubr.msk.bf16.mxu0 %vm432_vm1, %v6461_v12  ;;  %v711_v21 = vld [vmem:[%s6685_s13 + $0x4] sm:$0xf]  ;;  %v712_v22 = vld [vmem:[%s6685_s13 + $0x8] sm:$0x1]  ;;  %v6468_v23 = vld [vmem:[%s6685_s13 + $0x9c] sm:$0xff]   ;;  %v5304_v25 = vrot.slane %v710_v20, 9  ;;  %p6506_p12 = scmp.ne.s32.totalorder %s8511_s26, %s6505_s6  ;;  %p6513_p2 = scmp.lt.s32.totalorder %s6511_s9, %s6505_s6 }
  0x20   : > { %6103 = vmatprep.mubr.msk.bf16.mxu1 %vm432_vm1, %v6462_v13  ;;  %6393 = vmatprep.subr.msk.bf16.mxu1 %vm481_vm0, %v5434_v8  ;;  %v6469_v24 = vld [vmem:[%s6685_s13 + $0x48] sm:$0xff]   ;;  %v843_v26 = vrot.slane %v711_v21, 5  ;;  %v1279_v27 = vld [vmem:[%s6685_s13] sm:$0xc]  ;;  %v1280_v29 = vld [vmem:[%s6685_s13 + $0x4] sm:$0xf] }
  0x21   : > { %6394 = vmatprep.subr.msk.bf16.mxu0 %vm481_vm0, %v6701_v11  ;;  %v6470_v28 = vld [vmem:[%s6685_s13 + $0xa8] sm:$0xff]   ;;  %v5353_v31 = vrot.slane %v1279_v27, 10  ;;  %v846_v34 = vrot.slane %v712_v22, 5  ;;  %v1412_v35 = vrot.slane %v1280_v29, 6  ;;  %v714_v38 = vld [vmem:[%s6685_s13 + $0x10] sm:$0xf]  ;;  %p6507_p13 = pnand %p6506_p12, %p6651_p4  ;;  %p6514_p3 = por %p6513_p2, %p6512_p1 }
  0x22   : > { %v1281_v30 = vld [vmem:[%s6685_s13 + $0x8] sm:$0x3]  ;;  %v845_v33 = vrot.slane %v843_v26, 4  ;;  %v713_v37 = vld [vmem:[%s6685_s13 + $0xc] sm:$0xe]  ;;  %v844_v41 = vsel %vm6720_vm4, %v5304_v25, %v843_v26  ;;  %v850_v43 = vrot.slane %v714_v38, 5 }
  0x23   : > { %v1415_v36 = vrot.slane %v1281_v30, 6  ;;  %v715_v39 = vld [vmem:[%s6685_s13 + $0x14] sm:$0x1]  ;;  %v1414_v42 = vrot.slane %v1412_v35, 4  ;;  %v1282_v44 = vld [vmem:[%s6685_s13 + $0xc] sm:$0xc]  ;;  %v1413_v47 = vsel %vm6735_vm6, %v5353_v31, %v1412_v35  ;;  %p6508_p0 = pneg %p6507_p13 }
  0x24   : > { %v1283_v45 = vld [vmem:[%s6685_s13 + $0x10] sm:$0xf]  ;;  %v6471_v46 = vld [vmem:[%s6685_s13 + $0x54] sm:$0xff]   ;;  %v5305_v48 = vrot.slane %v713_v37, 9  ;;  %v853_v49 = vrot.slane %v715_v39, 5  ;;  %v847_v53 = vsel %vm6720_vm4, %v845_v33, %v846_v34  ;;  %v852_v55 = vrot.slane %v850_v43, 4 }
  0x25   : > { %6088 = vmatmul.mubr.msk.bf16.gmra.mxu0 %vm432_vm1, %v6463_v14  ;;  %v1284_v50 = vld [vmem:[%s6685_s13 + $0x14] sm:$0x3]  ;;  %v1419_v51 = vrot.slane %v1283_v45, 6  ;;  %v1416_v54 = vsel %vm6735_vm6, %v1414_v42, %v1415_v36  ;;  %v5354_v56 = vrot.slane %v1282_v44, 10  ;;  %v716_v57 = vld [vmem:[%s6685_s13 + $0x18] sm:$0xe]  ;;  %v5321_v4 = vcombine.low %v844_v41, %v847_v53  ;;  %p6515_p5 = pnand %p6514_p3, %p6508_p0 }
  0x26   : > { %6104 = vmatmul.mubr.msk.bf16.gmra.mxu1 %vm432_vm1, %v6464_v15  ;;  %6091 = vmatprep.mubr.msk.bf16.mxu0 %vm432_vm1, %v6465_v16  ;;  %v6472_v52 = vld [vmem:[%s6685_s13 + $0xb4] sm:$0xff]   ;;  %v717_v58 = vld [vmem:[%s6685_s13 + $0x1c] sm:$0xf]  ;;  %v1422_v60 = vrot.slane %v1284_v50, 6  ;;  %v718_v61 = vld [vmem:[%s6685_s13 + $0x20] sm:$0x1]  ;;  %v5370_v63 = vcombine.low %v1413_v47, %v1416_v54  ;;  %v6772_v9 = vsel %vm6720_vm4, %v5305_v48, %v850_v43  ;;  %v854_v15 = vsel %vm6720_vm4, %v852_v55, %v853_v49 }
  0x27   : > { %6107 = vmatprep.mubr.msk.bf16.mxu1 %vm432_vm1, %v6466_v17  ;;  %v1421_v59 = vrot.slane %v1419_v51, 4  ;;  %v1285_v62 = vld [vmem:[%s6685_s13 + $0x18] sm:$0xc]  ;;  %v5306_v0 = vrot.slane %v716_v57, 9  ;;  %v857_v1 = vrot.slane %v717_v58, 5  ;;  %v860_v12 = vrot.slane %v718_v61, 5 }
  0x28   : > { %v1286_v2 = vld [vmem:[%s6685_s13 + $0x1c] sm:$0xf]  ;;  %v1287_v3 = vld [vmem:[%s6685_s13 + $0x20] sm:$0x3]  ;;  %v5355_v5 = vrot.slane %v1285_v62, 10  ;;  %v1420_v16 = vsel %vm6735_vm6, %v5354_v56, %v1419_v51  ;;  %v2613_v27 = vsel %vm481_vm0, %v6701_v11, 0  ;;  %v5322_v38 = vcombine.low %v6772_v9, %v854_v15 }
  0x29   : > { %v1426_v6 = vrot.slane %v1286_v2, 6  ;;  %v719_v7 = vld [vmem:[%s6685_s13 + $0x24] sm:$0xe]  ;;  %v720_v8 = vld [vmem:[%s6685_s13 + $0x28] sm:$0xf]  ;;  %v859_v10 = vrot.slane %v857_v1, 4  ;;  %v1423_v22 = vsel %vm6735_vm6, %v1421_v59, %v1422_v60 }
  0x2a   : > { %v1429_v13 = vrot.slane %v1287_v3, 6  ;;  %v721_v14 = vld [vmem:[%s6685_s13 + $0x2c] sm:$0x1]  ;;  %v1288_v20 = vld [vmem:[%s6685_s13 + $0x24] sm:$0xc]  ;;  %v5371_v39 = vcombine.low %v1420_v16, %v1423_v22 }
  0x2b   : > { %v1428_v17 = vrot.slane %v1426_v6, 4  ;;  %v1289_v21 = vld [vmem:[%s6685_s13 + $0x28] sm:$0xf]  ;;  %v1290_v25 = vld [vmem:[%s6685_s13 + $0x2c] sm:$0x3]  ;;  %v1427_v29 = vsel %vm6735_vm6, %v5355_v5, %v1426_v6  ;;  %v861_v33 = vsel %vm6720_vm4, %v859_v10, %v860_v12  ;;  %v5356_v35 = vrot.slane %v1288_v20, 10 }
  0x2c   : > { %v1433_v26 = vrot.slane %v1289_v21, 6  ;;  %v723_v31 = vld [vmem:[%s6685_s13 + $0x34] sm:$0xf]  ;;  %v722_v11 = vld [vmem:[%s6685_s13 + $0x30] sm:$0xe]  ;;  %v1436_v41 = vrot.slane %v1290_v25, 6 }
  0x2d   : > { %6092 = vmatmul.mubr.msk.bf16.gmra.mxu0 %vm432_vm1, %v6467_v19  ;;  %v864_v19 = vrot.slane %v720_v8, 5  ;;  %v1430_v34 = vsel %vm6735_vm6, %v1428_v17, %v1429_v13  ;;  %v1291_v37 = vld [vmem:[%s6685_s13 + $0x30] sm:$0xc]  ;;  %v724_v42 = vld [vmem:[%s6685_s13 + $0x38] sm:$0x1]  ;;  %v871_v43 = vrot.slane %v723_v31, 5 }
  0x2e   : > { %6108 = vmatmul.mubr.msk.bf16.gmra.mxu1 %vm432_vm1, %v6468_v23  ;;  %6095 = vmatprep.mubr.msk.bf16.mxu0 %vm432_vm1, %v6469_v24  ;;  %v5307_v23 = vrot.slane %v719_v7, 9  ;;  %v867_v24 = vrot.slane %v721_v14, 5  ;;  %v1435_v36 = vrot.slane %v1433_v26, 4  ;;  %v1292_v44 = vld [vmem:[%s6685_s13 + $0x34] sm:$0xf]  ;;  %v5357_v48 = vrot.slane %v1291_v37, 10 }
  0x2f   : > { %6111 = vmatprep.mubr.msk.bf16.mxu1 %vm432_vm1, %v6470_v28  ;;  %v858_v28 = vsel %vm6720_vm4, %v5306_v0, %v857_v1  ;;  %v866_v30 = vrot.slane %v864_v19, 4  ;;  %v1293_v47 = vld [vmem:[%s6685_s13 + $0x38] sm:$0x3]  ;;  %v1440_v49 = vrot.slane %v1292_v44, 6  ;;  %v725_v50 = vld [vmem:[%s6685_s13 + $0x3c] sm:$0xe]  ;;  %v1434_v0 = vsel %vm6735_vm6, %v5356_v35, %v1433_v26 }
  0x30   : > { %v6806_v45 = vsel %vm6720_vm4, %v5307_v23, %v864_v19  ;;  %v5323_v51 = vcombine.low %v858_v28, %v861_v33  ;;  %v5308_v53 = vrot.slane %v722_v11, 9  ;;  %v1443_v54 = vrot.slane %v1293_v47, 6  ;;  %v726_v55 = vld [vmem:[%s6685_s13 + $0x40] sm:$0xf]  ;;  %v727_v56 = vld [vmem:[%s6685_s13 + $0x44] sm:$0x1] }
  0x31   : > { %v6819_v57 = vld [vmem:[%s8563_s1 + $0xa] sm:$0x3]  ;;  %v873_v58 = vrot.slane %v871_v43, 4  ;;  %v874_v59 = vrot.slane %v724_v42, 5  ;;  %v1442_v60 = vrot.slane %v1440_v49, 4  ;;  %v878_v61 = vrot.slane %v726_v55, 5 }
  0x32   : > { %v1294_v62 = vld [vmem:[%s6685_s13 + $0x3c] sm:$0xc]  ;;  %v1437_v1 = vsel %vm6735_vm6, %v1435_v36, %v1436_v41  ;;  %v1295_v2 = vld [vmem:[%s6685_s13 + $0x40] sm:$0xf]  ;;  %v1296_v3 = vld [vmem:[%s6685_s13 + $0x44] sm:$0x3]  ;;  %v1441_v5 = vsel %vm6735_vm6, %v5357_v48, %v1440_v49  ;;  %v872_v17 = vsel %vm6720_vm4, %v5308_v53, %v871_v43 }
  0x33   : > { %v1444_v6 = vsel %vm6735_vm6, %v1442_v60, %v1443_v54  ;;  %v5309_v7 = vrot.slane %v725_v50, 9  ;;  %v881_v8 = vrot.slane %v727_v56, 5  ;;  %v728_v9 = vld [vmem:[%s6685_s13 + $0x48] sm:$0xe]  ;;  %v729_v10 = vld [vmem:[%s6685_s13 + $0x4c] sm:$0xf]  ;;  %v875_v19 = vsel %vm6720_vm4, %v873_v58, %v874_v59 }
  0x34   : > { %v880_v12 = vrot.slane %v878_v61, 4  ;;  %v5358_v13 = vrot.slane %v1294_v62, 10  ;;  %v1447_v14 = vrot.slane %v1295_v2, 6  ;;  %v1450_v15 = vrot.slane %v1296_v3, 6  ;;  %v730_v16 = vld [vmem:[%s6685_s13 + $0x50] sm:$0x1] }
  0x35   : > { %6096 = vmatmul.mubr.msk.bf16.gmra.mxu0 %vm432_vm1, %v6471_v46  ;;  %v6810_v46 = vsel %vm6720_vm4, %v866_v30, %v867_v24  ;;  %v5310_v20 = vrot.slane %v728_v9, 9  ;;  %v1297_v21 = vld [vmem:[%s6685_s13 + $0x48] sm:$0xc]  ;;  %v1298_v22 = vld [vmem:[%s6685_s13 + $0x4c] sm:$0xf]  ;;  %v5373_v23 = vcombine.low %v1434_v0, %v1437_v1  ;;  %v5374_v24 = vcombine.low %v1441_v5, %v1444_v6 }
  0x36   : > { %6112 = vmatmul.mubr.msk.bf16.gmra.mxu1 %vm432_vm1, %v6472_v52  ;;  %6151 = vmatprep.mubr.msk.bf16.mxu0 %vm432_vm1, %v5370_v63  ;;  %v5372_v52 = vcombine.low %v1427_v29, %v1430_v34  ;;  %v5324_v63 = vcombine.low %v6806_v45, %v6810_v46  ;;  %v1449_v25 = vrot.slane %v1447_v14, 4  ;;  %v888_v26 = vrot.slane %v730_v16, 5  ;;  %v6857_v28 = vld [vmem:[%s6685_s13 + $0x54] sm:$0xe]  ;;  %v732_v34 = vld [vmem:[%s6685_s13 + $0x58] sm:$0xf] }
  0x37   : > { %6117 = vmatprep.mubr.msk.bf16.mxu1 %vm432_vm1, %v5321_v4  ;;  %v6834_v4 = vld [vmem:[%s8563_s1 + $0xc] sm:$0x3]  ;;  %v5359_v30 = vrot.slane %v1297_v21, 10  ;;  %v1454_v31 = vrot.slane %v1298_v22, 6  ;;  %v5325_v35 = vcombine.low %v872_v17, %v875_v19  ;;  %v879_v36 = vsel %vm6720_vm4, %v5309_v7, %v878_v61  ;;  %v1300_v11 = vld [vmem:[%s6685_s13 + $0x54] sm:$0xc] }
  0x38   : > { %v882_v37 = vsel %vm6720_vm4, %v880_v12, %v881_v8  ;;  %v892_v41 = vrot.slane %v732_v34, 5  ;;  %v1301_v42 = vld [vmem:[%s6685_s13 + $0x58] sm:$0xf]  ;;  %v1302_v43 = vld [vmem:[%s6685_s13 + $0x5c] sm:$0x3]  ;;  %v1451_v44 = vsel %vm6735_vm6, %v1449_v25, %v1450_v15  ;;  %v5311_v48 = vrot.slane %v6857_v28, 9 }
  0x39   : > { %v733_v47 = vld [vmem:[%s6685_s13 + $0x5c] sm:$0x1]  ;;  %v735_v49 = vld [vmem:[%s6685_s13 + $0x64] sm:$0xf]  ;;  %v1455_v50 = vsel %vm6735_vm6, %v5359_v30, %v1454_v31  ;;  %v1461_v53 = vrot.slane %v1301_v42, 6  ;;  %v5326_v56 = vcombine.low %v879_v36, %v882_v37  ;;  %v1464_v58 = vrot.slane %v1302_v43, 6 }
  0x3a   : > { %v734_v54 = vld [vmem:[%s6685_s13 + $0x60] sm:$0xe]  ;;  %v736_v55 = vld [vmem:[%s6685_s13 + $0x68] sm:$0x1]  ;;  %v899_v59 = vrot.slane %v735_v49, 5  ;;  %v894_v0 = vrot.slane %v892_v41, 4 }
  0x3b   : > { %v1303_v60 = vld [vmem:[%s6685_s13 + $0x60] sm:$0xc]  ;;  %v1304_v61 = vld [vmem:[%s6685_s13 + $0x64] sm:$0xf]  ;;  %v1463_v1 = vrot.slane %v1461_v53, 4  ;;  %v895_v5 = vrot.slane %v733_v47, 5 }
  0x3c   : > { %v1305_v2 = vld [vmem:[%s6685_s13 + $0x68] sm:$0x3]  ;;  %v5312_v6 = vrot.slane %v734_v54, 9  ;;  %v1468_v7 = vrot.slane %v1304_v61, 6  ;;  %v738_v8 = vld [vmem:[%s6685_s13 + $0x70] sm:$0xf] }
  0x3d   : > { %6152 = vmatmul.mubr.msk.bf16.vlgmr.msra.gmra.mxu0 %vm432_vm1, %v5371_v39  ;;  %v1456_v39 = vrot.slane %v1454_v31, 4  ;;  %v902_v12 = vrot.slane %v736_v55, 5  ;;  %v1465_v15 = vsel %vm6735_vm6, %v1463_v1, %v1464_v58  ;;  %v1471_v17 = vrot.slane %v1305_v2, 6  ;;  %v1306_v21 = vld [vmem:[%s6685_s13 + $0x6c] sm:$0xc] }
  0x3e   : > { %6118 = vmatmul.mubr.msk.bf16.vlgmr.msra.gmra.mxu1 %vm432_vm1, %v5322_v38  ;;  %6218 = vmatpush3.bf16.msra.mxu0 %v2613_v27  ;;  %v1299_v27 = vld [vmem:[%s6685_s13 + $0x50] sm:$0x3]  ;;  %v1448_v38 = vsel %vm6735_vm6, %v5358_v13, %v1447_v14  ;;  %v5361_v13 = vrot.slane %v1303_v60, 10  ;;  %v737_v14 = vld [vmem:[%s6685_s13 + $0x6c] sm:$0xe]  ;;  %v1470_v16 = vrot.slane %v1468_v7, 4  ;;  %v900_v25 = vsel %vm6720_vm4, %v5312_v6, %v899_v59 }
  0x3f   : > { %6184 = vmatpush3.bf16.msra.mxu1 %v6744_v40  ;;  %6121 = vmatprep.mubr.msk.bf16.mxu1 %vm432_vm1, %v5323_v51  ;;  %v885_v40 = vrot.slane %v729_v10, 5  ;;  %v1457_v33 = vrot.slane %v1299_v27, 6  ;;  %v5375_v62 = vcombine.low %v1448_v38, %v1451_v44  ;;  %v901_v10 = vrot.slane %v899_v59, 4  ;;  %v1308_v22 = vld [vmem:[%s6685_s13 + $0x74] sm:$0x3] }
  0x40   : > { %6155 = vmatprep.mubr.msk.bf16.mxu0 %vm432_vm1, %v5372_v52  ;;  %6395 = vmatprep.subr.msk.bf16.mxu1 %vm481_vm0, %v6819_v57  ;;  %v5360_v52 = vrot.slane %v1300_v11, 10  ;;  %v906_v19 = vrot.slane %v738_v8, 5  ;;  %v740_v27 = vld [vmem:[%s6685_s13 + $0x78] sm:$0xe]  ;;  %v741_v28 = vld [vmem:[%s6685_s13 + $0x7c] sm:$0xf]  ;;  %v1469_v36 = vsel %vm6735_vm6, %v5361_v13, %v1468_v7  ;;  %v1472_v11 = vsel %vm6735_vm6, %v1470_v16, %v1471_v17 }
  0x41   : > { %6396 = vmatprep.subr.msk.bf16.mxu0 %vm481_vm0, %v6834_v4  ;;  %v887_v29 = vrot.slane %v885_v40, 4  ;;  %v886_v45 = vsel %vm6720_vm4, %v5310_v20, %v885_v40  ;;  %v1458_v51 = vsel %vm6735_vm6, %v1456_v39, %v1457_v33  ;;  %v1307_v20 = vld [vmem:[%s6685_s13 + $0x70] sm:$0xf]  ;;  %v739_v40 = vld [vmem:[%s6685_s13 + $0x74] sm:$0x1]  ;;  %v903_v30 = vsel %vm6720_vm4, %v901_v10, %v902_v12 }
  0x42   : > { %v5376_v3 = vcombine.low %v1455_v50, %v1458_v51  ;;  %v1462_v9 = vsel %vm6735_vm6, %v5360_v52, %v1461_v53  ;;  %v5313_v31 = vrot.slane %v737_v14, 9  ;;  %v742_v33 = vld [vmem:[%s6685_s13 + $0x80] sm:$0x1]  ;;  %v913_v34 = vrot.slane %v741_v28, 5  ;;  %v1310_v39 = vld [vmem:[%s6685_s13 + $0x7c] sm:$0xf] }
  0x43   : > { %v889_v46 = vsel %vm6720_vm4, %v887_v29, %v888_v26  ;;  %v1475_v26 = vrot.slane %v1307_v20, 6  ;;  %v5377_v29 = vcombine.low %v1462_v9, %v1465_v15  ;;  %v908_v37 = vrot.slane %v906_v19, 4  ;;  %v744_v50 = vld [vmem:[%s6685_s13 + $0x88] sm:$0xf]  ;;  %v1312_v55 = vld [vmem:[%s6685_s13 + $0x84] sm:$0xc] }
  0x44   : > { %v909_v38 = vrot.slane %v739_v40, 5  ;;  %v5362_v42 = vrot.slane %v1306_v21, 10  ;;  %v1478_v43 = vrot.slane %v1308_v22, 6  ;;  %v5314_v44 = vrot.slane %v740_v27, 9  ;;  %v746_v12 = vld [vmem:[%s6685_s13 + $0x90] sm:$0xe] }
  0x45   : > { %6156 = vmatmul.mubr.msk.bf16.gmra.mxu0 %vm432_vm1, %v5373_v23  ;;  %v893_v23 = vsel %vm6720_vm4, %v5311_v48, %v892_v41  ;;  %v1311_v41 = vld [vmem:[%s6685_s13 + $0x80] sm:$0x3]  ;;  %v915_v47 = vrot.slane %v913_v34, 4  ;;  %v916_v48 = vrot.slane %v742_v33, 5  ;;  %v5378_v52 = vcombine.low %v1469_v36, %v1472_v11  ;;  %v748_v13 = vld [vmem:[%s6685_s13 + $0x98] sm:$0x1] }
  0x46   : > { %6122 = vmatmul.mubr.msk.bf16.gmra.mxu1 %vm432_vm1, %v5324_v63  ;;  %6159 = vmatprep.mubr.msk.bf16.mxu0 %vm432_vm1, %v5374_v24  ;;  %v5327_v63 = vcombine.low %v886_v45, %v889_v46  ;;  %v896_v24 = vsel %vm6720_vm4, %v894_v0, %v895_v5  ;;  %v1482_v45 = vrot.slane %v1310_v39, 6  ;;  %v1477_v46 = vrot.slane %v1475_v26, 4  ;;  %v747_v0 = vld [vmem:[%s6685_s13 + $0x94] sm:$0xf]  ;;  %v745_v5 = vld [vmem:[%s6685_s13 + $0x8c] sm:$0x1] }
  0x47   : > { %6125 = vmatprep.mubr.msk.bf16.mxu1 %vm432_vm1, %v5325_v35  ;;  %v1309_v35 = vld [vmem:[%s6685_s13 + $0x78] sm:$0xc]  ;;  %v5328_v51 = vcombine.low %v893_v23, %v896_v24  ;;  %v1485_v54 = vrot.slane %v1311_v41, 6  ;;  %v5329_v58 = vcombine.low %v900_v25, %v903_v30  ;;  %v907_v59 = vsel %vm6720_vm4, %v5313_v31, %v906_v19  ;;  %v1316_v14 = vld [vmem:[%s6685_s13 + $0x94] sm:$0xf] }
  0x48   : > { %v5363_v49 = vrot.slane %v1309_v35, 10  ;;  %v1484_v53 = vrot.slane %v1482_v45, 4  ;;  %v910_v60 = vsel %vm6720_vm4, %v908_v37, %v909_v38  ;;  %v1476_v61 = vsel %vm6735_vm6, %v5362_v42, %v1475_v26  ;;  %v1315_v19 = vld [vmem:[%s6685_s13 + $0x90] sm:$0xc]  ;;  %v1317_v23 = vld [vmem:[%s6685_s13 + $0x98] sm:$0x3] }
  0x49   : > { %v1479_v1 = vsel %vm6735_vm6, %v1477_v46, %v1478_v43  ;;  %v914_v2 = vsel %vm6720_vm4, %v5314_v44, %v913_v34  ;;  %v920_v6 = vrot.slane %v744_v50, 5  ;;  %v5364_v7 = vrot.slane %v1312_v55, 10  ;;  %v6958_v28 = vld [vmem:[%s6685_s13 + $0xa0] sm:$0xf]  ;;  %v749_v38 = vld [vmem:[%s6685_s13 + $0x9c] sm:$0xe] }
  0x4a   : > { %v917_v8 = vsel %vm6720_vm4, %v915_v47, %v916_v48  ;;  %v1483_v9 = vsel %vm6735_vm6, %v5363_v49, %v1482_v45  ;;  %v1486_v10 = vsel %vm6735_vm6, %v1484_v53, %v1485_v54  ;;  %v927_v17 = vrot.slane %v747_v0, 5  ;;  %v1319_v34 = vld [vmem:[%s6685_s13 + $0xa0] sm:$0xf]  ;;  %v753_v39 = vld [vmem:[%s6685_s13 + $0xac] sm:$0xf] }
  0x4b   : > { %v1496_v20 = vrot.slane %v1316_v14, 6  ;;  %v5330_v40 = vcombine.low %v907_v59, %v910_v60  ;;  %v5379_v21 = vcombine.low %v1476_v61, %v1479_v1  ;;  %v5331_v24 = vcombine.low %v914_v2, %v917_v8  ;;  %v751_v41 = vld [vmem:[%s6685_s13 + $0xa4] sm:$0x1]  ;;  %v1318_v43 = vld [vmem:[%s6685_s13 + $0x9c] sm:$0xc] }
  0x4c   : > { %v5380_v25 = vcombine.low %v1483_v9, %v1486_v10  ;;  %v922_v26 = vrot.slane %v920_v6, 4  ;;  %v923_v27 = vrot.slane %v745_v5, 5  ;;  %v5316_v30 = vrot.slane %v746_v12, 9  ;;  %v1320_v45 = vld [vmem:[%s6685_s13 + $0xa4] sm:$0x3] }
  0x4d   : > { %6160 = vmatmul.mubr.msk.bf16.gmra.mxu0 %vm432_vm1, %v5375_v62  ;;  %v1314_v62 = vld [vmem:[%s6685_s13 + $0x8c] sm:$0x3]  ;;  %v930_v31 = vrot.slane %v748_v13, 5  ;;  %v5365_v33 = vrot.slane %v1315_v19, 10  ;;  %v929_v36 = vrot.slane %v927_v17, 4  ;;  %v1498_v11 = vrot.slane %v1496_v20, 4 }
  0x4e   : > { %6126 = vmatmul.mubr.msk.bf16.gmra.mxu1 %vm432_vm1, %v5326_v56  ;;  %6163 = vmatprep.mubr.msk.bf16.mxu0 %vm432_vm1, %v5376_v3  ;;  %v1313_v56 = vld [vmem:[%s6685_s13 + $0x88] sm:$0xf]  ;;  %v743_v3 = vld [vmem:[%s6685_s13 + $0x84] sm:$0xe]  ;;  %v1492_v16 = vrot.slane %v1314_v62, 6  ;;  %v1499_v37 = vrot.slane %v1317_v23, 6  ;;  %v924_v48 = vsel %vm6720_vm4, %v922_v26, %v923_v27  ;;  %v928_v50 = vsel %vm6720_vm4, %v5316_v30, %v927_v17 }
  0x4f   : > { %6129 = vmatprep.mubr.msk.bf16.mxu1 %vm432_vm1, %v5327_v63  ;;  %v1489_v63 = vrot.slane %v1313_v56, 6  ;;  %v5315_v22 = vrot.slane %v743_v3, 9  ;;  %v934_v42 = vrot.slane %v6958_v28, 5  ;;  %v1503_v46 = vrot.slane %v1319_v34, 6  ;;  %v1322_v47 = vld [vmem:[%s6685_s13 + $0xac] sm:$0xf] }
  0x50   : > { %v941_v53 = vrot.slane %v753_v39, 5  ;;  %v931_v54 = vsel %vm6720_vm4, %v929_v36, %v930_v31  ;;  %v1497_v55 = vsel %vm6735_vm6, %v5365_v33, %v1496_v20  ;;  %v1500_v56 = vsel %vm6735_vm6, %v1498_v11, %v1499_v37  ;;  %v1323_v0 = vld [vmem:[%s6685_s13 + $0xb0] sm:$0x3]  ;;  %v756_v10 = vld [vmem:[%s6685_s13 + $0xb8] sm:$0xf] }
  0x51   : > { %v1491_v15 = vrot.slane %v1489_v63, 4  ;;  %v921_v44 = vsel %vm6720_vm4, %v5315_v22, %v920_v6  ;;  %v1510_v59 = vrot.slane %v1322_v47, 6  ;;  %v5317_v60 = vrot.slane %v749_v38, 9  ;;  %v757_v17 = vld [vmem:[%s6685_s13 + $0xbc] sm:$0x1] }
  0x52   : > { %v936_v61 = vrot.slane %v934_v42, 4  ;;  %v937_v62 = vrot.slane %v751_v41, 5  ;;  %v1505_v1 = vrot.slane %v1503_v46, 4  ;;  %v1506_v2 = vrot.slane %v1320_v45, 6  ;;  %v5468_v19 = vld [vmem:[%s6685_s13 + $0x1c] sm:$0xf] }
  0x53   : > { %v1493_v35 = vsel %vm6735_vm6, %v1491_v15, %v1492_v16  ;;  %v5332_v6 = vcombine.low %v921_v44, %v924_v48  ;;  %v943_v8 = vrot.slane %v941_v53, 4  ;;  %v5333_v12 = vcombine.low %v928_v50, %v931_v54  ;;  %v1325_v15 = vld [vmem:[%s6685_s13 + $0xb8] sm:$0xf]  ;;  %v755_v16 = vld [vmem:[%s6685_s13 + $0xb4] sm:$0xe] }
  0x54   : > { %v1512_v13 = vrot.slane %v1510_v59, 4  ;;  %v1513_v14 = vrot.slane %v1323_v0, 6  ;;  %v935_v22 = vsel %vm6720_vm4, %v5317_v60, %v934_v42  ;;  %v1324_v23 = vld [vmem:[%s6685_s13 + $0xb4] sm:$0xc]  ;;  %v938_v26 = vsel %vm6720_vm4, %v936_v61, %v937_v62  ;;  %v5467_v34 = vld [vmem:[%s6685_s13 + $0x18] sm:$0xe] }
  0x55   : > { %6164 = vmatmul.mubr.msk.bf16.gmra.mxu0 %vm432_vm1, %v5377_v29  ;;  %v1490_v29 = vsel %vm6735_vm6, %v5364_v7, %v1489_v63  ;;  %v5366_v63 = vrot.slane %v1318_v43, 10  ;;  %v5382_v7 = vcombine.low %v1497_v55, %v1500_v56  ;;  %v5319_v36 = vrot.slane %v755_v16, 9  ;;  %v5471_v44 = vld [vmem:[%s6685_s13 + $0x28] sm:$0xf]  ;;  %v5474_v54 = vld [vmem:[%s6685_s13 + $0x34] sm:$0xf] }
  0x56   : > { %6130 = vmatmul.mubr.msk.bf16.gmra.mxu1 %vm432_vm1, %v5328_v51  ;;  %6167 = vmatprep.mubr.msk.bf16.mxu0 %vm432_vm1, %v5378_v52  ;;  %v5381_v49 = vcombine.low %v1490_v29, %v1493_v35  ;;  %v752_v51 = vld [vmem:[%s6685_s13 + $0xa8] sm:$0xe]  ;;  %v754_v52 = vld [vmem:[%s6685_s13 + $0xb0] sm:$0x1]  ;;  %v1514_v28 = vsel %vm6735_vm6, %v1512_v13, %v1513_v14  ;;  %v2404_v29 = vrot.slane %v5468_v19, 5  ;;  %v951_v37 = vrot.slane %v757_v17, 5 }
  0x57   : > { %6133 = vmatprep.mubr.msk.bf16.mxu1 %vm432_vm1, %v5329_v58  ;;  %v1321_v58 = vld [vmem:[%s6685_s13 + $0xa8] sm:$0xc]  ;;  %v5318_v3 = vrot.slane %v752_v51, 9  ;;  %v944_v5 = vrot.slane %v754_v52, 5  ;;  %v1504_v20 = vsel %vm6735_vm6, %v5366_v63, %v1503_v46  ;;  %v5469_v35 = vld [vmem:[%s6685_s13 + $0x20] sm:$0x1]  ;;  %v5334_v39 = vcombine.low %v935_v22, %v938_v26 }
  0x58   : > { %v5367_v9 = vrot.slane %v1321_v58, 10  ;;  %v5368_v38 = vrot.slane %v1324_v23, 10  ;;  %v5515_v46 = vrot.slane %v5467_v34, 9  ;;  %v2406_v47 = vrot.slane %v2404_v29, 4  ;;  %v5470_v58 = vld [vmem:[%s6685_s13 + $0x24] sm:$0xe] }
  0x59   : > { %v942_v31 = vsel %vm6720_vm4, %v5318_v3, %v941_v53  ;;  %v945_v33 = vsel %vm6720_vm4, %v943_v8, %v944_v5  ;;  %v2407_v48 = vrot.slane %v5469_v35, 5  ;;  %v2411_v50 = vrot.slane %v5471_v44, 5  ;;  %v5473_v62 = vld [vmem:[%s6685_s13 + $0x30] sm:$0xe]  ;;  %v6473_v0 = vld [vmem:[%s6685_s13 + $0x18] sm:$0xff]   ;;  %v6474_v23 = vld [vmem:[%s6685_s13 + $0x24] sm:$0xff]  }
  0x5a   : > { %v1511_v27 = vsel %vm6735_vm6, %v5367_v9, %v1510_v59  ;;  %v5335_v45 = vcombine.low %v942_v31, %v945_v33  ;;  %v2405_v55 = vsel %vm6720_vm4, %v5515_v46, %v2404_v29  ;;  %v5472_v59 = vld [vmem:[%s6685_s13 + $0x2c] sm:$0x1]  ;;  %v2418_v63 = vrot.slane %v5474_v54, 5  ;;  %v5476_v16 = vld [vmem:[%s6685_s13 + $0x3c] sm:$0xe] }
  0x5b   : > { %v5384_v41 = vcombine.low %v1511_v27, %v1514_v28  ;;  %v2408_v56 = vsel %vm6720_vm4, %v2406_v47, %v2407_v48  ;;  %v2413_v3 = vrot.slane %v2411_v50, 4  ;;  %v2414_v5 = vrot.slane %v5472_v59, 5  ;;  %v5480_v9 = vld [vmem:[%s6685_s13 + $0x4c] sm:$0xf]  ;;  %v5481_v22 = vld [vmem:[%s6685_s13 + $0x50] sm:$0x1] }
  0x5c   : > { %v5517_v8 = vrot.slane %v5473_v62, 9  ;;  %v3605_v19 = vsel %vm481_vm0, %v6834_v4, 0  ;;  %v5518_v26 = vrot.slane %v5476_v16, 9  ;;  %v6475_v4 = vld [vmem:[%s6685_s13 + $0x30] sm:$0xff]   ;;  %v2435_v31 = vrot.slane %v5481_v22, 5  ;;  %v6476_v46 = vld [vmem:[%s6685_s13 + $0x3c] sm:$0xff]  }
  0x5d   : > { %6168 = vmatmul.mubr.msk.bf16.gmra.mxu0 %vm432_vm1, %v5379_v21  ;;  %v948_v21 = vrot.slane %v756_v10, 5  ;;  %v2420_v10 = vrot.slane %v2418_v63, 4  ;;  %v2415_v14 = vsel %vm6720_vm4, %v2413_v3, %v2414_v5  ;;  %v5483_v33 = vld [vmem:[%s6685_s13 + $0x58] sm:$0xf]  ;;  %v5486_v35 = vld [vmem:[%s6685_s13 + $0x64] sm:$0xf] }
  0x5e   : > { %6134 = vmatmul.mubr.msk.bf16.gmra.mxu1 %vm432_vm1, %v5330_v40  ;;  %6171 = vmatprep.mubr.msk.bf16.mxu0 %vm432_vm1, %v5380_v25  ;;  %v1507_v40 = vsel %vm6735_vm6, %v1505_v1, %v1506_v2  ;;  %v1517_v25 = vrot.slane %v1325_v15, 6  ;;  %v5532_v1 = vcombine.low %v2405_v55, %v2408_v56  ;;  %v5516_v2 = vrot.slane %v5470_v58, 9  ;;  %v5489_v54 = vld [vmem:[%s6685_s13 + $0x70] sm:$0xf]  ;;  %v5492_v58 = vld [vmem:[%s6685_s13 + $0x7c] sm:$0xf] }
  0x5f   : > { %6137 = vmatprep.mubr.msk.bf16.mxu1 %vm432_vm1, %v5331_v24  ;;  %v1326_v24 = vld [vmem:[%s6685_s13 + $0xbc] sm:$0x3]  ;;  %v5383_v30 = vcombine.low %v1504_v20, %v1507_v40  ;;  %v950_v11 = vrot.slane %v948_v21, 4  ;;  %v3179_v15 = vsel %vm481_vm0, %v6819_v57, 0  ;;  %v5478_v20 = vld [vmem:[%s6685_s13 + $0x44] sm:$0x1]  ;;  %v2419_v57 = vsel %vm6720_vm4, %v5517_v8, %v2418_v63 }
  0x60   : > { %v1519_v42 = vrot.slane %v1517_v25, 4  ;;  %v1520_v43 = vrot.slane %v1326_v24, 6  ;;  %v1518_v52 = vsel %vm6735_vm6, %v5368_v38, %v1517_v25  ;;  %v2412_v13 = vsel %vm6720_vm4, %v5516_v2, %v2411_v50  ;;  %v5484_v38 = vld [vmem:[%s6685_s13 + $0x5c] sm:$0x1]  ;;  %v5491_v3 = vld [vmem:[%s6685_s13 + $0x78] sm:$0xe] }
  0x61   : > { %v952_v51 = vsel %vm6720_vm4, %v950_v11, %v951_v37  ;;  %v2432_v40 = vrot.slane %v5480_v9, 5  ;;  %v5533_v24 = vcombine.low %v2412_v13, %v2415_v14  ;;  %v2428_v28 = vrot.slane %v5478_v20, 5  ;;  %v5493_v5 = vld [vmem:[%s6685_s13 + $0x80] sm:$0x1]  ;;  %v7110_v13 = vld [vmem:[%s8563_s1 + $0xe] sm:$0x3] }
  0x62   : > { %v1521_v53 = vsel %vm6735_vm6, %v1519_v42, %v1520_v43  ;;  %v5485_v43 = vld [vmem:[%s6685_s13 + $0x60] sm:$0xe]  ;;  %v2446_v44 = vrot.slane %v5486_v35, 5  ;;  %v2453_v62 = vrot.slane %v5489_v54, 5  ;;  %v2460_v2 = vrot.slane %v5492_v58, 5 }
  0x63   : > { %v5385_v61 = vcombine.low %v1518_v52, %v1521_v53  ;;  %v2442_v52 = vrot.slane %v5484_v38, 5  ;;  %v5521_v53 = vrot.slane %v5485_v43, 9  ;;  %v6479_v14 = vld [vmem:[%s6685_s13 + $0x60] sm:$0xff]   ;;  %v5498_v20 = vld [vmem:[%s6685_s13 + $0x94] sm:$0xf] }
  0x64   : > { %v2448_v55 = vrot.slane %v2446_v44, 4  ;;  %v2462_v16 = vrot.slane %v2460_v2, 4 }
  0x65   : > { %6172 = vmatmul.mubr.msk.bf16.gmra.mxu0 %vm432_vm1, %v5381_v49  ;;  %v949_v49 = vsel %vm6720_vm4, %v5319_v36, %v948_v21  ;;  %v5479_v21 = vld [vmem:[%s6685_s13 + $0x48] sm:$0xe]  ;;  %v5482_v36 = vld [vmem:[%s6685_s13 + $0x54] sm:$0xe]  ;;  %v2447_v63 = vsel %vm6720_vm4, %v5521_v53, %v2446_v44 }
  0x66   : > { %6138 = vmatmul.mubr.msk.bf16.gmra.mxu1 %vm432_vm1, %v5332_v6  ;;  %6175 = vmatprep.mubr.msk.bf16.mxu0 %vm432_vm1, %v5382_v7  ;;  %v5336_v60 = vcombine.low %v949_v49, %v952_v51  ;;  %v5475_v6 = vld [vmem:[%s6685_s13 + $0x38] sm:$0x1]  ;;  %v5477_v7 = vld [vmem:[%s6685_s13 + $0x40] sm:$0xf]  ;;  %v5519_v29 = vrot.slane %v5479_v21, 9  ;;  %v5520_v48 = vrot.slane %v5482_v36, 9 }
  0x67   : > { %6141 = vmatprep.mubr.msk.bf16.mxu1 %vm432_vm1, %v5333_v12  ;;  %v2421_v12 = vrot.slane %v5475_v6, 5  ;;  %v2425_v17 = vrot.slane %v5477_v7, 5  ;;  %v6477_v49 = vld [vmem:[%s6685_s13 + $0x48] sm:$0xff]   ;;  %v6478_v6 = vld [vmem:[%s6685_s13 + $0x54] sm:$0xff]  }
  0x68   : > { %v6481_v36 = vld [vmem:[%s6685_s13 + $0x78] sm:$0xff]  }
  0x69   : > { %v2422_v25 = vsel %vm6720_vm4, %v2420_v10, %v2421_v12  ;;  %v2427_v27 = vrot.slane %v2425_v17, 4  ;;  %v2426_v11 = vsel %vm6720_vm4, %v5518_v26, %v2425_v17  ;;  %v2455_v10 = vrot.slane %v2453_v62, 4  ;;  %v5496_v26 = vld [vmem:[%s6685_s13 + $0x8c] sm:$0x1] }
  0x6a   : > { %v5534_v34 = vcombine.low %v2419_v57, %v2422_v25  ;;  %v2463_v17 = vrot.slane %v5493_v5, 5  ;;  %v2470_v35 = vrot.slane %v5496_v26, 5 }
  0x6b   : > { %v2429_v37 = vsel %vm6720_vm4, %v2427_v27, %v2428_v28  ;;  %v2474_v27 = vrot.slane %v5498_v20, 5  ;;  %v5497_v28 = vld [vmem:[%s6685_s13 + $0x90] sm:$0xe] }
  0x6c   : > { %v5535_v47 = vcombine.low %v2426_v11, %v2429_v37  ;;  %v2464_v25 = vsel %vm6720_vm4, %v2462_v16, %v2463_v17  ;;  %v5525_v11 = vrot.slane %v5497_v28, 9  ;;  %v5512_v28 = vld [vmem:[%s6685_s13 + $0xcc] sm:$0xe] }
  0x6d   : > { %6176 = vmatmul.mubr.msk.bf16.gmra.mxu0 %vm432_vm1, %v5383_v30  ;;  %v2434_v30 = vrot.slane %v2432_v40, 4  ;;  %v2476_v37 = vrot.slane %v2474_v27, 4 }
  0x6e   : > { %6142 = vmatmul.mubr.msk.bf16.gmra.mxu1 %vm432_vm1, %v5334_v39  ;;  %6179 = vmatprep.mubr.msk.bf16.mxu0 %vm432_vm1, %v5384_v41  ;;  %v2439_v39 = vrot.slane %v5483_v33, 5  ;;  %v2433_v41 = vsel %vm6720_vm4, %v5519_v29, %v2432_v40  ;;  %v7121_v40 = vld [vmem:[%s8563_s1 + $0x10] sm:$0x3] }
  0x6f   : > { %6145 = vmatprep.mubr.msk.bf16.mxu1 %vm432_vm1, %v5335_v45  ;;  %v2436_v42 = vsel %vm6720_vm4, %v2434_v30, %v2435_v31  ;;  %v5487_v45 = vld [vmem:[%s6685_s13 + $0x68] sm:$0x1]  ;;  %v6480_v29 = vld [vmem:[%s6685_s13 + $0x6c] sm:$0xff]  }
  0x70   : > { %v5536_v50 = vcombine.low %v2433_v41, %v2436_v42  ;;  %v2441_v51 = vrot.slane %v2439_v39, 4  ;;  %v2449_v56 = vrot.slane %v5487_v45, 5  ;;  %v2440_v59 = vsel %vm6720_vm4, %v5520_v48, %v2439_v39  ;;  %v5501_v39 = vld [vmem:[%s6685_s13 + $0xa0] sm:$0xf]  ;;  %v5504_v41 = vld [vmem:[%s6685_s13 + $0xac] sm:$0xf] }
  0x71   : > { %v5500_v42 = vld [vmem:[%s6685_s13 + $0x9c] sm:$0xe]  ;;  %v5502_v45 = vld [vmem:[%s6685_s13 + $0xa4] sm:$0x1] }
  0x72   : > { %v5526_v54 = vrot.slane %v5500_v42, 9  ;;  %v6487_v42 = vld [vmem:[%s6685_s13 + $0xc0] sm:$0xff]  }
  0x75   : > { %6180 = vmatmul.mubr.msk.bf16.gmra.mxu0 %vm432_vm1, %v5385_v61  ;;  %v5488_v61 = vld [vmem:[%s6685_s13 + $0x6c] sm:$0xe] }
  0x76   : > { %6146 = vmatmul.mubr.msk.bf16.gmra.mxu1 %vm432_vm1, %v5336_v60  ;;  %6219 = vmatprep.mubr.msk.bf16.mxu0 %vm432_vm1, %v5532_v1  ;;  %v2443_v60 = vsel %vm6720_vm4, %v2441_v51, %v2442_v52  ;;  %v5490_v1 = vld [vmem:[%s6685_s13 + $0x74] sm:$0x1]  ;;  %v5522_v8 = vrot.slane %v5488_v61, 9  ;;  %v5505_v51 = vld [vmem:[%s6685_s13 + $0xb0] sm:$0x1]  ;;  %v6482_v52 = vld [vmem:[%s6685_s13 + $0x84] sm:$0xff]  }
  0x77   : > { %6185 = vmatprep.mubr.msk.bf16.mxu1 %vm432_vm1, %v6473_v0  ;;  %v2450_v0 = vsel %vm6720_vm4, %v2448_v55, %v2449_v56  ;;  %v5537_v7 = vcombine.low %v2440_v59, %v2443_v60  ;;  %v2456_v12 = vrot.slane %v5490_v1, 5  ;;  %v6483_v55 = vld [vmem:[%s6685_s13 + $0x90] sm:$0xff]   ;;  %v2484_v59 = vrot.slane %v5502_v45, 5  ;;  %v5507_v61 = vld [vmem:[%s6685_s13 + $0xb8] sm:$0xf] }
  0x78   : > { %v5538_v9 = vcombine.low %v2447_v63, %v2450_v0  ;;  %v2454_v21 = vsel %vm6720_vm4, %v5522_v8, %v2453_v62  ;;  %v2491_v63 = vrot.slane %v5505_v51, 5  ;;  %v5510_v0 = vld [vmem:[%s6685_s13 + $0xc4] sm:$0xf]  ;;  %v2495_v5 = vrot.slane %v5507_v61, 5  ;;  %v5508_v8 = vld [vmem:[%s6685_s13 + $0xbc] sm:$0x1] }
  0x79   : > { %v2457_v22 = vsel %vm6720_vm4, %v2455_v10, %v2456_v12  ;;  %v2502_v10 = vrot.slane %v5510_v0, 5  ;;  %v5511_v12 = vld [vmem:[%s6685_s13 + $0xc8] sm:$0x1]  ;;  %v2498_v20 = vrot.slane %v5508_v8, 5  ;;  %v6489_v61 = vld [vmem:[%s6685_s13 + $0x30] sm:$0xff]  }
  0x7a   : > { %v5539_v30 = vcombine.low %v2454_v21, %v2457_v22  ;;  %v6485_v21 = vld [vmem:[%s6685_s13 + $0xa8] sm:$0xff]  }
  0x7d   : > { %6220 = vmatmul.mubr.msk.bf16.vlgmr.msra.gmra.mxu0 %vm432_vm1, %v5533_v24 }
  0x7e   : > { %6186 = vmatmul.mubr.msk.bf16.vlgmr.msra.gmra.mxu1 %vm432_vm1, %v6474_v23  ;;  %6286 = vmatpush3.bf16.msra.mxu0 %v3605_v19  ;;  %v5495_v19 = vld [vmem:[%s6685_s13 + $0x88] sm:$0xf]  ;;  %v5494_v23 = vld [vmem:[%s6685_s13 + $0x84] sm:$0xe] }
  0x7f   : > { %6252 = vmatpush3.bf16.msra.mxu1 %v3179_v15  ;;  %6189 = vmatprep.mubr.msk.bf16.mxu1 %vm432_vm1, %v6475_v4  ;;  %v5523_v15 = vrot.slane %v5491_v3, 9  ;;  %v2467_v24 = vrot.slane %v5495_v19, 5  ;;  %v5499_v4 = vld [vmem:[%s6685_s13 + $0x98] sm:$0x1]  ;;  %v5524_v31 = vrot.slane %v5494_v23, 9  ;;  %v2497_v19 = vrot.slane %v2495_v5, 4 }
  0x80   : > { %6223 = vmatprep.mubr.msk.bf16.mxu0 %vm432_vm1, %v5534_v34  ;;  %6397 = vmatprep.subr.msk.bf16.mxu1 %vm481_vm0, %v7110_v13  ;;  %v2477_v38 = vrot.slane %v5499_v4, 5  ;;  %v5506_v3 = vld [vmem:[%s6685_s13 + $0xb4] sm:$0xe]  ;;  %v2504_v23 = vrot.slane %v2502_v10, 4  ;;  %v5514_v4 = vld [vmem:[%s6685_s13 + $0xd4] sm:$0x1] }
  0x81   : > { %v2461_v57 = vsel %vm6720_vm4, %v5523_v15, %v2460_v2  ;;  %6398 = vmatprep.subr.msk.bf16.mxu0 %vm481_vm0, %v7121_v40  ;;  %v2469_v34 = vrot.slane %v2467_v24, 4  ;;  %v2468_v43 = vsel %vm6720_vm4, %v5524_v31, %v2467_v24  ;;  %v5528_v16 = vrot.slane %v5506_v3, 9 }
  0x82   : > { %v5540_v33 = vcombine.low %v2461_v57, %v2464_v25  ;;  %v2478_v48 = vsel %vm6720_vm4, %v2476_v37, %v2477_v38  ;;  %v2505_v24 = vrot.slane %v5511_v12, 5  ;;  %v5513_v57 = vld [vmem:[%s6685_s13 + $0xd0] sm:$0xf]  ;;  %v5565_v25 = vld [vmem:[%s6685_s13 + $0x1c] sm:$0xf]  ;;  %v5530_v38 = vrot.slane %v5512_v28, 9 }
  0x83   : > { %v2471_v44 = vsel %vm6720_vm4, %v2469_v34, %v2470_v35  ;;  %v2496_v26 = vsel %vm6720_vm4, %v5528_v16, %v2495_v5  ;;  %v5564_v34 = vld [vmem:[%s6685_s13 + $0x18] sm:$0xc]  ;;  %v5566_v35 = vld [vmem:[%s6685_s13 + $0x20] sm:$0x3]  ;;  %v5575_v16 = vld [vmem:[%s6685_s13 + $0x44] sm:$0x3] }
  0x84   : > { %v5541_v53 = vcombine.low %v2468_v43, %v2471_v44  ;;  %v2506_v31 = vsel %vm6720_vm4, %v2504_v23, %v2505_v24  ;;  %v5612_v43 = vrot.slane %v5564_v34, 10  ;;  %v2973_v45 = vrot.slane %v5566_v35, 6 }
  0x85   : > { %6224 = vmatmul.mubr.msk.bf16.gmra.mxu0 %vm432_vm1, %v5535_v47  ;;  %v2475_v47 = vsel %vm6720_vm4, %v5525_v11, %v2474_v27  ;;  %v2499_v27 = vsel %vm6720_vm4, %v2497_v19, %v2498_v20  ;;  %v6486_v11 = vld [vmem:[%s6685_s13 + $0xb4] sm:$0xff]   ;;  %v6490_v19 = vld [vmem:[%s6685_s13 + $0x3c] sm:$0xff]   ;;  %v5576_v20 = vld [vmem:[%s6685_s13 + $0x48] sm:$0xc]  ;;  %v4737_v23 = vsel %vm481_vm0, %v7121_v40, 0  ;;  %v4171_v28 = vsel %vm481_vm0, %v7110_v13, 0 }
  0x86   : > { %6190 = vmatmul.mubr.msk.bf16.gmra.mxu1 %vm432_vm1, %v6476_v46  ;;  %6227 = vmatprep.mubr.msk.bf16.mxu0 %vm432_vm1, %v5536_v50  ;;  %v2481_v46 = vrot.slane %v5501_v39, 5  ;;  %v2488_v50 = vrot.slane %v5504_v41, 5  ;;  %v5542_v56 = vcombine.low %v2475_v47, %v2478_v48  ;;  %v2512_v41 = vrot.slane %v5514_v4, 5  ;;  %v5571_v47 = vld [vmem:[%s6685_s13 + $0x34] sm:$0xf] }
  0x87   : > { %6193 = vmatprep.mubr.msk.bf16.mxu1 %vm432_vm1, %v6477_v49  ;;  %v5503_v49 = vld [vmem:[%s6685_s13 + $0xa8] sm:$0xe]  ;;  %v5616_v4 = vrot.slane %v5576_v20, 10 }
  0x88   : > { %v2483_v58 = vrot.slane %v2481_v46, 4  ;;  %v5527_v60 = vrot.slane %v5503_v49, 9  ;;  %v2490_v62 = vrot.slane %v2488_v50, 4  ;;  %v2482_v1 = vsel %vm6720_vm4, %v5526_v54, %v2481_v46  ;;  %v5568_v46 = vld [vmem:[%s6685_s13 + $0x28] sm:$0xf] }
  0x89   : > { %v5569_v54 = vld [vmem:[%s6685_s13 + $0x2c] sm:$0x3] }
  0x8a   : > { %v2485_v2 = vsel %vm6720_vm4, %v2483_v58, %v2484_v59  ;;  %v5570_v58 = vld [vmem:[%s6685_s13 + $0x30] sm:$0xc]  ;;  %v5572_v59 = vld [vmem:[%s6685_s13 + $0x38] sm:$0x3] }
  0x8b   : > { %v5543_v15 = vcombine.low %v2482_v1, %v2485_v2  ;;  %v2980_v1 = vrot.slane %v5569_v54, 6  ;;  %v5614_v2 = vrot.slane %v5570_v58, 10  ;;  %v2987_v5 = vrot.slane %v5572_v59, 6 }
  0x8d   : > { %6228 = vmatmul.mubr.msk.bf16.gmra.mxu0 %vm432_vm1, %v5537_v7  ;;  %v2492_v7 = vsel %vm6720_vm4, %v2490_v62, %v2491_v63 }
  0x8e   : > { %6194 = vmatmul.mubr.msk.bf16.gmra.mxu1 %vm432_vm1, %v6478_v6  ;;  %6231 = vmatprep.mubr.msk.bf16.mxu0 %vm432_vm1, %v5538_v9  ;;  %v2489_v6 = vsel %vm6720_vm4, %v5527_v60, %v2488_v50  ;;  %v5509_v9 = vld [vmem:[%s6685_s13 + $0xc0] sm:$0xe]  ;;  %v2977_v50 = vrot.slane %v5568_v46, 6  ;;  %v6488_v60 = vld [vmem:[%s6685_s13 + $0xcc] sm:$0xff]  }
  0x8f   : > { %6197 = vmatprep.mubr.msk.bf16.mxu1 %vm432_vm1, %v6479_v14  ;;  %v6484_v14 = vld [vmem:[%s6685_s13 + $0x9c] sm:$0xff]   ;;  %v5544_v17 = vcombine.low %v2489_v6, %v2492_v7  ;;  %v5529_v22 = vrot.slane %v5509_v9, 9  ;;  %v5577_v7 = vld [vmem:[%s6685_s13 + $0x4c] sm:$0xf] }
  0x90   : > { %v2979_v0 = vrot.slane %v2977_v50, 4  ;;  %v5574_v6 = vld [vmem:[%s6685_s13 + $0x40] sm:$0xf] }
  0x92   : > { %v2981_v9 = vsel %vm6735_vm6, %v2979_v0, %v2980_v1  ;;  %v5588_v0 = vld [vmem:[%s6685_s13 + $0x78] sm:$0xc]  ;;  %v5590_v1 = vld [vmem:[%s6685_s13 + $0x80] sm:$0x3] }
  0x95   : > { %6232 = vmatmul.mubr.msk.bf16.gmra.mxu0 %vm432_vm1, %v5539_v30  ;;  %v2503_v30 = vsel %vm6720_vm4, %v5529_v22, %v2502_v10  ;;  %v2991_v10 = vrot.slane %v5574_v6, 6 }
  0x96   : > { %6198 = vmatmul.mubr.msk.bf16.gmra.mxu1 %vm432_vm1, %v6480_v29  ;;  %6235 = vmatprep.mubr.msk.bf16.mxu0 %vm432_vm1, %v5540_v33  ;;  %v2509_v29 = vrot.slane %v5513_v57, 5  ;;  %v2970_v33 = vrot.slane %v5565_v25, 6  ;;  %v5546_v37 = vcombine.low %v2503_v30, %v2506_v31  ;;  %v6491_v57 = vld [vmem:[%s6685_s13 + $0x48] sm:$0xff]   ;;  %v5580_v31 = vld [vmem:[%s6685_s13 + $0x58] sm:$0xf] }
  0x97   : > { %6201 = vmatprep.mubr.msk.bf16.mxu1 %vm432_vm1, %v6481_v36  ;;  %v5545_v36 = vcombine.low %v2496_v26, %v2499_v27  ;;  %v2993_v26 = vrot.slane %v2991_v10, 4  ;;  %v2994_v27 = vrot.slane %v5575_v16, 6  ;;  %v3005_v34 = vrot.slane %v5580_v31, 6 }
  0x98   : > { %v2511_v39 = vrot.slane %v2509_v29, 4  ;;  %v2972_v44 = vrot.slane %v2970_v33, 4  ;;  %v2510_v48 = vsel %vm6720_vm4, %v5530_v38, %v2509_v29  ;;  %v2971_v51 = vsel %vm6735_vm6, %v5612_v43, %v2970_v33  ;;  %v5583_v33 = vld [vmem:[%s6685_s13 + $0x64] sm:$0xf] }
  0x99   : > { %v2995_v40 = vsel %vm6735_vm6, %v2993_v26, %v2994_v27  ;;  %v3012_v38 = vrot.slane %v5583_v33, 6  ;;  %v5596_v26 = vld [vmem:[%s6685_s13 + $0x98] sm:$0x3] }
  0x9a   : > { %v2513_v49 = vsel %vm6720_vm4, %v2511_v39, %v2512_v41  ;;  %v6492_v39 = vld [vmem:[%s6685_s13 + $0x54] sm:$0xff]   ;;  %v5582_v41 = vld [vmem:[%s6685_s13 + $0x60] sm:$0xc] }
  0x9d   : > { %6236 = vmatmul.mubr.msk.bf16.gmra.mxu0 %vm432_vm1, %v5541_v53  ;;  %v5567_v53 = vld [vmem:[%s6685_s13 + $0x24] sm:$0xc] }
  0x9e   : > { %6202 = vmatmul.mubr.msk.bf16.gmra.mxu1 %vm432_vm1, %v6482_v52  ;;  %6239 = vmatprep.mubr.msk.bf16.mxu0 %vm432_vm1, %v5542_v56  ;;  %v2974_v52 = vsel %vm6735_vm6, %v2972_v44, %v2973_v45  ;;  %v5547_v56 = vcombine.low %v2510_v48, %v2513_v49  ;;  %v5613_v63 = vrot.slane %v5567_v53, 10  ;;  %v6493_v44 = vld [vmem:[%s6685_s13 + $0x60] sm:$0xff]   ;;  %v5618_v49 = vrot.slane %v5582_v41, 10  ;;  %v5589_v53 = vld [vmem:[%s6685_s13 + $0x7c] sm:$0xf] }
  0x9f   : > { %6205 = vmatprep.mubr.msk.bf16.mxu1 %vm432_vm1, %v6483_v55  ;;  %v2984_v55 = vrot.slane %v5571_v47, 6  ;;  %v5629_v62 = vcombine.low %v2971_v51, %v2974_v52  ;;  %v3007_v47 = vrot.slane %v3005_v34, 4  ;;  %v5586_v52 = vld [vmem:[%s6685_s13 + $0x70] sm:$0xf] }
  0xa0   : > { %v2978_v8 = vsel %vm6735_vm6, %v5613_v63, %v2977_v50  ;;  %v3014_v50 = vrot.slane %v3012_v38, 4  ;;  %v3013_v58 = vsel %vm6735_vm6, %v5618_v49, %v3012_v38  ;;  %v6494_v63 = vld [vmem:[%s6685_s13 + $0x6c] sm:$0xff]  }
  0xa1   : > { %v2986_v3 = vrot.slane %v2984_v55, 4  ;;  %v2985_v12 = vsel %vm6735_vm6, %v5614_v2, %v2984_v55  ;;  %v5630_v22 = vcombine.low %v2978_v8, %v2981_v9  ;;  %v5620_v9 = vrot.slane %v5588_v0, 10  ;;  %v6499_v49 = vld [vmem:[%s6685_s13 + $0xa8] sm:$0xff]   ;;  %v5606_v0 = vld [vmem:[%s6685_s13 + $0xc0] sm:$0xc] }
  0xa5   : > { %6240 = vmatmul.mubr.msk.bf16.gmra.mxu0 %vm432_vm1, %v5543_v15  ;;  %v5573_v15 = vld [vmem:[%s6685_s13 + $0x3c] sm:$0xc] }
  0xa6   : > { %6206 = vmatmul.mubr.msk.bf16.gmra.mxu1 %vm432_vm1, %v6484_v14  ;;  %6243 = vmatprep.mubr.msk.bf16.mxu0 %vm432_vm1, %v5544_v17  ;;  %v2988_v14 = vsel %vm6735_vm6, %v2986_v3, %v2987_v5  ;;  %v2998_v17 = vrot.slane %v5577_v7, 6  ;;  %v5615_v25 = vrot.slane %v5573_v15, 10  ;;  %v6495_v3 = vld [vmem:[%s6685_s13 + $0x78] sm:$0xff]   ;;  %v5595_v15 = vld [vmem:[%s6685_s13 + $0x94] sm:$0xf] }
  0xa7   : > { %6209 = vmatprep.mubr.msk.bf16.mxu1 %vm432_vm1, %v6485_v21  ;;  %v5578_v21 = vld [vmem:[%s6685_s13 + $0x50] sm:$0x3]  ;;  %v5631_v24 = vcombine.low %v2985_v12, %v2988_v14  ;;  %v3029_v12 = vrot.slane %v5590_v1, 6  ;;  %v5592_v14 = vld [vmem:[%s6685_s13 + $0x88] sm:$0xf] }
  0xa8   : > { %v3000_v29 = vrot.slane %v2998_v17, 4  ;;  %v3001_v30 = vrot.slane %v5578_v21, 6  ;;  %v2992_v13 = vsel %vm6735_vm6, %v5615_v25, %v2991_v10  ;;  %v2999_v35 = vsel %vm6735_vm6, %v5616_v4, %v2998_v17  ;;  %v5594_v25 = vld [vmem:[%s6685_s13 + $0x90] sm:$0xc] }
  0xa9   : > { %v5632_v43 = vcombine.low %v2992_v13, %v2995_v40  ;;  %v5622_v33 = vrot.slane %v5594_v25, 10  ;;  %v3043_v40 = vrot.slane %v5596_v26, 6  ;;  %v5626_v25 = vrot.slane %v5606_v0, 10 }
  0xad   : > { %6244 = vmatmul.mubr.msk.bf16.gmra.mxu0 %vm432_vm1, %v5545_v36  ;;  %v3002_v36 = vsel %vm6735_vm6, %v3000_v29, %v3001_v30 }
  0xae   : > { %6210 = vmatmul.mubr.msk.bf16.gmra.mxu1 %vm432_vm1, %v6486_v11  ;;  %6247 = vmatprep.mubr.msk.bf16.mxu0 %vm432_vm1, %v5546_v37  ;;  %v5579_v11 = vld [vmem:[%s6685_s13 + $0x54] sm:$0xc]  ;;  %v5581_v37 = vld [vmem:[%s6685_s13 + $0x5c] sm:$0x3]  ;;  %v5633_v45 = vcombine.low %v2999_v35, %v3002_v36  ;;  %v5601_v35 = vld [vmem:[%s6685_s13 + $0xac] sm:$0xf] }
  0xaf   : > { %6213 = vmatprep.mubr.msk.bf16.mxu1 %vm432_vm1, %v6487_v42  ;;  %v5584_v42 = vld [vmem:[%s6685_s13 + $0x68] sm:$0x3]  ;;  %v5617_v46 = vrot.slane %v5579_v11, 10  ;;  %v3008_v48 = vrot.slane %v5581_v37, 6  ;;  %v5597_v37 = vld [vmem:[%s6685_s13 + $0x9c] sm:$0xc] }
  0xb0   : > { %v3015_v51 = vrot.slane %v5584_v42, 6  ;;  %v5599_v42 = vld [vmem:[%s6685_s13 + $0xa4] sm:$0x3] }
  0xb1   : > { %v3006_v54 = vsel %vm6735_vm6, %v5617_v46, %v3005_v34  ;;  %v3009_v55 = vsel %vm6735_vm6, %v3007_v47, %v3008_v48  ;;  %v5598_v34 = vld [vmem:[%s6685_s13 + $0xa0] sm:$0xf]  ;;  %v5602_v46 = vld [vmem:[%s6685_s13 + $0xb0] sm:$0x3]  ;;  %v5604_v47 = vld [vmem:[%s6685_s13 + $0xb8] sm:$0xf] }
  0xb2   : > { %v3016_v59 = vsel %vm6735_vm6, %v3014_v50, %v3015_v51  ;;  %v5634_v2 = vcombine.low %v3006_v54, %v3009_v55  ;;  %v3047_v38 = vrot.slane %v5598_v34, 6  ;;  %v5623_v50 = vrot.slane %v5597_v37, 10 }
  0xb3   : > { %v5635_v5 = vcombine.low %v3013_v58, %v3016_v59  ;;  %v3061_v58 = vrot.slane %v5604_v47, 6  ;;  %v7328_v59 = vld [vmem:[%s6685_s13 + $0xc4] sm:$0xf] }
  0xb5   : > { %6248 = vmatmul.mubr.msk.bf16.gmra.mxu0 %vm432_vm1, %v5547_v56  ;;  %v3019_v56 = vrot.slane %v5586_v52, 6  ;;  %v3049_v52 = vrot.slane %v3047_v38, 4 }
  0xb6   : > { %6214 = vmatmul.mubr.msk.bf16.gmra.mxu1 %vm432_vm1, %v6488_v60  ;;  %6287 = vmatprep.mubr.msk.bf16.mxu0 %vm432_vm1, %v6489_v61  ;;  %v5585_v60 = vld [vmem:[%s6685_s13 + $0x6c] sm:$0xc]  ;;  %v5587_v61 = vld [vmem:[%s6685_s13 + $0x74] sm:$0x3] }
  0xb7   : > { %6253 = vmatprep.mubr.msk.bf16.mxu1 %vm432_vm1, %v5629_v62  ;;  %v3026_v62 = vrot.slane %v5589_v53, 6  ;;  %v5619_v6 = vrot.slane %v5585_v60, 10  ;;  %v3021_v7 = vrot.slane %v3019_v56, 4  ;;  %v3022_v8 = vrot.slane %v5587_v61, 6  ;;  %v5603_v61 = vld [vmem:[%s6685_s13 + $0xb4] sm:$0xc] }
  0xb8   : > { %v3050_v53 = vrot.slane %v5599_v42, 6  ;;  %v5729_v42 = vld [vmem:[%s6685_s13 + $0x3c] sm:$0xe] }
  0xb9   : > { %v3028_v10 = vrot.slane %v3026_v62, 4  ;;  %v3020_v16 = vsel %vm6735_vm6, %v5619_v6, %v3019_v56  ;;  %v3023_v17 = vsel %vm6735_vm6, %v3021_v7, %v3022_v8  ;;  %v3027_v20 = vsel %vm6735_vm6, %v5620_v9, %v3026_v62  ;;  %v5605_v62 = vld [vmem:[%s6685_s13 + $0xbc] sm:$0x3]  ;;  %v5608_v6 = vld [vmem:[%s6685_s13 + $0xc8] sm:$0x3] }
  0xba   : > { %v5636_v27 = vcombine.low %v3020_v16, %v3023_v17  ;;  %v3057_v56 = vrot.slane %v5602_v46, 6  ;;  %v3068_v7 = vrot.slane %v7328_v59, 6  ;;  %v7352_v8 = vld [vmem:[%s6685_s13 + $0xd0] sm:$0xf]  ;;  %v3064_v16 = vrot.slane %v5605_v62, 6  ;;  %v6503_v59 = vld [vmem:[%s6685_s13 + $0xd8] sm:$0xff]  }
  0xbb   : > { %v3030_v21 = vsel %vm6735_vm6, %v3028_v10, %v3029_v12  ;;  %v6500_v10 = vld [vmem:[%s6685_s13 + $0xb4] sm:$0xff]   ;;  %v3071_v26 = vrot.slane %v5608_v6, 6  ;;  %v5775_v0 = vrot.slane %v5729_v42, 9  ;;  %v5737_v42 = vld [vmem:[%s6685_s13 + $0x5c] sm:$0x1] }
  0xbc   : > { %v5637_v4 = vcombine.low %v3027_v20, %v3030_v21  ;;  %v7360_v17 = vld [vmem:[%s6685_s13 + $0x34] sm:$0xf]  ;;  %v5609_v20 = vld [vmem:[%s6685_s13 + $0xcc] sm:$0xc] }
  0xbd   : > { %6288 = vmatmul.mubr.msk.bf16.vlgmr.msra.gmra.mxu0 %vm432_vm1, %v6490_v19  ;;  %v3033_v19 = vrot.slane %v5592_v14, 6  ;;  %v5625_v14 = vrot.slane %v5603_v61, 10  ;;  %v7366_v21 = vld [vmem:[%s6685_s13 + $0xd4] sm:$0x3]  ;;  %v5627_v34 = vrot.slane %v5609_v20, 10 }
  0xbe   : > { %6254 = vmatmul.mubr.msk.bf16.vlgmr.msra.gmra.mxu1 %vm432_vm1, %v5630_v22  ;;  %6354 = vmatpush3.bf16.msra.mxu0 %v4737_v23  ;;  %v5591_v22 = vld [vmem:[%s6685_s13 + $0x84] sm:$0xc]  ;;  %v5593_v23 = vld [vmem:[%s6685_s13 + $0x8c] sm:$0x3]  ;;  %v7447_v20 = vld [vmem:[%s6685_s13 + $0x50] sm:$0x1] }
  0xbf   : > { %6320 = vmatpush3.bf16.msra.mxu1 %v4171_v28  ;;  %6257 = vmatprep.mubr.msk.bf16.mxu1 %vm432_vm1, %v5631_v24  ;;  %v3040_v24 = vrot.slane %v5595_v15, 6  ;;  %v6497_v28 = vld [vmem:[%s6685_s13 + $0x90] sm:$0xff]   ;;  %v5621_v29 = vrot.slane %v5591_v22, 10  ;;  %v3035_v30 = vrot.slane %v3033_v19, 4  ;;  %v3036_v31 = vrot.slane %v5593_v23, 6 }
  0xc0   : > { %6291 = vmatprep.mubr.msk.bf16.mxu0 %vm432_vm1, %v6491_v57  ;;  %v6496_v57 = vld [vmem:[%s6685_s13 + $0x84] sm:$0xff]   ;;  %v3063_v15 = vrot.slane %v3061_v58, 4  ;;  %v7369_v22 = vld [vmem:[%s6685_s13 + $0x34] sm:$0xf] }
  0xc1   : > { %v3042_v13 = vrot.slane %v3040_v24, 4  ;;  %v3034_v36 = vsel %vm6735_vm6, %v5621_v29, %v3033_v19  ;;  %v3037_v11 = vsel %vm6735_vm6, %v3035_v30, %v3036_v31  ;;  %v3070_v30 = vrot.slane %v3068_v7, 4  ;;  %v7379_v31 = vld [vmem:[%s6685_s13 + $0x38] sm:$0x1] }
  0xc2   : > { %v5638_v48 = vcombine.low %v3034_v36, %v3037_v11  ;;  %v4528_v36 = vrot.slane %v7369_v22, 6  ;;  %v5730_v11 = vld [vmem:[%s6685_s13 + $0x40] sm:$0xf]  ;;  %v3965_v47 = vrot.slane %v7379_v31, 5 }
  0xc3   : > { %v3044_v41 = vsel %vm6735_vm6, %v3042_v13, %v3043_v40  ;;  %v7383_v13 = vld [vmem:[%s6685_s13 + $0x30] sm:$0xc] }
  0xc4   : > { %v4530_v61 = vrot.slane %v4528_v36, 4 }
  0xc5   : > { %6292 = vmatmul.mubr.msk.bf16.gmra.mxu0 %vm432_vm1, %v6492_v39  ;;  %v3041_v39 = vsel %vm6735_vm6, %v5622_v33, %v3040_v24  ;;  %v3962_v33 = vrot.slane %v7360_v17, 5  ;;  %v7444_v17 = vld [vmem:[%s6685_s13 + $0x48] sm:$0xe] }
  0xc6   : > { %6258 = vmatmul.mubr.msk.bf16.gmra.mxu1 %vm432_vm1, %v5632_v43  ;;  %6295 = vmatprep.mubr.msk.bf16.mxu0 %vm432_vm1, %v6493_v44  ;;  %v5600_v43 = vld [vmem:[%s6685_s13 + $0xa8] sm:$0xc]  ;;  %v3054_v44 = vrot.slane %v5601_v35, 6  ;;  %v5639_v51 = vcombine.low %v3041_v39, %v3044_v41  ;;  %v3078_v35 = vrot.slane %v7366_v21, 6  ;;  %v3065_v39 = vsel %vm6735_vm6, %v3063_v15, %v3064_v16  ;;  %v7398_v41 = vld [vmem:[%s6685_s13 + $0x38] sm:$0x3] }
  0xc7   : > { %6261 = vmatprep.mubr.msk.bf16.mxu1 %vm432_vm1, %v5633_v45  ;;  %v6498_v45 = vld [vmem:[%s6685_s13 + $0x9c] sm:$0xff]   ;;  %v5624_v54 = vrot.slane %v5600_v43, 10  ;;  %v4531_v62 = vrot.slane %v7398_v41, 6  ;;  %v5776_v41 = vrot.slane %v7444_v17, 9  ;;  %v7537_v17 = vld [vmem:[%s6685_s13 + $0x70] sm:$0xf] }
  0xc8   : > { %v3056_v55 = vrot.slane %v3054_v44, 4  ;;  %v7402_v43 = vld [vmem:[%s6685_s13 + $0x40] sm:$0xf] }
  0xca   : > { %v3058_v12 = vsel %vm6735_vm6, %v3056_v55, %v3057_v56  ;;  %v3969_v55 = vrot.slane %v5730_v11, 5  ;;  %v7420_v56 = vld [vmem:[%s6685_s13 + $0x4c] sm:$0xf] }
  0xcb   : > { %v3976_v21 = vrot.slane %v7420_v56, 5  ;;  %v7506_v56 = vld [vmem:[%s6685_s13 + $0x64] sm:$0xf] }
  0xcd   : > { %6296 = vmatmul.mubr.msk.bf16.gmra.mxu0 %vm432_vm1, %v6494_v63 }
  0xce   : > { %6262 = vmatmul.mubr.msk.bf16.gmra.mxu1 %vm432_vm1, %v5634_v2  ;;  %6299 = vmatprep.mubr.msk.bf16.mxu0 %vm432_vm1, %v6495_v3  ;;  %v3048_v2 = vsel %vm6735_vm6, %v5623_v50, %v3047_v38  ;;  %v3051_v3 = vsel %vm6735_vm6, %v3049_v52, %v3050_v53  ;;  %v3062_v38 = vsel %vm6735_vm6, %v5625_v14, %v3061_v58  ;;  %v6502_v50 = vld [vmem:[%s6685_s13 + $0xcc] sm:$0xff]   ;;  %v3964_v53 = vrot.slane %v3962_v33, 4 }
  0xcf   : > { %6265 = vmatprep.mubr.msk.bf16.mxu1 %vm432_vm1, %v5635_v5  ;;  %v3055_v5 = vsel %vm6735_vm6, %v5624_v54, %v3054_v44  ;;  %v5640_v24 = vcombine.low %v3048_v2, %v3051_v3  ;;  %v3072_v52 = vsel %vm6735_vm6, %v3070_v30, %v3071_v26  ;;  %v5731_v54 = vld [vmem:[%s6685_s13 + $0x44] sm:$0x1]  ;;  %v4535_v2 = vrot.slane %v7402_v43, 6  ;;  %v7428_v3 = vld [vmem:[%s6685_s13 + $0x4c] sm:$0xf] }
  0xd0   : > { %v5641_v29 = vcombine.low %v3055_v5, %v3058_v12  ;;  %v5642_v6 = vcombine.low %v3062_v38, %v3065_v39  ;;  %v3972_v16 = vrot.slane %v5731_v54, 5  ;;  %v5829_v26 = vld [vmem:[%s6685_s13 + $0x48] sm:$0xc]  ;;  %v7482_v39 = vsel %vm6720_vm4, %v5775_v0, %v3969_v55 }
  0xd1   : > { %v4537_v31 = vrot.slane %v4535_v2, 4 }
  0xd5   : > { %6300 = vmatmul.mubr.msk.bf16.gmra.mxu0 %vm432_vm1, %v6496_v57  ;;  %v6501_v57 = vld [vmem:[%s6685_s13 + $0xc0] sm:$0xff]  }
  0xd6   : > { %6266 = vmatmul.mubr.msk.bf16.gmra.mxu1 %vm432_vm1, %v5636_v27  ;;  %6303 = vmatprep.mubr.msk.bf16.mxu0 %vm432_vm1, %v6497_v28  ;;  %v3075_v27 = vrot.slane %v7352_v8, 6  ;;  %v5726_v28 = vld [vmem:[%s6685_s13 + $0x30] sm:$0xe]  ;;  %v5828_v8 = vld [vmem:[%s6685_s13 + $0x44] sm:$0x3] }
  0xd7   : > { %6269 = vmatprep.mubr.msk.bf16.mxu1 %vm432_vm1, %v5637_v4  ;;  %v5774_v46 = vrot.slane %v5726_v28, 9  ;;  %v4542_v28 = vrot.slane %v7428_v3, 6  ;;  %v3986_v3 = vrot.slane %v5737_v42, 5 }
  0xd8   : > { %v7441_v15 = vsel %vm6735_vm6, %v5627_v34, %v3075_v27  ;;  %v5735_v34 = vld [vmem:[%s6685_s13 + $0x54] sm:$0xe] }
  0xd9   : > { %v5777_v54 = vrot.slane %v5735_v34, 9 }
  0xdd   : > { %v7330_v60 = vpop.f32.mrf.mxu0  ;;  %6304 = vmatmul.mubr.msk.bf16.gmra.mxu0 %vm432_vm1, %v6498_v45  ;;  %v3077_v45 = vrot.slane %v3075_v27, 4  ;;  %v7462_v27 = vld [vmem:[%s6685_s13 + $0x50] sm:$0x3] }
  0xde   : > { %v7335_v63 = vpop.f32.mrf.mxu1  ;;  %6270 = vmatmul.mubr.msk.bf16.gmra.mxu1 %vm432_vm1, %v5638_v48  ;;  %6307 = vmatprep.mubr.msk.bf16.mxu0 %vm432_vm1, %v6499_v49  ;;  %v5871_v48 = vrot.slane %v7383_v13, 10  ;;  %v4538_v13 = vrot.slane %v5828_v8, 6 }
  0xdf   : > { %v7340_v1 = vpop.f32.mrf.mxu0  ;;  %6273 = vmatprep.mubr.msk.bf16.mxu1 %vm432_vm1, %v5639_v51  ;;  %v3069_v51 = vsel %vm6735_vm6, %v5626_v25, %v3068_v7  ;;  %v5826_v7 = vld [vmem:[%s6685_s13 + $0x3c] sm:$0xc]  ;;  %v3971_v25 = vrot.slane %v3969_v55, 4  ;;  %v7503_v55 = vld [vmem:[%s6685_s13 + $0x58] sm:$0xf] }
  0xe0   : > { %v7354_v9 = vpop.f32.mrf.mxu1  ;;  %v5643_v14 = vcombine.low %v3069_v51, %v3072_v52  ;;  %v5872_v30 = vrot.slane %v5826_v7, 10  ;;  %v7478_v38 = vsel %vm6735_vm6, %v5871_v48, %v4528_v36  ;;  %v5873_v36 = vrot.slane %v5829_v26, 10  ;;  %v7522_v7 = vld [vmem:[%s6685_s13 + $0x64] sm:$0xf] }
  0xe1   : > { %v7362_v19 = vpop.f32.mrf.mxu0  ;;  %v4532_v51 = vsel %vm6735_vm6, %v4530_v61, %v4531_v62  ;;  %v7500_v52 = vsel %vm6720_vm4, %v3971_v25, %v3972_v16  ;;  %v7516_v61 = vsel %vm6735_vm6, %v4537_v31, %v4538_v13  ;;  %v7534_v16 = vld [vmem:[%s6685_s13 + $0x60] sm:$0xe]  ;;  %v7556_v13 = vsel %vm6720_vm4, %v5776_v41, %v3976_v21 }
  0xe2   : > { %v7371_v23 = vpop.f32.mrf.mxu1  ;;  %v7512_v0 = vsel %vm6735_vm6, %v5872_v30, %v4535_v2  ;;  %v5888_v25 = vcombine.low %v7478_v38, %v4532_v51  ;;  %v5837_v38 = vld [vmem:[%s6685_s13 + $0x68] sm:$0x3]  ;;  %v4556_v42 = vrot.slane %v7522_v7, 6 }
  0xe3   : > { %v7376_v4 = vpop.f32.mrf.mxu0 }
  0xe4   : > { %v7385_v40 = vpop.f32.mrf.mxu1 }
  0xe5   : > { %v7390_v37 = vpop.f32.mrf.mxu0  ;;  %6308 = vmatmul.mubr.msk.bf16.gmra.mxu0 %vm432_vm1, %v6500_v10  ;;  %v7435_v10 = vld [vmem:[%s6685_s13 + $0x58] sm:$0xf] }
  0xe6   : > { %v7404_v44 = vpop.f32.mrf.mxu1  ;;  %6274 = vmatmul.mubr.msk.bf16.gmra.mxu1 %vm432_vm1, %v5640_v24  ;;  %6311 = vmatprep.mubr.msk.bf16.mxu0 %vm432_vm1, %v6501_v57  ;;  %v7454_v24 = vsel %vm6735_vm6, %v3077_v45, %v3078_v35  ;;  %v7458_v57 = vsel %vm6720_vm4, %v5774_v46, %v3962_v33  ;;  %v3983_v35 = vrot.slane %v7435_v10, 5  ;;  %v7474_v33 = vsel %vm6720_vm4, %v3964_v53, %v3965_v47 }
  0xe7   : > { %v7410_v49 = vpop.f32.mrf.mxu0  ;;  %6277 = vmatprep.mubr.msk.bf16.mxu1 %vm432_vm1, %v5641_v29  ;;  %v3978_v45 = vrot.slane %v3976_v21, 4  ;;  %v3979_v46 = vrot.slane %v7447_v20, 5  ;;  %v4545_v47 = vrot.slane %v7462_v27, 6  ;;  %v4544_v53 = vrot.slane %v4542_v28, 4  ;;  %v7548_v27 = vld [vmem:[%s6685_s13 + $0x70] sm:$0xf] }
  0xe8   : > { %v7422_v58 = vpop.f32.mrf.mxu1  ;;  %v3985_v62 = vrot.slane %v3983_v35, 4  ;;  %v5644_v10 = vcombine.low %v7441_v15, %v7454_v24  ;;  %v5791_v2 = vcombine.low %v7458_v57, %v7474_v33  ;;  %v4549_v15 = vrot.slane %v7503_v55, 6  ;;  %v5740_v24 = vld [vmem:[%s6685_s13 + $0x68] sm:$0x1]  ;;  %v5835_v33 = vld [vmem:[%s6685_s13 + $0x60] sm:$0xc] }
  0xe9   : > { %8573 = vst [vmem:[#allocation6_spill] sm:$0xff] %v7422_v58  ;;  %v7430_v5 = vpop.f32.mrf.mxu0  ;;  %v3990_v57 = vrot.slane %v7506_v56, 5  ;;  %v7560_v34 = vsel %vm6720_vm4, %v3978_v45, %v3979_v46  ;;  %v7569_v55 = vsel %vm6735_vm6, %v5873_v36, %v4542_v28  ;;  %v7573_v21 = vsel %vm6720_vm4, %v5777_v54, %v3983_v35  ;;  %v5741_v45 = vld [vmem:[%s6685_s13 + $0x6c] sm:$0xe]  ;;  %v5743_v46 = vld [vmem:[%s6685_s13 + $0x74] sm:$0x1] }
  0xea   : > { %v7437_v12 = vpop.f32.mrf.mxu1  ;;  %v3997_v56 = vrot.slane %v7537_v17, 5  ;;  %v4546_v7 = vsel %vm6735_vm6, %v4544_v53, %v4545_v47  ;;  %v7586_v28 = vsel %vm6720_vm4, %v3985_v62, %v3986_v3  ;;  %v5838_v36 = vld [vmem:[%s6685_s13 + $0x6c] sm:$0xc]  ;;  %v5840_v54 = vld [vmem:[%s6685_s13 + $0x74] sm:$0x3]  ;;  %v5778_v47 = vrot.slane %v7534_v16, 9 }
  0xeb   : > { %8574 = vst [vmem:[#allocation7_spill] sm:$0xff] %v7437_v12  ;;  %v7450_v22 = vpop.f32.mrf.mxu0  ;;  %v3992_v53 = vrot.slane %v3990_v57, 4  ;;  %v3993_v31 = vrot.slane %v5740_v24, 5  ;;  %v7598_v62 = vld [vmem:[%s6685_s13 + $0x7c] sm:$0xf]  ;;  %v4000_v16 = vrot.slane %v5743_v46, 5 }
  0xec   : > { %v7465_v29 = vpop.f32.mrf.mxu1  ;;  %v4566_v24 = vrot.slane %v5840_v54, 6  ;;  %v5744_v12 = vld [vmem:[%s6685_s13 + $0x78] sm:$0xe] }
  0xed   : > { %8575 = vst [vmem:[#allocation8_spill] sm:$0xff] %v7465_v29  ;;  %v7469_v11 = vpop.f32.mrf.mxu0  ;;  %6312 = vmatmul.mubr.msk.bf16.gmra.mxu0 %vm432_vm1, %v6502_v50  ;;  %v6504_v50 = vld [vmem:[%s6685_s13 + $0xe4] sm:$0xff]   ;;  %v5793_v29 = vcombine.low %v7556_v13, %v7560_v34  ;;  %v7624_v13 = vsel %vm6720_vm4, %v5778_v47, %v3990_v57  ;;  %v5746_v34 = vld [vmem:[%s6685_s13 + $0x80] sm:$0x1] }
  0xee   : > { %v7486_v43 = vpop.f32.mrf.mxu1  ;;  %6278 = vmatmul.mubr.msk.bf16.gmra.mxu1 %vm432_vm1, %v5642_v6  ;;  %6315 = vmatprep.mubr.msk.bf16.mxu0 %vm432_vm1, %v6503_v59  ;;  %v7519_v6 = vld [vmem:[%s6685_s13 + $0x54] sm:$0xc] }
  0xef   : > { %8576 = vst [vmem:[#allocation9_spill] sm:$0xff] %v7486_v43  ;;  %v7492_v48 = vpop.f32.mrf.mxu0  ;;  %6281 = vmatprep.mubr.msk.bf16.mxu1 %vm432_vm1, %v5643_v14  ;;  %v7531_v14 = vld [vmem:[%s6685_s13 + $0x5c] sm:$0x3]  ;;  %v5874_v41 = vrot.slane %v7519_v6, 10  ;;  %v4563_v6 = vrot.slane %v7548_v27, 6  ;;  %v4558_v27 = vrot.slane %v4556_v42, 4 }
  0xf0   : > { %v7508_v59 = vpop.f32.mrf.mxu1  ;;  %v4552_v35 = vrot.slane %v7531_v14, 6  ;;  %v5875_v14 = vrot.slane %v5835_v33, 10 }
  0xf1   : > { %8577 = vst [vmem:[#allocation10_spill] sm:$0xff] %v7508_v59  ;;  %v7524_v8 = vpop.f32.mrf.mxu0  ;;  %v5876_v59 = vrot.slane %v5838_v36, 10  ;;  %v4565_v33 = vrot.slane %v4563_v6, 4  ;;  %v7620_v36 = vsel %vm6735_vm6, %v5874_v41, %v4549_v15  ;;  %v5843_v41 = vld [vmem:[%s6685_s13 + $0x80] sm:$0x3] }
  0xf2   : > { %v7539_v20 = vpop.f32.mrf.mxu1 }
  0xf3   : > { %8578 = vst [vmem:[#allocation11_spill] sm:$0xff] %v7539_v20  ;;  %v7550_v30 = vpop.f32.mrf.mxu0 }
  0xf4   : > { %v7565_v51 = vpop.f32.mrf.mxu1 }
  0xf5   : > { %8579 = vst [vmem:[#allocation12_spill] sm:$0xff] %v7565_v51  ;;  %v7579_v26 = vpop.f32.mrf.mxu0  ;;  %6316 = vmatmul.mubr.msk.bf16.gmra.mxu0 %vm432_vm1, %v6504_v50  ;;  %v4551_v50 = vrot.slane %v4549_v15, 4  ;;  %v5779_v51 = vrot.slane %v5741_v45, 9  ;;  %v5841_v45 = vld [vmem:[%s6685_s13 + $0x78] sm:$0xc]  ;;  %v7639_v15 = vsel %vm6735_vm6, %v5875_v14, %v4556_v42 }
  0xf6   : > { %v7592_v17 = vpop.f32.mrf.mxu1  ;;  %6282 = vmatmul.mubr.msk.bf16.gmra.mxu1 %vm432_vm1, %v5644_v10  ;;  %6355 = vmatprep.mubr.msk.bf16.mxu0 %vm432_vm1, %v5888_v25  ;;  %v5842_v10 = vld [vmem:[%s6685_s13 + $0x7c] sm:$0xf]  ;;  %v3999_v25 = vrot.slane %v3997_v56, 4  ;;  %v7657_v42 = vld [vmem:[%s6685_s13 + $0x88] sm:$0xf] }
  0xf7   : > { %8580 = vst [vmem:[#allocation13_spill] sm:$0xff] %v7592_v17  ;;  %v7600_v3 = vpop.f32.mrf.mxu0  ;;  %6321 = vmatprep.mubr.msk.bf16.mxu1 %vm432_vm1, %v5791_v2  ;;  %v4559_v17 = vrot.slane %v5837_v38, 6  ;;  %v5890_v2 = vcombine.low %v7569_v55, %v4546_v7  ;;  %v4004_v38 = vrot.slane %v7598_v62, 5  ;;  %v4570_v55 = vrot.slane %v5842_v10, 6  ;;  %v7672_v10 = vld [vmem:[%s6685_s13 + $0x88] sm:$0xf] }
  0xf8   : > { %v7604_v20 = vpop.f32.mrf.mxu1  ;;  %v7631_v54 = vsel %vm6735_vm6, %v4551_v50, %v4552_v35  ;;  %v7635_v62 = vsel %vm6720_vm4, %v3992_v53, %v3993_v31  ;;  %v7650_v35 = vsel %vm6720_vm4, %v5779_v51, %v3997_v56  ;;  %v7654_v31 = vsel %vm6720_vm4, %v3999_v25, %v4000_v16 }
  0xf9   : > { %8581 = vst [vmem:[#allocation14_spill] sm:$0xff] %v7604_v20  ;;  %v7606_v43 = vpop.f32.mrf.mxu0  ;;  %v7643_v57 = vsel %vm6735_vm6, %v4558_v27, %v4559_v17  ;;  %v5780_v50 = vrot.slane %v5744_v12, 9  ;;  %v5877_v53 = vrot.slane %v5841_v45, 10  ;;  %v8584_v17 = vcombine.low %v7512_v0, %v7516_v61 }
  0xfa   : > { %v7614_v58 = vpop.f32.mrf.mxu1  ;;  %v7665_v51 = vsel %vm6735_vm6, %v5876_v59, %v4563_v6  ;;  %v7669_v56 = vsel %vm6735_vm6, %v4565_v33, %v4566_v24  ;;  %v4006_v12 = vrot.slane %v4004_v38, 4  ;;  %v4007_v27 = vrot.slane %v5746_v34, 5  ;;  %v5747_v24 = vld [vmem:[%s6685_s13 + $0x84] sm:$0xe]  ;;  %v7685_v33 = vld [vmem:[%s6685_s13 + $0x94] sm:$0xf] }
  0xfb   : > { %8582 = vst [vmem:[#allocation15_spill] sm:$0xff] %v7614_v58  ;;  %v7627_v7 = vpop.f32.mrf.mxu0  ;;  %v8585_v16 = vcombine.low %v7482_v39, %v7500_v52  ;;  %v5891_v59 = vcombine.low %v7620_v36, %v7631_v54  ;;  %v5795_v0 = vcombine.low %v7624_v13, %v7635_v62  ;;  %v4572_v61 = vrot.slane %v4570_v55, 4  ;;  %v5749_v36 = vld [vmem:[%s6685_s13 + $0x8c] sm:$0x1]  ;;  %v7696_v34 = vld [vmem:[%s6685_s13 + $0x94] sm:$0xf] }
  0xfc   : > { %v7646_v47 = vpop.f32.mrf.mxu1  ;;  %v4573_v6 = vrot.slane %v5843_v41, 6  ;;  %v4011_v13 = vrot.slane %v7657_v42, 5  ;;  %v7706_v62 = vsel %vm6735_vm6, %v5877_v53, %v4570_v55  ;;  %v4577_v41 = vrot.slane %v7672_v10, 6 }
  0xfd   : > { %8583 = vst [vmem:[#allocation16_spill] sm:$0xff] %v7646_v47  ;;  %v6153_v14 = vpop.f32.mrf.mxu0  ;;  %6356 = vmatmul.mubr.msk.bf16.vlgmr.msra.gmra.mxu0 %vm432_vm1, %v8584_v17  ;;  %v4018_v45 = vrot.slane %v7685_v33, 5  ;;  %v4014_v10 = vrot.slane %v5749_v36, 5 }
  0xfe   : > { %v6119_v25 = vpop.f32.mrf.mxu1  ;;  %6322 = vmatmul.mubr.msk.bf16.vlgmr.msra.gmra.mxu1 %vm432_vm1, %v8585_v16  ;;  %6359 = vmatprep.mubr.msk.bf16.mxu0 %vm432_vm1, %v5890_v2  ;;  %v5892_v2 = vcombine.low %v7639_v15, %v7643_v57  ;;  %v5844_v15 = vld [vmem:[%s6685_s13 + $0x84] sm:$0xc]  ;;  %v5846_v57 = vld [vmem:[%s6685_s13 + $0x8c] sm:$0x3]  ;;  %v7716_v16 = vsel %vm6720_vm4, %v4006_v12, %v4007_v27  ;;  %v7723_v53 = vsel %vm6735_vm6, %v4572_v61, %v4573_v6  ;;  %v4579_v47 = vrot.slane %v4577_v41, 4 }
  0xff   : > { %v1217_v39 = vadd.f32 %v6119_v25, %v7330_v60  ;;  %v1657_v52 = vpop.f32.mrf.mxu0  ;;  %6325 = vmatprep.mubr.msk.bf16.mxu1 %vm432_vm1, %v5793_v29  ;;  %v7702_v29 = vsel %vm6720_vm4, %v5780_v50, %v4004_v38  ;;  %v5750_v38 = vld [vmem:[%s6685_s13 + $0x90] sm:$0xe]  ;;  %v5752_v50 = vld [vmem:[%s6685_s13 + $0x98] sm:$0x1]  ;;  %v4013_v60 = vrot.slane %v4011_v13, 4  ;;  %v5878_v46 = vrot.slane %v5844_v15, 10 }
 0x100   : > { %v1088_v54 = vpop.f32.mrf.mxu1  ;;  %v4580_v58 = vrot.slane %v5846_v57, 6  ;;  %v5782_v20 = vrot.slane %v5750_v38, 9  ;;  %v4021_v61 = vrot.slane %v5752_v50, 5  ;;  %v7732_v6 = vld [vmem:[%s6685_s13 + $0xa0] sm:$0xf]  ;;  %v8587_v57 = vcombine.low %v7573_v21, %v7586_v28 }
 0x101   : > { %v7711_v42 = vadd.f32 %v6153_v14, %v1217_v39  ;;  %v1215_v17 = vadd.f32 %v1088_v54, %v7340_v1  ;;  %v6154_v25 = vpop.f32.mrf.mxu0  ;;  %v5781_v14 = vrot.slane %v5747_v24, 9  ;;  %v5847_v39 = vld [vmem:[%s6685_s13 + $0x90] sm:$0xc]  ;;  %v4584_v1 = vrot.slane %v7696_v34, 6  ;;  %v5753_v38 = vld [vmem:[%s6685_s13 + $0x9c] sm:$0xe] }
 0x102   : > { %v6120_v55 = vpop.f32.mrf.mxu1  ;;  %v5879_v34 = vrot.slane %v5847_v39, 10  ;;  %v4025_v28 = vrot.slane %v7732_v6, 5 }
 0x103   : > { %8586 = vst [vmem:[#allocation17_spill] sm:$0xff] %v7711_v42  ;;  %v7727_v54 = vadd.f32 %v1657_v52, %v1215_v17  ;;  %v1218_v12 = vadd.f32 %v6120_v55, %v7362_v19  ;;  %v1660_v27 = vpop.f32.mrf.mxu0  ;;  %v5849_v42 = vld [vmem:[%s6685_s13 + $0x98] sm:$0x3]  ;;  %v4020_v19 = vrot.slane %v4018_v45, 4  ;;  %v5797_v17 = vcombine.low %v7702_v29, %v7716_v16 }
 0x104   : > { %v1091_v33 = vpop.f32.mrf.mxu1  ;;  %v7754_v21 = vsel %vm6720_vm4, %v5781_v14, %v4011_v13  ;;  %v7773_v13 = vsel %vm6720_vm4, %v5782_v20, %v4018_v45  ;;  %v5755_v14 = vld [vmem:[%s6685_s13 + $0xa4] sm:$0x1] }
 0x105   : > { %v7734_v24 = vadd.f32 %v6154_v25, %v1218_v12  ;;  %v1216_v36 = vadd.f32 %v1091_v33, %v7376_v4  ;;  %v6157_v52 = vpop.f32.mrf.mxu0  ;;  %6360 = vmatmul.mubr.msk.bf16.gmra.mxu0 %vm432_vm1, %v5891_v59  ;;  %v5894_v4 = vcombine.low %v7706_v62, %v7723_v53  ;;  %v4586_v25 = vrot.slane %v4584_v1, 4  ;;  %v5851_v62 = vld [vmem:[%s6685_s13 + $0xa0] sm:$0xf]  ;;  %v7795_v33 = vld [vmem:[%s6685_s13 + $0xac] sm:$0xf] }
 0x106   : > { %v6123_v15 = vpop.f32.mrf.mxu1  ;;  %6326 = vmatmul.mubr.msk.bf16.gmra.mxu1 %vm432_vm1, %v8587_v57  ;;  %6363 = vmatprep.mubr.msk.bf16.mxu0 %vm432_vm1, %v5892_v2  ;;  %v4587_v59 = vrot.slane %v5849_v42, 6  ;;  %v5850_v2 = vld [vmem:[%s6685_s13 + $0x9c] sm:$0xc]  ;;  %v7761_v42 = vsel %vm6720_vm4, %v4013_v60, %v4014_v10  ;;  %v7781_v10 = vsel %vm6720_vm4, %v4020_v19, %v4021_v61  ;;  %v5852_v19 = vld [vmem:[%s6685_s13 + $0xa4] sm:$0x3] }
 0x107   : > { %v7748_v50 = vadd.f32 %v1660_v27, %v1216_v36  ;;  %v1221_v55 = vadd.f32 %v6123_v15, %v7390_v37  ;;  %v1673_v39 = vpop.f32.mrf.mxu0  ;;  %6329 = vmatprep.mubr.msk.bf16.mxu1 %vm432_vm1, %v5795_v0  ;;  %v7765_v37 = vsel %vm6735_vm6, %v5878_v46, %v4577_v41  ;;  %v7769_v0 = vsel %vm6735_vm6, %v4579_v47, %v4580_v58  ;;  %v7788_v58 = vld [vmem:[%s6685_s13 + $0xac] sm:$0xf] }
 0x108   : > { %v1104_v53 = vpop.f32.mrf.mxu1  ;;  %v7785_v46 = vsel %vm6735_vm6, %v5879_v34, %v4584_v1  ;;  %v7792_v20 = vsel %vm6735_vm6, %v4586_v25, %v4587_v59  ;;  %v5880_v45 = vrot.slane %v5850_v2, 10  ;;  %v4591_v41 = vrot.slane %v5851_v62, 6  ;;  %v5756_v59 = vld [vmem:[%s6685_s13 + $0xa8] sm:$0xe] }
 0x109   : > { %v7776_v12 = vadd.f32 %v6157_v52, %v1221_v55  ;;  %v1219_v27 = vadd.f32 %v1104_v53, %v7410_v49  ;;  %v6158_v60 = vpop.f32.mrf.mxu0  ;;  %v5783_v49 = vrot.slane %v5753_v38, 9  ;;  %v4027_v36 = vrot.slane %v4025_v28, 4  ;;  %v5758_v38 = vld [vmem:[%s6685_s13 + $0xb0] sm:$0x1] }
 0x10a   : > { %v6124_v47 = vpop.f32.mrf.mxu1  ;;  %v4028_v52 = vrot.slane %v5755_v14, 5  ;;  %v5798_v15 = vcombine.low %v7754_v21, %v7761_v42  ;;  %v5895_v57 = vcombine.low %v7765_v37, %v7769_v0  ;;  %v8588_v62 = vcombine.low %v7665_v51, %v7669_v56  ;;  %v5853_v14 = vld [vmem:[%s6685_s13 + $0xa8] sm:$0xc]  ;;  %v5859_v42 = vld [vmem:[%s6685_s13 + $0xc0] sm:$0xc] }
 0x10b   : > { %v7797_v61 = vadd.f32 %v1673_v39, %v1219_v27  ;;  %v1222_v6 = vadd.f32 %v6124_v47, %v7430_v5  ;;  %v1676_v1 = vpop.f32.mrf.mxu0  ;;  %v4032_v5 = vrot.slane %v7788_v58, 5  ;;  %v5896_v53 = vcombine.low %v7785_v46, %v7792_v20  ;;  %v5855_v27 = vld [vmem:[%s6685_s13 + $0xb0] sm:$0x3]  ;;  %v7836_v20 = vld [vmem:[%s6685_s13 + $0xb8] sm:$0xf] }
 0x10c   : > { %v1107_v34 = vpop.f32.mrf.mxu1  ;;  %v4598_v47 = vrot.slane %v7795_v33, 6  ;;  %v7833_v51 = vsel %vm6735_vm6, %v5880_v45, %v4591_v41  ;;  %v4593_v56 = vrot.slane %v4591_v41, 4  ;;  %v4594_v46 = vrot.slane %v5852_v19, 6  ;;  %v7853_v45 = vld [vmem:[%s6685_s13 + $0xc4] sm:$0xf] }
 0x10d   : > { %v7810_v55 = vadd.f32 %v6158_v60, %v1222_v6  ;;  %v1220_v39 = vadd.f32 %v1107_v34, %v7450_v22  ;;  %v6161_v2 = vpop.f32.mrf.mxu0  ;;  %6364 = vmatmul.mubr.msk.bf16.gmra.mxu0 %vm432_vm1, %v8588_v62  ;;  %v8589_v60 = vcombine.low %v7650_v35, %v7654_v31  ;;  %v7829_v22 = vsel %vm6720_vm4, %v5783_v49, %v4025_v28  ;;  %v7850_v49 = vld [vmem:[%s6685_s13 + $0xb8] sm:$0xf]  ;;  %v5759_v34 = vld [vmem:[%s6685_s13 + $0xb4] sm:$0xe] }
 0x10e   : > { %v6127_v58 = vpop.f32.mrf.mxu1  ;;  %6367 = vmatprep.mubr.msk.bf16.mxu0 %vm432_vm1, %v5894_v4  ;;  %v7847_v4 = vsel %vm6720_vm4, %v4027_v36, %v4028_v52  ;;  %v5784_v28 = vrot.slane %v5756_v59, 9  ;;  %v4034_v6 = vrot.slane %v4032_v5, 4  ;;  %v4601_v19 = vrot.slane %v5855_v27, 6  ;;  %v5761_v52 = vld [vmem:[%s6685_s13 + $0xbc] sm:$0x1] }
 0x10f   : > { %6330 = vmatmul.mubr.msk.bf16.gmra.mxu1 %vm432_vm1, %v8589_v60  ;;  %v7838_v33 = vadd.f32 %v1676_v1, %v1220_v39  ;;  %v1225_v35 = vadd.f32 %v6127_v58, %v7469_v11  ;;  %v1689_v31 = vpop.f32.mrf.mxu0  ;;  %v4035_v11 = vrot.slane %v5758_v38, 5  ;;  %v5881_v1 = vrot.slane %v5853_v14, 10  ;;  %v5856_v39 = vld [vmem:[%s6685_s13 + $0xb4] sm:$0xc]  ;;  %v5762_v58 = vld [vmem:[%s6685_s13 + $0xc0] sm:$0xe] }
 0x110   : > { %6333 = vmatprep.mubr.msk.bf16.mxu1 %vm432_vm1, %v5797_v17  ;;  %v1120_v41 = vpop.f32.mrf.mxu1  ;;  %v4600_v36 = vrot.slane %v4598_v47, 4  ;;  %v4039_v59 = vrot.slane %v7836_v20, 5  ;;  %v7866_v38 = vsel %vm6735_vm6, %v4593_v56, %v4594_v46  ;;  %v7875_v20 = vsel %vm6720_vm4, %v5784_v28, %v4032_v5 }
 0x111   : > { %v7856_v29 = vadd.f32 %v6161_v2, %v1225_v35  ;;  %v1223_v16 = vadd.f32 %v1120_v41, %v7492_v48  ;;  %v6162_v17 = vpop.f32.mrf.mxu0  ;;  %v4605_v48 = vrot.slane %v7850_v49, 6  ;;  %v4046_v2 = vrot.slane %v7853_v45, 5  ;;  %v5858_v41 = vld [vmem:[%s6685_s13 + $0xbc] sm:$0x3]  ;;  %v7889_v45 = vld [vmem:[%s6685_s13 + $0xc4] sm:$0xf] }
 0x112   : > { %v6128_v62 = vpop.f32.mrf.mxu1  ;;  %v5785_v35 = vrot.slane %v5759_v34, 9  ;;  %v7881_v56 = vsel %vm6720_vm4, %v4034_v6, %v4035_v11  ;;  %v7885_v46 = vsel %vm6735_vm6, %v5881_v1, %v4598_v47  ;;  %v5882_v49 = vrot.slane %v5856_v39, 10 }
 0x113   : > { %v7870_v14 = vadd.f32 %v1689_v31, %v1223_v16  ;;  %v1226_v27 = vadd.f32 %v6128_v62, %v7524_v8  ;;  %v1692_v60 = vpop.f32.mrf.mxu0  ;;  %v4042_v31 = vrot.slane %v5761_v52, 5  ;;  %v5764_v8 = vld [vmem:[%s6685_s13 + $0xc8] sm:$0x1]  ;;  %v4602_v47 = vsel %vm6735_vm6, %v4600_v36, %v4601_v19 }
 0x114   : > { %v1123_v25 = vpop.f32.mrf.mxu1  ;;  %v4041_v6 = vrot.slane %v4039_v59, 4  ;;  %v5786_v1 = vrot.slane %v5762_v58, 9  ;;  %v4048_v37 = vrot.slane %v4046_v2, 4  ;;  %v8590_v19 = vcombine.low %v7773_v13, %v7781_v10 }
 0x115   : > { %v7891_v16 = vadd.f32 %v6162_v17, %v1226_v27  ;;  %v1224_v5 = vadd.f32 %v1123_v25, %v7550_v30  ;;  %v6165_v28 = vpop.f32.mrf.mxu0  ;;  %6368 = vmatmul.mubr.msk.bf16.gmra.mxu0 %vm432_vm1, %v5895_v57  ;;  %v4607_v30 = vrot.slane %v4605_v48, 4  ;;  %v4608_v25 = vrot.slane %v5858_v41, 6 }
 0x116   : > { %v6131_v11 = vpop.f32.mrf.mxu1  ;;  %6371 = vmatprep.mubr.msk.bf16.mxu0 %vm432_vm1, %v5896_v53  ;;  %v4049_v21 = vrot.slane %v5764_v8, 5  ;;  %v4612_v53 = vrot.slane %v7889_v45, 6  ;;  %v5897_v36 = vcombine.low %v7833_v51, %v7866_v38  ;;  %v5898_v52 = vcombine.low %v7885_v46, %v4602_v47  ;;  %v7936_v38 = vld [vmem:[%s6685_s13 + $0xd0] sm:$0xf]  ;;  %v7958_v8 = vld [vmem:[%s6685_s13 + $0xdc] sm:$0xf] }
 0x117   : > { %6334 = vmatmul.mubr.msk.bf16.gmra.mxu1 %vm432_vm1, %v5798_v15  ;;  %v7905_v0 = vadd.f32 %v1692_v60, %v1224_v5  ;;  %v1229_v57 = vadd.f32 %v6131_v11, %v7579_v26  ;;  %v1705_v34 = vpop.f32.mrf.mxu0  ;;  %v5861_v15 = vld [vmem:[%s6685_s13 + $0xc8] sm:$0x3]  ;;  %v5801_v26 = vcombine.low %v7875_v20, %v7881_v56  ;;  %v7922_v13 = vsel %vm6720_vm4, %v5785_v35, %v4039_v59  ;;  %v7947_v35 = vld [vmem:[%s6685_s13 + $0xd0] sm:$0xf]  ;;  %v5767_v5 = vld [vmem:[%s6685_s13 + $0xd4] sm:$0x1] }
 0x118   : > { %6337 = vmatprep.mubr.msk.bf16.mxu1 %vm432_vm1, %v8590_v19  ;;  %v1136_v17 = vpop.f32.mrf.mxu1  ;;  %v7929_v58 = vsel %vm6720_vm4, %v4041_v6, %v4042_v31  ;;  %v7933_v51 = vsel %vm6735_vm6, %v5882_v49, %v4605_v48  ;;  %v7940_v27 = vsel %vm6735_vm6, %v4607_v30, %v4608_v25  ;;  %v5883_v60 = vrot.slane %v5859_v42, 10  ;;  %v5765_v49 = vld [vmem:[%s6685_s13 + $0xcc] sm:$0xe]  ;;  %v5768_v42 = vld [vmem:[%s6685_s13 + $0xd8] sm:$0xe] }
 0x119   : > { %v7924_v10 = vadd.f32 %v6165_v28, %v1229_v57  ;;  %v1227_v39 = vadd.f32 %v1136_v17, %v7600_v3  ;;  %v6166_v62 = vpop.f32.mrf.mxu0  ;;  %v7944_v3 = vsel %vm6720_vm4, %v5786_v1, %v4046_v2  ;;  %v4615_v20 = vrot.slane %v5861_v15, 6  ;;  %v5862_v25 = vld [vmem:[%s6685_s13 + $0xcc] sm:$0xc]  ;;  %v5864_v1 = vld [vmem:[%s6685_s13 + $0xd4] sm:$0x3] }
 0x11a   : > { %v6132_v59 = vpop.f32.mrf.mxu1  ;;  %v7954_v46 = vsel %vm6720_vm4, %v4048_v37, %v4049_v21  ;;  %v4614_v31 = vrot.slane %v4612_v53, 4  ;;  %v5802_v45 = vcombine.low %v7922_v13, %v7929_v58  ;;  %v4053_v28 = vrot.slane %v7936_v38, 5  ;;  %v5865_v13 = vld [vmem:[%s6685_s13 + $0xd8] sm:$0xc] }
 0x11b   : > { %v7949_v41 = vadd.f32 %v1705_v34, %v1227_v39  ;;  %v1230_v48 = vadd.f32 %v6132_v59, %v7606_v43  ;;  %v1708_v56 = vpop.f32.mrf.mxu0  ;;  %v7965_v43 = vld [vmem:[%s6685_s13 + $0xdc] sm:$0xf]  ;;  %v5899_v30 = vcombine.low %v7933_v51, %v7940_v27  ;;  %v4619_v37 = vrot.slane %v7947_v35, 6  ;;  %v5867_v59 = vld [vmem:[%s6685_s13 + $0xe0] sm:$0x3] }
 0x11c   : > { %v1139_v2 = vpop.f32.mrf.mxu1  ;;  %v8591_v34 = vcombine.low %v7829_v22, %v7847_v4  ;;  %v4613_v19 = vsel %vm6735_vm6, %v5883_v60, %v4612_v53  ;;  %v5787_v21 = vrot.slane %v5765_v49, 9  ;;  %v4060_v15 = vrot.slane %v7958_v8, 5 }
 0x11d   : > { %v7967_v47 = vadd.f32 %v6166_v62, %v1230_v48  ;;  %v1228_v6 = vadd.f32 %v1139_v2, %v7627_v7  ;;  %v6169_v11 = vpop.f32.mrf.mxu0  ;;  %6372 = vmatmul.mubr.msk.bf16.gmra.mxu0 %vm432_vm1, %v5897_v36  ;;  %v5803_v7 = vcombine.low %v7944_v3, %v7954_v46  ;;  %v4616_v4 = vsel %vm6735_vm6, %v4614_v31, %v4615_v20 }
 0x11e   : > { %v6135_v57 = vpop.f32.mrf.mxu1  ;;  %6375 = vmatprep.mubr.msk.bf16.mxu0 %vm432_vm1, %v5898_v52  ;;  %v5770_v52 = vld [vmem:[%s6685_s13 + $0xe0] sm:$0x1]  ;;  %v4626_v39 = vrot.slane %v7965_v43, 6  ;;  %v4055_v62 = vrot.slane %v4053_v28, 4  ;;  %v4056_v58 = vrot.slane %v5767_v5, 5  ;;  %v5884_v51 = vrot.slane %v5862_v25, 10 }
 0x11f   : > { %6338 = vmatmul.mubr.msk.bf16.gmra.mxu1 %vm432_vm1, %v8591_v34  ;;  %v7987_v17 = vadd.f32 %v1708_v56, %v1228_v6  ;;  %v1233_v36 = vadd.f32 %v6135_v57, %v7335_v63  ;;  %v1721_v22 = vpop.f32.mrf.mxu0  ;;  %v4622_v38 = vrot.slane %v5864_v1, 6  ;;  %v4621_v3 = vrot.slane %v4619_v37, 4  ;;  %v5772_v43 = vld [vmem:[%s6685_s13 + $0xe8] sm:$0xf] }
 0x120   : > { %6341 = vmatprep.mubr.msk.bf16.mxu1 %vm432_vm1, %v5801_v26  ;;  %v1152_v53 = vpop.f32.mrf.mxu1  ;;  %v5788_v60 = vrot.slane %v5768_v42, 9  ;;  %v5900_v35 = vcombine.low %v4613_v19, %v4616_v4  ;;  %v4062_v48 = vrot.slane %v4060_v15, 4  ;;  %v4063_v56 = vrot.slane %v5770_v52, 5  ;;  %v5869_v6 = vld [vmem:[%s6685_s13 + $0xe8] sm:$0xf] }
 0x121   : > { %v7997_v27 = vadd.f32 %v6169_v11, %v1233_v36  ;;  %v1231_v63 = vadd.f32 %v1152_v53, %v7354_v9  ;;  %v6170_v26 = vpop.f32.mrf.mxu0  ;;  %v5885_v46 = vrot.slane %v5865_v13, 10  ;;  %v4628_v2 = vrot.slane %v4626_v39, 4  ;;  %v5868_v52 = vld [vmem:[%s6685_s13 + $0xe4] sm:$0xc]  ;;  %v5870_v13 = vld [vmem:[%s6685_s13 + $0xec] sm:$0x3] }
 0x122   : > { %v6136_v20 = vpop.f32.mrf.mxu1  ;;  %v4629_v5 = vrot.slane %v5867_v59, 6  ;;  %v4054_v9 = vsel %vm6720_vm4, %v5787_v21, %v4053_v28  ;;  %v4057_v25 = vsel %vm6720_vm4, %v4055_v62, %v4056_v58  ;;  %v4623_v19 = vsel %vm6735_vm6, %v4621_v3, %v4622_v38  ;;  %v8592_v59 = vld [vmem:[#allocation6_spill] sm:$0xff] }
 0x123   : > { %v8000_v31 = vadd.f32 %v1721_v22, %v1231_v63  ;;  %v1234_v49 = vadd.f32 %v6136_v20, %v7371_v23  ;;  %v1724_v8 = vpop.f32.mrf.mxu0  ;;  %v4620_v23 = vsel %vm6735_vm6, %v5884_v51, %v4619_v37  ;;  %v4061_v28 = vsel %vm6720_vm4, %v5788_v60, %v4060_v15  ;;  %v5773_v51 = vld [vmem:[%s6685_s13 + $0xec] sm:$0x1] }
 0x124   : > { %v1155_v11 = vpop.f32.mrf.mxu1  ;;  %v4067_v21 = vrot.slane %v5772_v43, 5  ;;  %v4633_v37 = vrot.slane %v5869_v6, 6  ;;  %v4630_v15 = vsel %vm6735_vm6, %v4628_v2, %v4629_v5  ;;  %v5804_v62 = vcombine.low %v4054_v9, %v4057_v25  ;;  %v8594_v6 = vld [vmem:[#allocation8_spill] sm:$0xff] }
 0x125   : > { %v8009_v1 = vadd.f32 %v6170_v26, %v1234_v49  ;;  %v1232_v57 = vadd.f32 %v1155_v11, %v7385_v40  ;;  %v6173_v34 = vpop.f32.mrf.mxu0  ;;  %6376 = vmatmul.mubr.msk.bf16.gmra.mxu0 %vm432_vm1, %v5899_v30  ;;  %v4064_v40 = vsel %vm6720_vm4, %v4062_v48, %v4063_v56  ;;  %v5771_v30 = vld [vmem:[%s6685_s13 + $0xe4] sm:$0xe]  ;;  %v5901_v58 = vcombine.low %v4620_v23, %v4623_v19  ;;  %v8593_v56 = vld [vmem:[#allocation7_spill] sm:$0xff]  ;;  %v8595_v19 = vld [vmem:[#allocation9_spill] sm:$0xff] }
 0x126   : > { %v6139_v42 = vpop.f32.mrf.mxu1  ;;  %6379 = vmatprep.mubr.msk.bf16.mxu0 %vm432_vm1, %v5900_v35  ;;  %v5805_v26 = vcombine.low %v4061_v28, %v4064_v40  ;;  %v5789_v3 = vrot.slane %v5771_v30, 9  ;;  %v5886_v20 = vrot.slane %v5868_v52, 10  ;;  %v4636_v35 = vrot.slane %v5870_v13, 6 }
 0x127   : > { %6342 = vmatmul.mubr.msk.bf16.gmra.mxu1 %vm432_vm1, %v5802_v45  ;;  %v8024_v36 = vadd.f32 %v1724_v8, %v1232_v57  ;;  %v1237_v22 = vadd.f32 %v6139_v42, %v7404_v44  ;;  %v1737_v4 = vpop.f32.mrf.mxu0  ;;  %v4627_v45 = vsel %vm6735_vm6, %v5885_v46, %v4626_v39  ;;  %v4635_v39 = vrot.slane %v4633_v37, 4 }
 0x128   : > { %6345 = vmatprep.mubr.msk.bf16.mxu1 %vm432_vm1, %v5803_v7  ;;  %v1168_v53 = vpop.f32.mrf.mxu1  ;;  %v5902_v60 = vcombine.low %v4627_v45, %v4630_v15  ;;  %v4069_v8 = vrot.slane %v4067_v21, 4  ;;  %v4070_v2 = vrot.slane %v5773_v51, 5  ;;  %v4634_v57 = vsel %vm6735_vm6, %v5886_v20, %v4633_v37  ;;  %v8596_v37 = vld [vmem:[#allocation10_spill] sm:$0xff] }
 0x129   : > { %v8035_v38 = vadd.f32 %v6173_v34, %v1237_v22  ;;  %v1235_v63 = vadd.f32 %v1168_v53, %v8592_v59  ;;  %v6174_v44 = vpop.f32.mrf.mxu0  ;;  %v4637_v34 = vsel %vm6735_vm6, %v4635_v39, %v4636_v35  ;;  %v4068_v40 = vsel %vm6720_vm4, %v5789_v3, %v4067_v21  ;;  %v8598_v21 = vld [vmem:[#allocation12_spill] sm:$0xff] }
 0x12a   : > { %v6140_v7 = vpop.f32.mrf.mxu1  ;;  %v4071_v30 = vsel %vm6720_vm4, %v4069_v8, %v4070_v2  ;;  %v5903_v15 = vcombine.low %v4634_v57, %v4637_v34  ;;  %v8602_v57 = vld [vmem:[#allocation16_spill] sm:$0xff] }
 0x12b   : > { %v8038_v48 = vadd.f32 %v1737_v4, %v1235_v63  ;;  %v1238_v46 = vadd.f32 %v6140_v7, %v8593_v56  ;;  %v1740_v49 = vpop.f32.mrf.mxu0  ;;  %v5806_v13 = vcombine.low %v4068_v40, %v4071_v30  ;;  %v8599_v7 = vld [vmem:[#allocation13_spill] sm:$0xff]  ;;  %v8600_v56 = vld [vmem:[#allocation14_spill] sm:$0xff] }
 0x12c   : > { %v1171_v5 = vpop.f32.mrf.mxu1  ;;  %v8603_v40 = vld [vmem:[#allocation17_spill] sm:$0xff] }
 0x12d   : > { %v8041_v43 = vadd.f32 %v6174_v44, %v1238_v46  ;;  %v1236_v11 = vadd.f32 %v1171_v5, %v8594_v6  ;;  %v6177_v9 = vpop.f32.mrf.mxu0  ;;  %6380 = vmatmul.mubr.msk.bf16.gmra.mxu0 %vm432_vm1, %v5901_v58  ;;  %v8601_v5 = vld [vmem:[#allocation15_spill] sm:$0xff] }
 0x12e   : > { %v6143_v25 = vpop.f32.mrf.mxu1  ;;  %6383 = vmatprep.mubr.msk.bf16.mxu0 %vm432_vm1, %v5902_v60 }
 0x12f   : > { %6346 = vmatmul.mubr.msk.bf16.gmra.mxu1 %vm432_vm1, %v5804_v62  ;;  %v8051_v23 = vadd.f32 %v1740_v49, %v1236_v11  ;;  %v1241_v42 = vadd.f32 %v6143_v25, %v8595_v19  ;;  %v1753_v28 = vpop.f32.mrf.mxu0  ;;  %v8597_v62 = vld [vmem:[#allocation11_spill] sm:$0xff] }
 0x130   : > { %6349 = vmatprep.mubr.msk.bf16.mxu1 %vm432_vm1, %v5805_v26  ;;  %v1184_v22 = vpop.f32.mrf.mxu1 }
 0x131   : > { %v8059_v4 = vadd.f32 %v6177_v9, %v1241_v42  ;;  %v1239_v45 = vadd.f32 %v1184_v22, %v8596_v37  ;;  %v6178_v32 = vpop.f32.mrf.mxu0 }
 0x132   : > { %v6144_v52 = vpop.f32.mrf.mxu1 }
 0x133   : > { %v8062_v53 = vadd.f32 %v1753_v28, %v1239_v45  ;;  %v1242_v58 = vadd.f32 %v6144_v52, %v8597_v62  ;;  %v1756_v51 = vpop.f32.mrf.mxu0 }
 0x134   : > { %v1187_v59 = vpop.f32.mrf.mxu1 }
 0x135   : > { %v8065_v63 = vadd.f32 %v6178_v32, %v1242_v58  ;;  %v1240_v18 = vadd.f32 %v1187_v59, %v8598_v21  ;;  %v6181_v44 = vpop.f32.mrf.mxu0  ;;  %6384 = vmatmul.mubr.msk.bf16.gmra.mxu0 %vm432_vm1, %v5903_v15 }
 0x136   : > { %v6147_v26 = vpop.f32.mrf.mxu1 }
 0x137   : > { %6350 = vmatmul.mubr.msk.bf16.gmra.mxu1 %vm432_vm1, %v5806_v13  ;;  %v8070_v3 = vadd.f32 %v1756_v51, %v1240_v18  ;;  %v1245_v60 = vadd.f32 %v6147_v26, %v8599_v7  ;;  %v1769_v20 = vpop.f32.mrf.mxu0 }
 0x138   : > { %v1200_v39 = vpop.f32.mrf.mxu1 }
 0x139   : > { %v8073_v35 = vadd.f32 %v6181_v44, %v1245_v60  ;;  %v1243_v46 = vadd.f32 %v1200_v39, %v8600_v56  ;;  %v6182_v49 = vpop.f32.mrf.mxu0 }
 0x13a   : > { %v6148_v8 = vpop.f32.mrf.mxu1 }
 0x13b   : > { %v8076_v2 = vadd.f32 %v1769_v20, %v1243_v46  ;;  %v1246_v6 = vadd.f32 %v6148_v8, %v8601_v5  ;;  %v1772_v11 = vpop.f32.mrf.mxu0 }
 0x13c   : > { %v1203_v9 = vpop.f32.mrf.mxu1 }
 0x13d   : > { %v8079_v25 = vadd.f32 %v6182_v49, %v1246_v6  ;;  %v1244_v34 = vadd.f32 %v1203_v9, %v8602_v57  ;;  %v6221_v19 = vpop.f32.mrf.mxu0 }
 0x13e   : > { %v6187_v42 = vpop.f32.mrf.mxu1 }
 0x13f   : > { %v8082_v28 = vadd.f32 %v1772_v11, %v1244_v34  ;;  %v2212_v30 = vadd.f32 %v6187_v42, %v8603_v40  ;;  %v2649_v22 = vpop.f32.mrf.mxu0 }
 0x140   : > { %v2083_v37 = vpop.f32.mrf.mxu1 }
 0x141   : > { %v8085_v45 = vadd.f32 %v6221_v19, %v2212_v30  ;;  %v2210_v32 = vadd.f32 %v2083_v37, %v7727_v54  ;;  %v6222_v15 = vpop.f32.mrf.mxu0 }
 0x142   : > { %v6188_v52 = vpop.f32.mrf.mxu1 }
 0x143   : > { %v8088_v13 = vadd.f32 %v2649_v22, %v2210_v32  ;;  %v2213_v62 = vadd.f32 %v6188_v52, %v7734_v24  ;;  %v2652_v58 = vpop.f32.mrf.mxu0 }
 0x144   : > { %v2086_v51 = vpop.f32.mrf.mxu1 }
 0x145   : > { %v8091_v59 = vadd.f32 %v6222_v15, %v2213_v62  ;;  %v2211_v21 = vadd.f32 %v2086_v51, %v7748_v50  ;;  %v6225_v18 = vpop.f32.mrf.mxu0 }
 0x146   : > { %v6191_v44 = vpop.f32.mrf.mxu1 }
 0x147   : > { %v8094_v26 = vadd.f32 %v2652_v58, %v2211_v21  ;;  %v2216_v7 = vadd.f32 %v6191_v44, %v7776_v12  ;;  %v2665_v60 = vpop.f32.mrf.mxu0 }
 0x148   : > { %v2099_v54 = vpop.f32.mrf.mxu1 }
 0x149   : > { %v8097_v20 = vadd.f32 %v6225_v18, %v2216_v7  ;;  %v2214_v39 = vadd.f32 %v2099_v54, %v7797_v61  ;;  %v6226_v56 = vpop.f32.mrf.mxu0 }
 0x14a   : > { %v6192_v24 = vpop.f32.mrf.mxu1 }
 0x14b   : > { %v8100_v46 = vadd.f32 %v2665_v60, %v2214_v39  ;;  %v2217_v49 = vadd.f32 %v6192_v24, %v7810_v55  ;;  %v2668_v8 = vpop.f32.mrf.mxu0 }
 0x14c   : > { %v2102_v50 = vpop.f32.mrf.mxu1 }
 0x14d   : > { %v8103_v5 = vadd.f32 %v6226_v56, %v2217_v49  ;;  %v2215_v6 = vadd.f32 %v2102_v50, %v7838_v33  ;;  %v6229_v11 = vpop.f32.mrf.mxu0 }
 0x14e   : > { %v6195_v12 = vpop.f32.mrf.mxu1 }
 0x14f   : > { %v8106_v9 = vadd.f32 %v2668_v8, %v2215_v6  ;;  %v2220_v57 = vadd.f32 %v6195_v12, %v7856_v29  ;;  %v2681_v34 = vpop.f32.mrf.mxu0 }
 0x150   : > { %v2115_v61 = vpop.f32.mrf.mxu1 }
 0x151   : > { %v8109_v19 = vadd.f32 %v6229_v11, %v2220_v57  ;;  %v2218_v42 = vadd.f32 %v2115_v61, %v7870_v14  ;;  %v6230_v40 = vpop.f32.mrf.mxu0 }
 0x152   : > { %v6196_v55 = vpop.f32.mrf.mxu1 }
 0x153   : > { %v8112_v30 = vadd.f32 %v2681_v34, %v2218_v42  ;;  %v2221_v22 = vadd.f32 %v6196_v55, %v7891_v16  ;;  %v2684_v37 = vpop.f32.mrf.mxu0 }
 0x154   : > { %v2118_v33 = vpop.f32.mrf.mxu1 }
 0x155   : > { %v8115_v32 = vadd.f32 %v6230_v40, %v2221_v22  ;;  %v2219_v15 = vadd.f32 %v2118_v33, %v7905_v0  ;;  %v6233_v52 = vpop.f32.mrf.mxu0 }
 0x156   : > { %v6199_v29 = vpop.f32.mrf.mxu1 }
 0x157   : > { %v8118_v62 = vadd.f32 %v2684_v37, %v2219_v15  ;;  %v2224_v58 = vadd.f32 %v6199_v29, %v7924_v10  ;;  %v2697_v51 = vpop.f32.mrf.mxu0 }
 0x158   : > { %v2131_v14 = vpop.f32.mrf.mxu1 }
 0x159   : > { %v8121_v21 = vadd.f32 %v6233_v52, %v2224_v58  ;;  %v2222_v18 = vadd.f32 %v2131_v14, %v7949_v41  ;;  %v6234_v44 = vpop.f32.mrf.mxu0 }
 0x15a   : > { %v6200_v16 = vpop.f32.mrf.mxu1 }
 0x15b   : > { %v8124_v7 = vadd.f32 %v2697_v51, %v2222_v18  ;;  %v2225_v60 = vadd.f32 %v6200_v16, %v7967_v47  ;;  %v2700_v54 = vpop.f32.mrf.mxu0 }
 0x15c   : > { %v2134_v0 = vpop.f32.mrf.mxu1 }
 0x15d   : > { %v8127_v39 = vadd.f32 %v6234_v44, %v2225_v60  ;;  %v2223_v56 = vadd.f32 %v2134_v0, %v7987_v17  ;;  %v6237_v24 = vpop.f32.mrf.mxu0 }
 0x15e   : > { %v6203_v10 = vpop.f32.mrf.mxu1 }
 0x15f   : > { %v8130_v49 = vadd.f32 %v2700_v54, %v2223_v56  ;;  %v2228_v8 = vadd.f32 %v6203_v10, %v7997_v27  ;;  %v2713_v50 = vpop.f32.mrf.mxu0 }
 0x160   : > { %v2147_v41 = vpop.f32.mrf.mxu1 }
 0x161   : > { %v8133_v6 = vadd.f32 %v6237_v24, %v2228_v8  ;;  %v2226_v11 = vadd.f32 %v2147_v41, %v8000_v31  ;;  %v6238_v12 = vpop.f32.mrf.mxu0 }
 0x162   : > { %v6204_v47 = vpop.f32.mrf.mxu1 }
 0x163   : > { %v8136_v57 = vadd.f32 %v2713_v50, %v2226_v11  ;;  %v2229_v34 = vadd.f32 %v6204_v47, %v8009_v1  ;;  %v2716_v61 = vpop.f32.mrf.mxu0 }
 0x164   : > { %v2150_v17 = vpop.f32.mrf.mxu1 }
 0x165   : > { %v8139_v42 = vadd.f32 %v6238_v12, %v2229_v34  ;;  %v2227_v40 = vadd.f32 %v2150_v17, %v8024_v36  ;;  %v6241_v55 = vpop.f32.mrf.mxu0 }
 0x166   : > { %v6207_v27 = vpop.f32.mrf.mxu1 }
 0x167   : > { %8604 = vst [vmem:[#allocation6_spill] sm:$0xff] %v8139_v42  ;;  %v8142_v22 = vadd.f32 %v2716_v61, %v2227_v40  ;;  %v2232_v37 = vadd.f32 %v6207_v27, %v8035_v38  ;;  %v2729_v33 = vpop.f32.mrf.mxu0 }
 0x168   : > { %v2163_v31 = vpop.f32.mrf.mxu1 }
 0x169   : > { %8605 = vst [vmem:[#allocation7_spill] sm:$0xff] %v8142_v22  ;;  %v8145_v15 = vadd.f32 %v6241_v55, %v2232_v37  ;;  %v2230_v52 = vadd.f32 %v2163_v31, %v8038_v48  ;;  %v6242_v29 = vpop.f32.mrf.mxu0 }
 0x16a   : > { %v6208_v1 = vpop.f32.mrf.mxu1 }
 0x16b   : > { %8606 = vst [vmem:[#allocation8_spill] sm:$0xff] %v8145_v15  ;;  %v8148_v58 = vadd.f32 %v2729_v33, %v2230_v52  ;;  %v2233_v51 = vadd.f32 %v6208_v1, %v8041_v43  ;;  %v2732_v14 = vpop.f32.mrf.mxu0 }
 0x16c   : > { %v2166_v36 = vpop.f32.mrf.mxu1 }
 0x16d   : > { %8607 = vst [vmem:[#allocation9_spill] sm:$0xff] %v8148_v58  ;;  %v8151_v18 = vadd.f32 %v6242_v29, %v2233_v51  ;;  %v2231_v44 = vadd.f32 %v2166_v36, %v8051_v23  ;;  %v6245_v16 = vpop.f32.mrf.mxu0 }
 0x16e   : > { %v6211_v38 = vpop.f32.mrf.mxu1 }
 0x16f   : > { %8608 = vst [vmem:[#allocation10_spill] sm:$0xff] %v8151_v18  ;;  %v8154_v60 = vadd.f32 %v2732_v14, %v2231_v44  ;;  %v2236_v54 = vadd.f32 %v6211_v38, %v8059_v4  ;;  %v2745_v0 = vpop.f32.mrf.mxu0 }
 0x170   : > { %v2179_v48 = vpop.f32.mrf.mxu1 }
 0x171   : > { %8609 = vst [vmem:[#allocation11_spill] sm:$0xff] %v8154_v60  ;;  %v8157_v56 = vadd.f32 %v6245_v16, %v2236_v54  ;;  %v2234_v24 = vadd.f32 %v2179_v48, %v8062_v53  ;;  %v6246_v10 = vpop.f32.mrf.mxu0 }
 0x172   : > { %v6212_v43 = vpop.f32.mrf.mxu1 }
 0x173   : > { %8610 = vst [vmem:[#allocation12_spill] sm:$0xff] %v8157_v56  ;;  %v8160_v8 = vadd.f32 %v2745_v0, %v2234_v24  ;;  %v2237_v50 = vadd.f32 %v6212_v43, %v8065_v63  ;;  %v2748_v41 = vpop.f32.mrf.mxu0 }
 0x174   : > { %v2182_v23 = vpop.f32.mrf.mxu1 }
 0x175   : > { %8611 = vst [vmem:[#allocation13_spill] sm:$0xff] %v8160_v8  ;;  %v8163_v11 = vadd.f32 %v6246_v10, %v2237_v50  ;;  %v2235_v12 = vadd.f32 %v2182_v23, %v8070_v3  ;;  %v6249_v47 = vpop.f32.mrf.mxu0 }
 0x176   : > { %v6215_v4 = vpop.f32.mrf.mxu1 }
 0x177   : > { %8612 = vst [vmem:[#allocation14_spill] sm:$0xff] %v8163_v11  ;;  %v8166_v34 = vadd.f32 %v2748_v41, %v2235_v12  ;;  %v2240_v61 = vadd.f32 %v6215_v4, %v8073_v35  ;;  %v2761_v17 = vpop.f32.mrf.mxu0 }
 0x178   : > { %v2195_v53 = vpop.f32.mrf.mxu1 }
 0x179   : > { %8613 = vst [vmem:[#allocation15_spill] sm:$0xff] %v8166_v34  ;;  %v8169_v40 = vadd.f32 %v6249_v47, %v2240_v61  ;;  %v2238_v55 = vadd.f32 %v2195_v53, %v8076_v2  ;;  %v6250_v27 = vpop.f32.mrf.mxu0 }
 0x17a   : > { %v6216_v63 = vpop.f32.mrf.mxu1 }
 0x17b   : > { %8614 = vst [vmem:[#allocation16_spill] sm:$0xff] %v8169_v40  ;;  %v8172_v37 = vadd.f32 %v2761_v17, %v2238_v55  ;;  %v2241_v33 = vadd.f32 %v6216_v63, %v8079_v25  ;;  %v2764_v31 = vpop.f32.mrf.mxu0 }
 0x17c   : > { %v2198_v3 = vpop.f32.mrf.mxu1 }
 0x17d   : > { %8615 = vst [vmem:[#allocation17_spill] sm:$0xff] %v8172_v37  ;;  %v8175_v52 = vadd.f32 %v6250_v27, %v2241_v33  ;;  %v2239_v29 = vadd.f32 %v2198_v3, %v8082_v28  ;;  %v8178_v1 = vpop.f32.mrf.mxu0 }
 0x17e   : > { %v6255_v35 = vpop.f32.mrf.mxu1 }
 0x17f   : > { %8616 = vst [vmem:[#allocation18_spill] sm:$0xff] %v8175_v52  ;;  %v8180_v51 = vadd.f32 %v2764_v31, %v2239_v29  ;;  %v8182_v14 = vpop.f32.mrf.mxu0 }
 0x180   : > { %v3215_v2 = vpop.f32.mrf.mxu1 }
 0x181   : > { %8617 = vst [vmem:[#allocation19_spill] sm:$0xff] %v8180_v51  ;;  %v8184_v36 = vpop.f32.mrf.mxu0 }
 0x182   : > { %v6256_v44 = vpop.f32.mrf.mxu1 }
 0x183   : > { %v8186_v16 = vpop.f32.mrf.mxu0 }
 0x184   : > { %v8188_v25 = vpop.f32.mrf.mxu1 }
 0x185   : > { %v8190_v38 = vpop.f32.mrf.mxu0 }
 0x186   : > { %v8192_v54 = vpop.f32.mrf.mxu1 }
 0x187   : > { %v8194_v28 = vpop.f32.mrf.mxu0 }
 0x188   : > { %v8196_v0 = vpop.f32.mrf.mxu1 }
 0x189   : > { %v8198_v48 = vpop.f32.mrf.mxu0 }
 0x18a   : > { %v8200_v24 = vpop.f32.mrf.mxu1 }
 0x18b   : > { %v8202_v10 = vpop.f32.mrf.mxu0 }
 0x18c   : > { %v8204_v43 = vpop.f32.mrf.mxu1 }
 0x18d   : > { %v8206_v50 = vpop.f32.mrf.mxu0 }
 0x18e   : > { %v8208_v41 = vpop.f32.mrf.mxu1 }
 0x18f   : > { %v8210_v23 = vpop.f32.mrf.mxu0 }
 0x190   : > { %v8212_v12 = vpop.f32.mrf.mxu1 }
 0x191   : > { %v8214_v47 = vpop.f32.mrf.mxu0 }
 0x192   : > { %v8216_v4 = vpop.f32.mrf.mxu1 }
 0x193   : > { %v8218_v61 = vpop.f32.mrf.mxu0 }
 0x194   : > { %v8220_v17 = vpop.f32.mrf.mxu1 }
 0x195   : > { %v8222_v53 = vpop.f32.mrf.mxu0 }
 0x196   : > { %v8224_v55 = vpop.f32.mrf.mxu1 }
 0x197   : > { %v8226_v27 = vpop.f32.mrf.mxu0 }
 0x198   : > { %v8228_v63 = vpop.f32.mrf.mxu1 }
 0x199   : > { %v8230_v33 = vpop.f32.mrf.mxu0 }
 0x19a   : > { %v8232_v31 = vpop.f32.mrf.mxu1 }
 0x19b   : > { %v8234_v3 = vpop.f32.mrf.mxu0 }
 0x19c   : > { %v8236_v29 = vpop.f32.mrf.mxu1 }
 0x19d   : > { %v8238_v51 = vpop.f32.mrf.mxu0 }
 0x19e   : > { %v8240_v52 = vpop.f32.mrf.mxu1 }
 0x19f   : > { %v8242_v37 = vpop.f32.mrf.mxu0 }
 0x1a0   : > { %8618 = vst [vmem:[#allocation20_spill] sm:$0xff] %v8242_v37  ;;  %v8244_v40 = vpop.f32.mrf.mxu1 }
 0x1a1   : > { %v8246_v34 = vpop.f32.mrf.mxu0 }
 0x1a2   : > { %8619 = vst [vmem:[#allocation21_spill] sm:$0xff] %v8246_v34  ;;  %v8248_v11 = vpop.f32.mrf.mxu1 }
 0x1a3   : > { %8620 = vst [vmem:[#allocation22_spill] sm:$0xff] %v8248_v11  ;;  %v8250_v8 = vpop.f32.mrf.mxu0 }
 0x1a4   : > { %8621 = vst [vmem:[#allocation23_spill] sm:$0xff] %v8250_v8  ;;  %v8252_v56 = vpop.f32.mrf.mxu1 }
 0x1a5   : > { %8622 = vst [vmem:[#allocation24_spill] sm:$0xff] %v8252_v56  ;;  %v8254_v60 = vpop.f32.mrf.mxu0 }
 0x1a6   : > { %8623 = vst [vmem:[#allocation25_spill] sm:$0xff] %v8254_v60  ;;  %v8256_v18 = vpop.f32.mrf.mxu1 }
 0x1a7   : > { %8624 = vst [vmem:[#allocation26_spill] sm:$0xff] %v8256_v18  ;;  %v8258_v58 = vpop.f32.mrf.mxu0 }
 0x1a8   : > { %8625 = vst [vmem:[#allocation27_spill] sm:$0xff] %v8258_v58  ;;  %v8260_v15 = vpop.f32.mrf.mxu1 }
 0x1a9   : > { %8626 = vst [vmem:[#allocation28_spill] sm:$0xff] %v8260_v15  ;;  %v8262_v22 = vpop.f32.mrf.mxu0 }
 0x1aa   : > { %8627 = vst [vmem:[#allocation29_spill] sm:$0xff] %v8262_v22  ;;  %v8264_v37 = vpop.f32.mrf.mxu1 }
 0x1ab   : > { %8628 = vst [vmem:[#allocation30_spill] sm:$0xff] %v8264_v37  ;;  %v8266_v42 = vpop.f32.mrf.mxu0 }
 0x1ac   : > { %8629 = vst [vmem:[#allocation31_spill] sm:$0xff] %v8266_v42  ;;  %v8268_v34 = vpop.f32.mrf.mxu1 }
 0x1ad   : > { %8630 = vst [vmem:[#allocation32_spill] sm:$0xff] %v8268_v34  ;;  %v8270_v11 = vpop.f32.mrf.mxu0 }
 0x1ae   : > { %8631 = vst [vmem:[#allocation33_spill] sm:$0xff] %v8270_v11  ;;  %v8272_v8 = vpop.f32.mrf.mxu1 }
 0x1af   : > { %8632 = vst [vmem:[#allocation34_spill] sm:$0xff] %v8272_v8  ;;  %v8274_v56 = vpop.f32.mrf.mxu0 }
 0x1b0   : > { %8633 = vst [vmem:[#allocation35_spill] sm:$0xff] %v8274_v56  ;;  %v8276_v60 = vpop.f32.mrf.mxu1  ;;  %v3344_v56 = vadd.f32 %v6255_v35, %v8085_v45  ;;  %v3343_v45 = vadd.f32 %v8188_v25, %v8094_v26  ;;  %v3346_v26 = vadd.f32 %v8196_v0, %v8100_v46 }
 0x1b1   : > { %8634 = vst [vmem:[#allocation36_spill] sm:$0xff] %v8276_v60  ;;  %v8278_v18 = vpop.f32.mrf.mxu0 }
 0x1b2   : > { %8635 = vst [vmem:[#allocation37_spill] sm:$0xff] %v8278_v18  ;;  %v8280_v58 = vpop.f32.mrf.mxu1 }
 0x1b3   : > { %8636 = vst [vmem:[#allocation38_spill] sm:$0xff] %v8280_v58  ;;  %v8282_v15 = vpop.f32.mrf.mxu0  ;;  %v3342_v58 = vadd.f32 %v3215_v2, %v8088_v13  ;;  %v8313_v13 = vld [vmem:[%s8564_s2] ss:$0 sm:$0xff] }
 0x1b4   : > { %8637 = vst [vmem:[#allocation39_spill] sm:$0xff] %v8282_v15  ;;  %v8284_v22 = vpop.f32.mrf.mxu1 }
 0x1b5   : > { %8638 = vst [vmem:[#allocation40_spill] sm:$0xff] %v8284_v22  ;;  %v8286_v37 = vpop.f32.mrf.mxu0 }
 0x1b6   : > { %8639 = vst [vmem:[#allocation41_spill] sm:$0xff] %v8286_v37  ;;  %v8288_v42 = vpop.f32.mrf.mxu1  ;;  %v3770_v37 = vadd.f32 %v8178_v1, %v3344_v56 }
 0x1b7   : > { %8640 = vst [vmem:[#allocation42_spill] sm:$0xff] %v8288_v42  ;;  %v8290_v34 = vpop.f32.mrf.mxu0  ;;  %v3345_v42 = vadd.f32 %v6256_v44, %v8091_v59 }
 0x1b8   : > { %8641 = vst [vmem:[#allocation43_spill] sm:$0xff] %v8290_v34  ;;  %v8292_v11 = vpop.f32.mrf.mxu1 }
 0x1b9   : > { %8642 = vst [vmem:[#allocation44_spill] sm:$0xff] %v8292_v11  ;;  %v8295_v60 = vpop.f32.mrf.mxu0  ;;  %v3768_v11 = vadd.f32 %v8182_v14, %v3342_v58  ;;  %v3771_v56 = vadd.f32 %v8184_v36, %v3345_v42  ;;  %v3348_v58 = vadd.f32 %v8192_v54, %v8097_v20  ;;  %v3769_v14 = vadd.f32 %v8186_v16, %v3343_v45 }
 0x1ba   : > { %8643 = vst [vmem:[#allocation45_spill] sm:$0xff] %v8295_v60  ;;  %v8297_v18 = vpop.f32.mrf.mxu1  ;;  %v3349_v20 = vadd.f32 %v8200_v24, %v8103_v5  ;;  %v3772_v45 = vadd.f32 %v8194_v28, %v3346_v26 }
 0x1bb   : > { %v8300_v15 = vpop.f32.mrf.mxu0  ;;  %v3774_v16 = vadd.f32 %v8190_v38, %v3348_v58 }
 0x1bc   : > { %v8302_v22 = vpop.f32.mrf.mxu1 }
 0x1bd   : > { %v6357_v34 = vpop.f32.mrf.mxu0 }
 0x1be   : > { %v6323_v8 = vpop.f32.mrf.mxu1 }
 0x1bf   : > { %v4336_v35 = vadd.f32 %v6323_v8, %v3770_v37  ;;  %v4773_v60 = vpop.f32.mrf.mxu0  ;;  %v8323_v8 = vld [vmem:[%s8565_s3] ss:$0 sm:$0xff] }
 0x1c0   : > { %v4207_v2 = vpop.f32.mrf.mxu1 }
 0x1c1   : > { %v4902_v59 = vadd.f32 %v6357_v34, %v4336_v35  ;;  %v4334_v1 = vadd.f32 %v4207_v2, %v3768_v11  ;;  %v6358_v44 = vpop.f32.mrf.mxu0 }
 0x1c2   : > { %v6324_v37 = vpop.f32.mrf.mxu1 }
 0x1c3   : > { %v5008_v42 = vmul.f32 %v8313_v13, %v4902_v59  ;;  %v4900_v11 = vadd.f32 %v4773_v60, %v4334_v1  ;;  %v4337_v34 = vadd.f32 %v6324_v37, %v3771_v56  ;;  %v4776_v36 = vpop.f32.mrf.mxu0  ;;  %v3347_v60 = vadd.f32 %v8204_v43, %v8106_v9 }
 0x1c4   : > { %v4210_v25 = vpop.f32.mrf.mxu1 }
 0x1c5   : > { %v5047_v46 = vadd.f32 %v8323_v8, %v5008_v42  ;;  %v5006_v54 = vmul.f32 %v8313_v13, %v4900_v11  ;;  %v4903_v0 = vadd.f32 %v6358_v44, %v4337_v34  ;;  %v4335_v35 = vadd.f32 %v4210_v25, %v3769_v14  ;;  %v6361_v2 = vpop.f32.mrf.mxu0 }
 0x1c6   : > { %v6327_v56 = vpop.f32.mrf.mxu1  ;;  %v3775_v42 = vadd.f32 %v8198_v48, %v3349_v20  ;;  %v3352_v44 = vadd.f32 %v8208_v41, %v8109_v19  ;;  %v3773_v48 = vadd.f32 %v8202_v10, %v3347_v60 }
 0x1c7   : > { %v5079_v59 = vmax.f32 %v5047_v46, 0.0  ;;  %v5045_v1 = vadd.f32 %v8323_v8, %v5006_v54  ;;  %v5009_v5 = vmul.f32 %v8313_v13, %v4903_v0  ;;  %v4901_v24 = vadd.f32 %v4776_v36, %v4335_v35  ;;  %v4789_v37 = vpop.f32.mrf.mxu0 }
 0x1c8   : > { %v4340_v14 = vadd.f32 %v6327_v56, %v3774_v16  ;;  %v4223_v38 = vpop.f32.mrf.mxu1  ;;  %v3778_v46 = vadd.f32 %v8206_v50, %v3352_v44  ;;  %v3350_v54 = vadd.f32 %v8212_v12, %v8112_v30  ;;  %v3353_v0 = vadd.f32 %v8216_v4, %v8115_v32 }
 0x1c9   : > { %5111 = vst [vmem:[%s8342_s22 + $0x10] sm:$0xff] %v5079_v59  ;;  %v5077_v9 = vmax.f32 %v5045_v1, 0.0  ;;  %v5048_v28 = vadd.f32 %v8323_v8, %v5009_v5  ;;  %v5007_v43 = vmul.f32 %v8313_v13, %v4901_v24  ;;  %v4338_v58 = vadd.f32 %v4223_v38, %v3772_v45  ;;  %v6362_v26 = vpop.f32.mrf.mxu0 }
 0x1ca   : > { %v4906_v11 = vadd.f32 %v6361_v2, %v4340_v14  ;;  %v6328_v34 = vpop.f32.mrf.mxu1  ;;  %v3351_v59 = vadd.f32 %v8220_v17, %v8118_v62  ;;  %v3776_v24 = vadd.f32 %v8210_v23, %v3350_v54  ;;  %v3356_v62 = vadd.f32 %v8224_v55, %v8121_v21 }
 0x1cb   : > { %5109 = vst [vmem:[%s8342_s22] sm:$0xff] %v5077_v9  ;;  %v5080_v19 = vmax.f32 %v5048_v28, 0.0  ;;  %v5046_v41 = vadd.f32 %v8323_v8, %v5007_v43  ;;  %v4904_v36 = vadd.f32 %v4789_v37, %v4338_v58  ;;  %v4341_v20 = vadd.f32 %v6328_v34, %v3775_v42  ;;  %v4792_v25 = vpop.f32.mrf.mxu0 }
 0x1cc   : > { %v5012_v10 = vmul.f32 %v8313_v13, %v4906_v11  ;;  %v4226_v35 = vpop.f32.mrf.mxu1  ;;  %v3779_v37 = vadd.f32 %v8214_v47, %v3353_v0  ;;  %v3777_v43 = vadd.f32 %v8218_v61, %v3351_v59  ;;  %v3354_v23 = vadd.f32 %v8228_v63, %v8124_v7 }
 0x1cd   : > { %5112 = vst [vmem:[%s8342_s22 + $0x18] sm:$0xff] %v5080_v19  ;;  %v5078_v2 = vmax.f32 %v5046_v41, 0.0  ;;  %v5010_v16 = vmul.f32 %v8313_v13, %v4904_v36  ;;  %v4907_v45 = vadd.f32 %v6362_v26, %v4341_v20  ;;  %v4339_v60 = vadd.f32 %v4226_v35, %v3773_v48  ;;  %v6365_v56 = vpop.f32.mrf.mxu0 }
 0x1ce   : > { %v5051_v50 = vadd.f32 %v8323_v8, %v5012_v10  ;;  %v3782_v34 = vadd.f32 %v8222_v53, %v3356_v62  ;;  %v3355_v54 = vadd.f32 %v8236_v29, %v8130_v49  ;;  %v8644_v62 = vld [vmem:[#allocation6_spill] sm:$0xff] }
 0x1cf   : > { %v6331_v1 = vpop.f32.mrf.mxu1  ;;  %5110 = vst [vmem:[%s8342_s22 + $0x8] sm:$0xff] %v5078_v2  ;;  %v5049_v30 = vadd.f32 %v8323_v8, %v5010_v16  ;;  %v5013_v32 = vmul.f32 %v8313_v13, %v4907_v45  ;;  %v4905_v12 = vadd.f32 %v4792_v25, %v4339_v60  ;;  %v4805_v5 = vpop.f32.mrf.mxu0  ;;  %v3780_v25 = vadd.f32 %v8226_v27, %v3354_v23 }
 0x1d0   : > { %v4344_v4 = vadd.f32 %v6331_v1, %v3778_v46  ;;  %v5083_v17 = vmax.f32 %v5051_v50, 0.0  ;;  %v3357_v46 = vadd.f32 %v8232_v31, %v8127_v39  ;;  %v3360_v60 = vadd.f32 %v8240_v52, %v8133_v6 }
 0x1d1   : > { %v4239_v42 = vpop.f32.mrf.mxu1  ;;  %v5081_v44 = vmax.f32 %v5049_v30, 0.0  ;;  %v5052_v14 = vadd.f32 %v8323_v8, %v5013_v32  ;;  %v5011_v38 = vmul.f32 %v8313_v13, %v4905_v12  ;;  %v6366_v28 = vpop.f32.mrf.mxu0  ;;  %v3781_v1 = vadd.f32 %v8234_v3, %v3355_v54 }
 0x1d2   : > { %v4910_v9 = vadd.f32 %v6365_v56, %v4344_v4  ;;  %5115 = vst [vmem:[%s8342_s22 + $0x30] sm:$0xff] %v5083_v17  ;;  %v4342_v47 = vadd.f32 %v4239_v42, %v3776_v24  ;;  %v3783_v50 = vadd.f32 %v8230_v33, %v3357_v46  ;;  %v3358_v6 = vadd.f32 %v8244_v40, %v8136_v57  ;;  %v8645_v17 = vld [vmem:[#allocation22_spill] sm:$0xff] }
 0x1d3   : > { %v6332_v58 = vpop.f32.mrf.mxu1  ;;  %5113 = vst [vmem:[%s8342_s22 + $0x20] sm:$0xff] %v5081_v44  ;;  %v5084_v21 = vmax.f32 %v5052_v14, 0.0  ;;  %v5050_v55 = vadd.f32 %v8323_v8, %v5011_v38  ;;  %v4808_v11 = vpop.f32.mrf.mxu0  ;;  %v3361_v33 = vadd.f32 %v8645_v17, %v8644_v62  ;;  %v8659_v17 = vld [vmem:[#allocation11_spill] sm:$0xff] }
 0x1d4   : > { %v5016_v26 = vmul.f32 %v8313_v13, %v4910_v9  ;;  %v4345_v48 = vadd.f32 %v6332_v58, %v3779_v37  ;;  %v4908_v19 = vadd.f32 %v4805_v5, %v4342_v47  ;;  %v3786_v37 = vadd.f32 %v8238_v51, %v3360_v60  ;;  %v8646_v9 = vld [vmem:[#allocation20_spill] sm:$0xff] }
 0x1d5   : > { %v4242_v41 = vpop.f32.mrf.mxu1  ;;  %5116 = vst [vmem:[%s8342_s22 + $0x38] sm:$0xff] %v5084_v21  ;;  %v5082_v61 = vmax.f32 %v5050_v55, 0.0  ;;  %v6369_v20 = vpop.f32.mrf.mxu0 }
 0x1d6   : > { %v5055_v7 = vadd.f32 %v8323_v8, %v5016_v26  ;;  %v4911_v63 = vadd.f32 %v6366_v28, %v4345_v48  ;;  %v4343_v36 = vadd.f32 %v4242_v41, %v3777_v43  ;;  %v5014_v53 = vmul.f32 %v8313_v13, %v4908_v19  ;;  %v8647_v26 = vld [vmem:[#allocation21_spill] sm:$0xff]  ;;  %v8650_v41 = vld [vmem:[#allocation8_spill] sm:$0xff] }
 0x1d7   : > { %v6335_v0 = vpop.f32.mrf.mxu1  ;;  %5114 = vst [vmem:[%s8342_s22 + $0x28] sm:$0xff] %v5082_v61  ;;  %v4821_v45 = vpop.f32.mrf.mxu0  ;;  %v3784_v28 = vadd.f32 %v8646_v9, %v3358_v6  ;;  %v3787_v48 = vadd.f32 %v8647_v26, %v3361_v33  ;;  %v8651_v61 = vld [vmem:[#allocation26_spill] sm:$0xff]  ;;  %v8660_v33 = vld [vmem:[#allocation32_spill] sm:$0xff] }
 0x1d8   : > { %v5087_v10 = vmax.f32 %v5055_v7, 0.0  ;;  %v5017_v35 = vmul.f32 %v8313_v13, %v4911_v63  ;;  %v4909_v2 = vadd.f32 %v4808_v11, %v4343_v36  ;;  %v4348_v16 = vadd.f32 %v6335_v0, %v3782_v34  ;;  %v8648_v11 = vld [vmem:[#allocation7_spill] sm:$0xff]  ;;  %v8649_v34 = vld [vmem:[#allocation24_spill] sm:$0xff]  ;;  %v8652_v0 = vld [vmem:[#allocation9_spill] sm:$0xff] }
 0x1d9   : > { %v5053_v27 = vadd.f32 %v8323_v8, %v5014_v53  ;;  %v4255_v56 = vpop.f32.mrf.mxu1  ;;  %v6370_v59 = vpop.f32.mrf.mxu0  ;;  %v3359_v19 = vadd.f32 %v8649_v34, %v8648_v11  ;;  %v3364_v7 = vadd.f32 %v8651_v61, %v8650_v41  ;;  %v8663_v34 = vld [vmem:[#allocation12_spill] sm:$0xff]  ;;  %v8665_v61 = vld [vmem:[#allocation13_spill] sm:$0xff] }
 0x1da   : > { %5119 = vst [vmem:[%s8342_s22 + $0x50] sm:$0xff] %v5087_v10  ;;  %v5056_v39 = vadd.f32 %v8323_v8, %v5017_v35  ;;  %v5015_v49 = vmul.f32 %v8313_v13, %v4909_v2  ;;  %v4914_v31 = vadd.f32 %v6369_v20, %v4348_v16  ;;  %v4346_v29 = vadd.f32 %v4255_v56, %v3780_v25  ;;  %v8653_v10 = vld [vmem:[#allocation28_spill] sm:$0xff] }
 0x1db   : > { %v5085_v52 = vmax.f32 %v5053_v27, 0.0  ;;  %v6336_v30 = vpop.f32.mrf.mxu1  ;;  %v4824_v24 = vpop.f32.mrf.mxu0  ;;  %v3362_v35 = vadd.f32 %v8653_v10, %v8652_v0  ;;  %v8667_v10 = vld [vmem:[#allocation14_spill] sm:$0xff] }
 0x1dc   : > { %v5088_v32 = vmax.f32 %v5056_v39, 0.0  ;;  %v5054_v12 = vadd.f32 %v8323_v8, %v5015_v49  ;;  %v5020_v4 = vmul.f32 %v8313_v13, %v4914_v31  ;;  %v4912_v5 = vadd.f32 %v4821_v45, %v4346_v29  ;;  %v8654_v49 = vld [vmem:[#allocation23_spill] sm:$0xff]  ;;  %v8655_v29 = vld [vmem:[#allocation25_spill] sm:$0xff] }
 0x1dd   : > { %5117 = vst [vmem:[%s8342_s22 + $0x40] sm:$0xff] %v5085_v52  ;;  %v4349_v3 = vadd.f32 %v6336_v30, %v3783_v50  ;;  %v4258_v42 = vpop.f32.mrf.mxu1  ;;  %v6373_v38 = vpop.f32.mrf.mxu0  ;;  %v3785_v31 = vadd.f32 %v8654_v49, %v3359_v19  ;;  %v8656_v50 = vld [vmem:[#allocation10_spill] sm:$0xff] }
 0x1de   : > { %5120 = vst [vmem:[%s8342_s22 + $0x58] sm:$0xff] %v5088_v32  ;;  %v5086_v57 = vmax.f32 %v5054_v12, 0.0  ;;  %v5059_v40 = vadd.f32 %v8323_v8, %v5020_v4  ;;  %v5018_v44 = vmul.f32 %v8313_v13, %v4912_v5  ;;  %v4347_v14 = vadd.f32 %v4258_v42, %v3781_v1  ;;  %v8657_v1 = vld [vmem:[#allocation30_spill] sm:$0xff] }
 0x1df   : > { %v4915_v43 = vadd.f32 %v6370_v59, %v4349_v3  ;;  %v6339_v23 = vpop.f32.mrf.mxu1  ;;  %v4837_v55 = vpop.f32.mrf.mxu0  ;;  %v3790_v59 = vadd.f32 %v8655_v29, %v3364_v7  ;;  %v3365_v6 = vadd.f32 %v8657_v1, %v8656_v50  ;;  %v3363_v3 = vadd.f32 %v8660_v33, %v8659_v17  ;;  %v8664_v19 = vld [vmem:[#allocation34_spill] sm:$0xff]  ;;  %v8666_v7 = vld [vmem:[#allocation36_spill] sm:$0xff]  ;;  %v8671_v1 = vld [vmem:[#allocation15_spill] sm:$0xff] }
 0x1e0   : > { %5118 = vst [vmem:[%s8342_s22 + $0x48] sm:$0xff] %v5086_v57  ;;  %v5091_v51 = vmax.f32 %v5059_v40, 0.0  ;;  %v5057_v47 = vadd.f32 %v8323_v8, %v5018_v44  ;;  %v4913_v58 = vadd.f32 %v4824_v24, %v4347_v14  ;;  %v4352_v21 = vadd.f32 %v6339_v23, %v3786_v37  ;;  %v8658_v37 = vld [vmem:[#allocation27_spill] sm:$0xff]  ;;  %v8674_v33 = vld [vmem:[#allocation16_spill] sm:$0xff] }
 0x1e1   : > { %v5021_v63 = vmul.f32 %v8313_v13, %v4915_v43  ;;  %v4271_v36 = vpop.f32.mrf.mxu1  ;;  %v6374_v53 = vpop.f32.mrf.mxu0  ;;  %v3788_v62 = vadd.f32 %v8658_v37, %v3362_v35  ;;  %v3368_v41 = vadd.f32 %v8664_v19, %v8663_v34  ;;  %v8668_v35 = vld [vmem:[#allocation38_spill] sm:$0xff]  ;;  %v8678_v19 = vld [vmem:[#allocation17_spill] sm:$0xff] }
 0x1e2   : > { %5123 = vst [vmem:[%s8342_s22 + $0x70] sm:$0xff] %v5091_v51  ;;  %v5089_v20 = vmax.f32 %v5057_v47, 0.0  ;;  %v5019_v25 = vmul.f32 %v8313_v13, %v4913_v58  ;;  %v4918_v46 = vadd.f32 %v6373_v38, %v4352_v21  ;;  %v4350_v54 = vadd.f32 %v4271_v36, %v3784_v28  ;;  %v8661_v28 = vld [vmem:[#allocation29_spill] sm:$0xff] }
 0x1e3   : > { %v5060_v2 = vadd.f32 %v8323_v8, %v5021_v63  ;;  %v6340_v16 = vpop.f32.mrf.mxu1  ;;  %v4840_v39 = vpop.f32.mrf.mxu0  ;;  %v3791_v43 = vadd.f32 %v8661_v28, %v3365_v6  ;;  %v3366_v63 = vadd.f32 %v8666_v7, %v8665_v61  ;;  %v8672_v6 = vld [vmem:[#allocation40_spill] sm:$0xff]  ;;  %v8680_v7 = vld [vmem:[#allocation18_spill] sm:$0xff] }
 0x1e4   : > { %5121 = vst [vmem:[%s8342_s22 + $0x60] sm:$0xff] %v5089_v20  ;;  %v5058_v45 = vadd.f32 %v8323_v8, %v5019_v25  ;;  %v5024_v60 = vmul.f32 %v8313_v13, %v4918_v46  ;;  %v4916_v27 = vadd.f32 %v4837_v55, %v4350_v54  ;;  %v4353_v56 = vadd.f32 %v6340_v16, %v3787_v48  ;;  %v8662_v48 = vld [vmem:[#allocation31_spill] sm:$0xff] }
 0x1e5   : > { %v5092_v52 = vmax.f32 %v5060_v2, 0.0  ;;  %v4274_v30 = vpop.f32.mrf.mxu1  ;;  %v6377_v24 = vpop.f32.mrf.mxu0  ;;  %v3789_v11 = vadd.f32 %v8662_v48, %v3363_v3  ;;  %v3369_v2 = vadd.f32 %v8668_v35, %v8667_v10  ;;  %v8675_v3 = vld [vmem:[#allocation42_spill] sm:$0xff]  ;;  %v8681_v10 = vld [vmem:[#allocation19_spill] sm:$0xff] }
 0x1e6   : > { %v5090_v32 = vmax.f32 %v5058_v45, 0.0  ;;  %v5063_v12 = vadd.f32 %v8323_v8, %v5024_v60  ;;  %v5022_v4 = vmul.f32 %v8313_v13, %v4916_v27  ;;  %v4919_v5 = vadd.f32 %v6374_v53, %v4353_v56 }
 0x1e7   : > { %5124 = vst [vmem:[%s8342_s22 + $0x78] sm:$0xff] %v5092_v52  ;;  %v4351_v42 = vadd.f32 %v4274_v30, %v3785_v31  ;;  %v6343_v57 = vpop.f32.mrf.mxu1  ;;  %v4853_v9 = vpop.f32.mrf.mxu0  ;;  %v8669_v31 = vld [vmem:[#allocation33_spill] sm:$0xff]  ;;  %v3367_v52 = vadd.f32 %v8672_v6, %v8671_v1  ;;  %v3371_v35 = vadd.f32 %v8302_v22, %v8681_v10 }
 0x1e8   : > { %5122 = vst [vmem:[%s8342_s22 + $0x68] sm:$0xff] %v5090_v32  ;;  %v5095_v40 = vmax.f32 %v5063_v12, 0.0  ;;  %v5061_v44 = vadd.f32 %v8323_v8, %v5022_v4  ;;  %v5025_v14 = vmul.f32 %v8313_v13, %v4919_v5  ;;  %v4356_v38 = vadd.f32 %v6343_v57, %v3790_v59  ;;  %v8670_v59 = vld [vmem:[#allocation35_spill] sm:$0xff] }
 0x1e9   : > { %v4917_v23 = vadd.f32 %v4840_v39, %v4351_v42  ;;  %v4287_v51 = vpop.f32.mrf.mxu1  ;;  %v6378_v26 = vpop.f32.mrf.mxu0  ;;  %v3794_v29 = vadd.f32 %v8669_v31, %v3368_v41  ;;  %v3792_v50 = vadd.f32 %v8670_v59, %v3366_v63  ;;  %v3372_v42 = vadd.f32 %v8675_v3, %v8674_v33  ;;  %v8679_v41 = vld [vmem:[#allocation44_spill] sm:$0xff]  ;;  %v8683_v31 = vld [vmem:[#allocation45_spill] sm:$0xff] }
 0x1ea   : > { %5127 = vst [vmem:[%s8342_s22 + $0x90] sm:$0xff] %v5095_v40  ;;  %v5093_v47 = vmax.f32 %v5061_v44, 0.0  ;;  %v5064_v58 = vadd.f32 %v8323_v8, %v5025_v14  ;;  %v4922_v21 = vadd.f32 %v6377_v24, %v4356_v38  ;;  %v4354_v55 = vadd.f32 %v4287_v51, %v3788_v62  ;;  %v8673_v62 = vld [vmem:[#allocation37_spill] sm:$0xff] }
 0x1eb   : > { %v5023_v36 = vmul.f32 %v8313_v13, %v4917_v23  ;;  %v6344_v20 = vpop.f32.mrf.mxu1  ;;  %v4856_v0 = vpop.f32.mrf.mxu0  ;;  %v3795_v17 = vadd.f32 %v8673_v62, %v3369_v2  ;;  %v3370_v61 = vadd.f32 %v8679_v41, %v8678_v19  ;;  %v3373_v63 = vadd.f32 %v8297_v18, %v8680_v7 }
 0x1ec   : > { %5125 = vst [vmem:[%s8342_s22 + $0x80] sm:$0xff] %v5093_v47  ;;  %v5096_v25 = vmax.f32 %v5064_v58, 0.0  ;;  %v5028_v46 = vmul.f32 %v8313_v13, %v4922_v21  ;;  %v4920_v54 = vadd.f32 %v4853_v9, %v4354_v55  ;;  %v4357_v53 = vadd.f32 %v6344_v20, %v3791_v43  ;;  %v8676_v43 = vld [vmem:[#allocation39_spill] sm:$0xff] }
 0x1ed   : > { %v5062_v16 = vadd.f32 %v8323_v8, %v5023_v36  ;;  %v4290_v45 = vpop.f32.mrf.mxu1  ;;  %v6381_v49 = vpop.f32.mrf.mxu0  ;;  %v3793_v23 = vadd.f32 %v8676_v43, %v3367_v52 }
 0x1ee   : > { %5128 = vst [vmem:[%s8342_s22 + $0x98] sm:$0xff] %v5096_v25  ;;  %v5067_v60 = vadd.f32 %v8323_v8, %v5028_v46  ;;  %v5026_v27 = vmul.f32 %v8313_v13, %v4920_v54  ;;  %v4923_v56 = vadd.f32 %v6378_v26, %v4357_v53  ;;  %v4355_v39 = vadd.f32 %v4290_v45, %v3789_v11  ;;  %v8677_v11 = vld [vmem:[#allocation41_spill] sm:$0xff] }
 0x1ef   : > { %v5094_v30 = vmax.f32 %v5062_v16, 0.0  ;;  %v6347_v32 = vpop.f32.mrf.mxu1  ;;  %v4869_v37 = vpop.f32.mrf.mxu0  ;;  %v3798_v34 = vadd.f32 %v8677_v11, %v3372_v42 }
 0x1f0   : > { %v5099_v12 = vmax.f32 %v5067_v60, 0.0  ;;  %v5065_v4 = vadd.f32 %v8323_v8, %v5026_v27  ;;  %v5029_v5 = vmul.f32 %v8313_v13, %v4923_v56  ;;  %v4921_v24 = vadd.f32 %v4856_v0, %v4355_v39  ;;  %v8682_v39 = vld [vmem:[#allocation43_spill] sm:$0xff] }
 0x1f1   : > { %5126 = vst [vmem:[%s8342_s22 + $0x88] sm:$0xff] %v5094_v30  ;;  %v4360_v57 = vadd.f32 %v6347_v32, %v3794_v29  ;;  %v4303_v40 = vpop.f32.mrf.mxu1  ;;  %v6382_v28 = vpop.f32.mrf.mxu0  ;;  %v3799_v29 = vadd.f32 %v8683_v31, %v3373_v63  ;;  %v3797_v30 = vadd.f32 %v8300_v15, %v3371_v35 }
 0x1f2   : > { %5131 = vst [vmem:[%s8342_s22 + $0xb0] sm:$0xff] %v5099_v12  ;;  %v5097_v44 = vmax.f32 %v5065_v4, 0.0  ;;  %v5068_v14 = vadd.f32 %v8323_v8, %v5029_v5  ;;  %v5027_v38 = vmul.f32 %v8313_v13, %v4921_v24  ;;  %v4358_v9 = vadd.f32 %v4303_v40, %v3792_v50 }
 0x1f3   : > { %v4926_v51 = vadd.f32 %v6381_v49, %v4360_v57  ;;  %v6348_v47 = vpop.f32.mrf.mxu1  ;;  %v4872_v48 = vpop.f32.mrf.mxu0  ;;  %v3796_v49 = vadd.f32 %v8682_v39, %v3370_v61 }
 0x1f4   : > { %5129 = vst [vmem:[%s8342_s22 + $0xa0] sm:$0xff] %v5097_v44  ;;  %v5100_v58 = vmax.f32 %v5068_v14, 0.0  ;;  %v5066_v21 = vadd.f32 %v8323_v8, %v5027_v38  ;;  %v4924_v55 = vadd.f32 %v4869_v37, %v4358_v9  ;;  %v4361_v26 = vadd.f32 %v6348_v47, %v3795_v17 }
 0x1f5   : > { %v5032_v36 = vmul.f32 %v8313_v13, %v4926_v51  ;;  %v4306_v20 = vpop.f32.mrf.mxu1  ;;  %v6385_v0 = vpop.f32.mrf.mxu0 }
 0x1f6   : > { %5132 = vst [vmem:[%s8342_s22 + $0xb8] sm:$0xff] %v5100_v58  ;;  %v5098_v25 = vmax.f32 %v5066_v21, 0.0  ;;  %v5030_v46 = vmul.f32 %v8313_v13, %v4924_v55  ;;  %v4927_v54 = vadd.f32 %v6382_v28, %v4361_v26  ;;  %v4359_v53 = vadd.f32 %v4306_v20, %v3793_v23 }
 0x1f7   : > { %v5071_v2 = vadd.f32 %v8323_v8, %v5032_v36  ;;  %v6351_v16 = vpop.f32.mrf.mxu1  ;;  %v4885_v56 = vpop.f32.mrf.mxu0 }
 0x1f8   : > { %5130 = vst [vmem:[%s8342_s22 + $0xa8] sm:$0xff] %v5098_v25  ;;  %v5069_v18 = vadd.f32 %v8323_v8, %v5030_v46  ;;  %v5033_v45 = vmul.f32 %v8313_v13, %v4927_v54  ;;  %v4925_v60 = vadd.f32 %v4872_v48, %v4359_v53  ;;  %v4364_v27 = vadd.f32 %v6351_v16, %v3798_v34 }
 0x1f9   : > { %v5103_v59 = vmax.f32 %v5071_v2, 0.0  ;;  %v4319_v50 = vpop.f32.mrf.mxu1  ;;  %v6386_v4 = vpop.f32.mrf.mxu0 }
 0x1fa   : > { %v5101_v22 = vmax.f32 %v5069_v18, 0.0  ;;  %v5072_v1 = vadd.f32 %v8323_v8, %v5033_v45  ;;  %v5031_v6 = vmul.f32 %v8313_v13, %v4925_v60  ;;  %v4930_v52 = vadd.f32 %v6385_v0, %v4364_v27 }
 0x1fb   : > { %5135 = vst [vmem:[%s8342_s22 + $0xd0] sm:$0xff] %v5103_v59  ;;  %v4362_v32 = vadd.f32 %v4319_v50, %v3796_v49  ;;  %v6352_v12 = vpop.f32.mrf.mxu1  ;;  %v4888_v44 = vpop.f32.mrf.mxu0 }
 0x1fc   : > { %5133 = vst [vmem:[%s8342_s22 + $0xc0] sm:$0xff] %v5101_v22  ;;  %v5104_v5 = vmax.f32 %v5072_v1, 0.0  ;;  %v5070_v24 = vadd.f32 %v8323_v8, %v5031_v6  ;;  %v5036_v37 = vmul.f32 %v8313_v13, %v4930_v52  ;;  %v4365_v62 = vadd.f32 %v6352_v12, %v3799_v29 }
 0x1fd   : > { %v4928_v17 = vadd.f32 %v4885_v56, %v4362_v32  ;;  %v4322_v33 = vpop.f32.mrf.mxu1 }
 0x1fe   : > { %5136 = vst [vmem:[%s8342_s22 + $0xd8] sm:$0xff] %v5104_v5  ;;  %v5102_v3 = vmax.f32 %v5070_v24, 0.0  ;;  %v5075_v15 = vadd.f32 %v8323_v8, %v5036_v37  ;;  %v4931_v42 = vadd.f32 %v6386_v4, %v4365_v62  ;;  %v4363_v57 = vadd.f32 %v4322_v33, %v3797_v30 }
 0x1ff   : > { %v5034_v40 = vmul.f32 %v8313_v13, %v4928_v17 }
 0x200   : > { %5134 = vst [vmem:[%s8342_s22 + $0xc8] sm:$0xff] %v5102_v3  ;;  %v5107_v14 = vmax.f32 %v5075_v15, 0.0  ;;  %v5037_v38 = vmul.f32 %v8313_v13, %v4931_v42  ;;  %v4929_v9 = vadd.f32 %v4888_v44, %v4363_v57 }
 0x201   : > { %v5073_v28 = vadd.f32 %v8323_v8, %v5034_v40 }
 0x202   : > { %5139 = vst [vmem:[%s8342_s22 + $0xf0] sm:$0xff] %v5107_v14  ;;  %v5076_v43 = vadd.f32 %v8323_v8, %v5037_v38  ;;  %v5035_v23 = vmul.f32 %v8313_v13, %v4929_v9 }
 0x203   : > { %v5105_v51 = vmax.f32 %v5073_v28, 0.0 }
 0x204   : > { %v5108_v47 = vmax.f32 %v5076_v43, 0.0  ;;  %v5074_v58 = vadd.f32 %v8323_v8, %v5035_v23 }
 0x205   : > { %5137 = vst [vmem:[%s8342_s22 + $0xe0] sm:$0xff] %v5105_v51 }
 0x206   : > { %5140 = vst [vmem:[%s8342_s22 + $0xf8] sm:$0xff] %v5108_v47  ;;  %v5106_v21 = vmax.f32 %v5074_v58, 0.0 }
 0x208   : > { %5138 = vst [vmem:[%s8342_s22 + $0xe8] sm:$0xff] %v5106_v21 }
 0x209   : > { %6518 = shalt.err (!%p6515_p5)
}
 0x20a   : > { %s6519_s10 = scalar_lea.hbm %s8509_s5, 4096  ;;  %s6523_s13 = scalar_lea.hbm %s8566_s4, 8192 }
 0x20b   : > { %p6520_p6 = scmp.ne.s32.totalorder %s8509_s5, %s6519_s10  ;;  %p6524_p10 = scmp.lt.s32.totalorder %s8509_s5, %s8566_s4 }
 0x20c   : > { %p6525_p11 = scmp.lt.s32.totalorder %s6523_s13, %s6519_s10 }
 0x20d   : > { %p6521_p7 = pnand %p6520_p6, %p6651_p4 }
 0x20e   : > { %p6526_p12 = por %p6525_p11, %p6524_p10 }
 0x20f   : > { %p6522_p9 = pneg %p6521_p7 }
 0x211   : > { %p6527_p13 = pnand %p6526_p12, %p6522_p9 }
 0x213   : > { %6530 = shalt.err (!%p6527_p13)
}
 0x214   : > { %s6584_s22 = smov 128   ;;  %s6585_s24 = smov 8  }
 0x215   : > { %6400 = dma.vmem_to_hbm [thread:$0]  (%p6651_p4), %s8511_s26, 4096, %s8509_s5, %s8517_s18, %s6584_s22, %s6584_s22, %s6585_s24  }
 0x216 PF: > { %p6406_p0 = scmp.ge.s32.totalorder %s6581_s20, 2  ;;  %s5172_s29 = sand.u32 1, %s6561_s15  }
 0x217   : > { %s5173_s30 = scalar_lea.sflag [#allocation4], %s5172_s29 }
 0x218   : > { %p6403_p1 = pnand %p6406_p0, %p6658_p8 }
 0x21a   : > { %p6404_p2 = pneg %p6403_p1 }
 0x21c   : > { %6556 = dma.done.wait (%p6404_p2), %s5173_s30, 4096  }
 0x21d   : > { %6558 = vsyncadd (%p6404_p2), %s5173_s30, 4294963200  ;;  %s17_s20 = sadd.s32 1, %s6581_s20   ;;  %s8684_s15 = smov %s6565_s16 }
 0x21e   : > { %p14_p3 = scmp.ge.s32.totalorder %s17_s20, 4   ;;  %s8685_s16 = smov %s6569_s17 }
 0x21f   : > { %s8686_s17 = smov %s6664_s28  ;;  %s8687_s18 = smov %s6577_s19 }
 0x220   : > { %s8688_s19 = smov %s8690_s23  ;;  %16 = sbr.rel (!%p14_p3) target bundleno = 4 (0x4), region = 93 }
 0x225   :  { %5178 = vsyncpa [#allocation4], 1 }
 0x226   :  { %5180 = vsyncpa [#allocation4 + $0x1], 1 }

</bundles_post_ra>
